<compile_context>
chip_gen: v7x
topology: tpu7x:2x2x1
jax: 0.10.0
libtpu: 0.0.40
codegen_flags: <defaults>
</compile_context>

<pallas_src>
import jax
import jax.numpy as jnp
from jax.experimental import pallas as pl
from jax.experimental.pallas import tpu as pltpu

EPS = 1e-4  # PointGroup: norm_fn = partial(nn.BatchNorm1d, eps=1e-4, momentum=0.1)


# ------------------------------- small helpers -------------------------------

def _round_up(n, m):
    return ((n + m - 1) // m) * m


def _pick_tz(depth, batch, min_steps=4):
    """Largest per-batch z-slab tile giving >= min_steps total grid steps."""
    for tz in range(min(depth, 8), 0, -1):
        if depth % tz == 0 and batch * (depth // tz) >= min_steps:
            return tz
    return 1


def _default_vmem_limit():
    # Generation-aware scoped-VMEM budget: ~3/4 of physical, capped at 96 MiB
    # (v5e/v6e have 128 MiB physical VMEM, v7x only 64 MiB -> ~48 MiB).
    try:
        cap = int(pltpu.get_tpu_info().vmem_capacity_bytes)
        return min((cap * 3) // 4, 96 * 1024 * 1024)
    except Exception:
        return 48 * 1024 * 1024


VMEM_LIMIT = _default_vmem_limit()


# ------------------------------- Pallas kernels -------------------------------

def _make_subm3_kernel(TZ, Cin, Cout, P, W, D, Kc, Kc_pad, has_res):
    """Fused SubMConv3d(k=3): BN+ReLU prologue, in-kernel im2col, MXU dot,
    fused residual add and fused next-BN sum/sumsq in the epilogue."""
    G = W + 1  # in-plane guard size (one padded row + one column on each side)
    taps = [(dz, dy, dx) for dz in range(3) for dy in range(3) for dx in range(3)]

    def kernel(x_ref, pm_ref, dxm_ref, w_ref, scale_ref, shift_ref, *rest):
        if has_res:
            res_ref, o_ref, stats_ref, slab_ref, patch_ref = rest
        else:
            o_ref, stats_ref, slab_ref, patch_ref = rest

        b = pl.program_id(0)
        jz = pl.program_id(1)
        base = b * (D + 2) + jz * TZ  # first padded z-plane of this slab

        # zero the contraction-padding rows of the patch scratch
        if Kc_pad > Kc:
            patch_ref[pl.ds(Kc, Kc_pad - Kc), :] = jnp.zeros(
                (Kc_pad - Kc, P), patch_ref.dtype)

        # ---- prologue: fused BatchNorm + ReLU over the (TZ+2)-plane slab ----
        scale = scale_ref[...]          # [Cin, 1]
        shift = shift_ref[...]          # [Cin, 1]
        for lp in range(TZ + 2):
            zp = base + lp
            raw = x_ref[zp].astype(jnp.float32)                    # [Cin, Pg]
            bn = jnp.maximum(raw * scale + shift, 0.0) * pm_ref[zp]
            slab_ref[lp] = bn.astype(slab_ref.dtype)

        dxm = dxm_ref[...]                                         # [2, P]
        s_acc = jnp.zeros((Cout, 1), jnp.float32)
        q_acc = jnp.zeros((Cout, 1), jnp.float32)

        # ---- per output plane: in-kernel im2col + one MXU dot ----
        for lz in range(TZ):
            for t, (dz, dy, dx) in enumerate(taps):
                off = G + (dy - 1) * W + (dx - 1)                  # static lane offset
                tap = slab_ref[lz + dz, :, pl.ds(off, P)]          # [Cin, P]
                if dx == 0:      # x-1 tap: invalid where x == 0
                    tap = tap * dxm[0:1, :]
                elif dx == 2:    # x+1 tap: invalid where x == W-1
                    tap = tap * dxm[1:2, :]
                patch_ref[pl.ds(t * Cin, Cin), :] = tap
            acc = jnp.dot(w_ref[...], patch_ref[...],
                          preferred_element_type=jnp.float32)      # [Cout, P]
            if has_res:
                acc = acc + res_ref[lz]
            o_ref[lz] = acc.astype(o_ref.dtype)
            s_acc = s_acc + jnp.sum(acc, axis=1, keepdims=True)
            q_acc = q_acc + jnp.sum(acc * acc, axis=1, keepdims=True)

        # partial batch-stats for the NEXT BatchNorm (reduced outside the kernel)
        stats_ref[0, 0, :, 0:1] = s_acc
        stats_ref[0, 0, :, 1:2] = q_acc

    return kernel


def _make_mm_bn_kernel(TZ, Cout):
    """Fused BN+ReLU -> matmul (channel-folded conv) with fused output stats."""
    def kernel(x_ref, w_ref, scale_ref, shift_ref, o_ref, stats_ref):
        scale = scale_ref[...]
        shift = shift_ref[...]
        s_acc = jnp.zeros((Cout, 1), jnp.float32)
        q_acc = jnp.zeros((Cout, 1), jnp.float32)
        for lz in range(TZ):
            raw = x_ref[lz].astype(jnp.float32)                    # [Cin, P]
            bn = jnp.maximum(raw * scale + shift, 0.0).astype(jnp.bfloat16)
            acc = jnp.dot(w_ref[...], bn, preferred_element_type=jnp.float32)
            o_ref[lz] = acc.astype(o_ref.dtype)
            s_acc = s_acc + jnp.sum(acc, axis=1, keepdims=True)
            q_acc = q_acc + jnp.sum(acc * acc, axis=1, keepdims=True)
        stats_ref[0, :, 0:1] = s_acc
        stats_ref[0, :, 1:2] = q_acc
    return kernel


# ------------------------------ kernel wrappers -------------------------------

def subm_conv3(x, dims, w, scale, shift, *, residual=None, out_dtype=jnp.float32):
    """SubMConv3d(k=3, pad=1) on a dense grid, fully fused.

    x:        [Z, Cin, P] trunk (Z = B*D, P = H*W), f32 or bf16.
    w:        [27, Cin, Cout] f32 (tap-major (dz,dy,dx)).
    scale/shift: [Cin, 1] f32 BN affine (batch stats already folded in).
    residual: optional [Z, Cout, P] f32 added in the epilogue.
    Returns (out [Z, Cout, P] out_dtype, stats [Cout, 2] f32 = (sum, sumsq)).
    """
    B, D, H, W = dims
    Z, Cin, P = x.shape
    assert Z == B * D and P == H * W
    Cout = w.shape[-1]
    Kc = 27 * Cin
    Kc_pad = _round_up(Kc, 256)
    TZ = _pick_tz(D, B)
    SD = D // TZ
    G = W + 1
    Pg = P + 2 * G
    Zp = B * (D + 2)

    # zero-pad z per batch + in-plane guards (~1.3x relayout, not a 27x im2col)
    xp = jnp.pad(x.reshape(B, D, Cin, P), ((0, 0), (1, 1), (0, 0), (0, 0)))
    xp = jnp.pad(xp.reshape(Zp, Cin, P), ((0, 0), (0, 0), (G, G)))

    # plane mask: re-zero in-plane guards and z-halo planes after the fused BN+ReLU
    lane = jnp.arange(Pg)
    inplane = ((lane >= G) & (lane < G + P)).astype(jnp.float32)
    zl = jnp.arange(Zp) % (D + 2)
    zvalid = ((zl >= 1) & (zl <= D)).astype(jnp.float32)
    pm = zvalid[:, None, None] * inplane[None, None, :]
    # x-wrap masks for the dx = -1 / +1 stencil columns
    xcoord = jnp.arange(P) % W
    dxm = jnp.stack([(xcoord >= 1), (xcoord <= W - 2)], axis=0).astype(jnp.bfloat16)

    w_t = jnp.transpose(w, (2, 0, 1)).reshape(Cout, Kc)
    w_t = jnp.pad(w_t, ((0, 0), (0, Kc_pad - Kc))).astype(jnp.bfloat16)

    in_specs = [
        pl.BlockSpec((Zp, Cin, Pg), lambda b, j: (0, 0, 0)),   # VMEM-resident volume
        pl.BlockSpec((Zp, 1, Pg), lambda b, j: (0, 0, 0)),
        pl.BlockSpec((2, P), lambda b, j: (0, 0)),
        pl.BlockSpec((Cout, Kc_pad), lambda b, j: (0, 0)),     # VMEM-resident weights
        pl.BlockSpec((Cin, 1), lambda b, j: (0, 0)),
        pl.BlockSpec((Cin, 1), lambda b, j: (0, 0)),
    ]
    args = [xp, pm, dxm, w_t, scale, shift]
    if residual is not None:
        in_specs.append(pl.BlockSpec((TZ, Cout, P), lambda b, j: (b * SD + j, 0, 0)))
        args.append(residual.astype(jnp.float32))

    kernel = _make_subm3_kernel(TZ, Cin, Cout, P, W, D, Kc, Kc_pad,
                                residual is not None)
    out, stats = pl.pallas_call(
        kernel,
        out_shape=(jax.ShapeDtypeStruct((Z, Cout, P), out_dtype),
                   jax.ShapeDtypeStruct((B, SD, Cout, 2), jnp.float32)),
        grid_spec=pltpu.PrefetchScalarGridSpec(
            num_scalar_prefetch=0,
            grid=(B, SD),
            in_specs=in_specs,
            out_specs=[pl.BlockSpec((TZ, Cout, P), lambda b, j: (b * SD + j, 0, 0)),
                       pl.BlockSpec((1, 1, Cout, 2), lambda b, j: (b, j, 0, 0))],
            scratch_shapes=[pltpu.VMEM((TZ + 2, Cin, Pg), jnp.bfloat16),
                            pltpu.VMEM((Kc_pad, P), jnp.bfloat16)],
        ),
        compiler_params=pltpu.CompilerParams(
            dimension_semantics=("parallel", "parallel"),
            vmem_limit_bytes=VMEM_LIMIT,
        ),
    )(*args)
    return out, stats.sum(axis=(0, 1))


def mm_bn_conv(x, w_t, scale, shift, *, out_dtype=jnp.float32):
    """Fused (BN, ReLU, channel-folded conv) matmul kernel.

    Used for SparseConv3d(k=2,s=2) after a space-to-depth relayout (Cin = 8*C0)
    and for SparseInverseConv3d(k=2) before a depth-to-space relayout.
    x: [Z, Cin, P]; w_t: [Cout, Cin]; scale/shift: [Cin, 1] f32.
    Returns (out [Z, Cout, P] out_dtype, stats [Cout, 2] f32).
    """
    Z, Cin, P = x.shape
    Cout = w_t.shape[0]
    TZ = _pick_tz(Z, 1)
    S = Z // TZ
    out, stats = pl.pallas_call(
        _make_mm_bn_kernel(TZ, Cout),
        out_shape=(jax.ShapeDtypeStruct((Z, Cout, P), out_dtype),
                   jax.ShapeDtypeStruct((S, Cout, 2), jnp.float32)),
        grid_spec=pltpu.PrefetchScalarGridSpec(
            num_scalar_prefetch=0,
            grid=(S,),
            in_specs=[pl.BlockSpec((TZ, Cin, P), lambda j: (j, 0, 0)),
                      pl.BlockSpec((Cout, Cin), lambda j: (0, 0)),
                      pl.BlockSpec((Cin, 1), lambda j: (0, 0)),
                      pl.BlockSpec((Cin, 1), lambda j: (0, 0))],
            out_specs=[pl.BlockSpec((TZ, Cout, P), lambda j: (j, 0, 0)),
                       pl.BlockSpec((1, Cout, 2), lambda j: (j, 0, 0))],
        ),
        compiler_params=pltpu.CompilerParams(
            dimension_semantics=("parallel",),
            vmem_limit_bytes=VMEM_LIMIT,
        ),
    )(x, w_t.astype(jnp.bfloat16), scale, shift)
    return out, stats.sum(axis=0)


# ---------------------------- layout / BN helpers -----------------------------

def _to_trunk(x_bdhwc):
    B, D, H, W, C = x_bdhwc.shape
    return jnp.transpose(x_bdhwc, (0, 1, 4, 2, 3)).reshape(B * D, C, H * W)


def _from_trunk(x, dims):
    B, D, H, W = dims
    Z, C, P = x.shape
    return jnp.transpose(x.reshape(B, D, C, H, W), (0, 1, 3, 4, 2))


def _space_to_depth2(x, dims):
    """[B*D, C, H*W] -> [B*(D/2), 8*C, (H/2)*(W/2)] (tap-major channel blocks)."""
    B, D, H, W = dims
    _, C, _ = x.shape
    assert D % 2 == 0 and H % 2 == 0 and W % 2 == 0
    Do, Ho, Wo = D // 2, H // 2, W // 2
    v = x.reshape(B, Do, 2, C, Ho, 2, Wo, 2)
    v = jnp.transpose(v, (0, 1, 2, 5, 7, 3, 4, 6))
    return v.reshape(B * Do, 8 * C, Ho * Wo)


def _depth_to_space2(u, coarse_dims, C):
    """[B*Dc, 8*C, Hc*Wc] (tap-major rows) -> [B*2Dc, C, (2Hc)*(2Wc)]."""
    B, Dc, Hc, Wc = coarse_dims
    v = u.reshape(B, Dc, 2, 2, 2, C, Hc, Wc)
    v = jnp.transpose(v, (0, 1, 2, 5, 6, 3, 7, 4))
    return v.reshape(B * Dc * 2, C, (Hc * 2) * (Wc * 2))


def _bn_affine(stats, count, gamma, beta):
    """Training-mode BatchNorm1d affine from fused (sum, sumsq) batch stats."""
    s = stats[:, 0]
    q = stats[:, 1]
    mean = s / count
    var = jnp.maximum(q / count - mean * mean, 0.0)   # biased batch variance
    scale = gamma * jax.lax.rsqrt(var + EPS)
    shift = beta - mean * scale
    return (scale.reshape(-1, 1).astype(jnp.float32),
            shift.reshape(-1, 1).astype(jnp.float32))


def _tensor_stats(x):
    xf = x.astype(jnp.float32)
    return jnp.stack([jnp.sum(xf, axis=(0, 2)), jnp.sum(xf * xf, axis=(0, 2))], axis=1)


# ------------------------------ pure-JAX reference ----------------------------

def _subm_conv3_reference(x, dims, w, scale, shift, residual=None):
    """Reference for subm_conv3 (mirrors the kernel's bf16 quantization)."""
    B, D, H, W = dims
    Z, Cin, P = x.shape
    Cout = w.shape[-1]
    bn = jnp.maximum(x.astype(jnp.float32) * scale[None] + shift[None], 0.0)
    bn = bn.astype(jnp.bfloat16).astype(jnp.float32)
    vol = jnp.pad(bn.reshape(B, D, Cin, H, W),
                  ((0, 0), (1, 1), (0, 0), (1, 1), (1, 1)))
    wf = w.astype(jnp.bfloat16).astype(jnp.float32)
    out = jnp.zeros((B, D, Cout, H, W), jnp.float32)
    t = 0
    for dz in range(3):
        for dy in range(3):
            for dx in range(3):
                tap = vol[:, dz:dz + D, :, dy:dy + H, dx:dx + W]
                out = out + jnp.einsum("bzcyx,co->bzoyx", tap, wf[t])
                t += 1
    out = out.reshape(Z, Cout, P)
    if residual is not None:
        out = out + residual
    return out


# ------------------------------ parameter setup -------------------------------

class ParamGen:
    def __init__(self, seed=42):
        self.key = jax.random.PRNGKey(seed)
        self.count = 0

    def weight(self, shape, scale=0.1):
        self.count += 1
        k = jax.random.fold_in(self.key, self.count)
        return (scale * jax.random.normal(k, shape)).astype(jnp.float32)

    def bn(self, c):
        return {"gamma": jnp.ones((c,), jnp.float32),
                "beta": jnp.zeros((c,), jnp.float32)}


def init_residual_block(pg, in_c, out_c):
    p = {"bn1": pg.bn(in_c),
         "conv1": pg.weight((27, in_c, out_c)),
         "bn2": pg.bn(out_c),
         "conv2": pg.weight((27, out_c, out_c))}
    if in_c != out_c:
        p["i_branch"] = pg.weight((1, in_c, out_c))
    return p


def init_ublock(pg, nPlanes, block_reps):
    C0 = nPlanes[0]
    p = {"blocks": [init_residual_block(pg, C0, C0) for _ in range(block_reps)]}
    if len(nPlanes) > 1:
        C1 = nPlanes[1]
        p["conv_bn"] = pg.bn(C0)
        p["conv_w"] = pg.weight((8, C0, C1))
        p["u"] = init_ublock(pg, nPlanes[1:], block_reps)
        p["deconv_bn"] = pg.bn(C1)
        p["deconv_w"] = pg.weight((8, C1, C0))
        p["blocks_tail"] = [init_residual_block(pg, C0 * (2 - i), C0)
                            for i in range(block_reps)]
    return p


# ---------------------------------- forward -----------------------------------

def residual_block_fwd(p, x, stats, dims):
    """spconv ResidualBlock: (BN,ReLU,conv3,BN,ReLU,conv3) + identity.
    BN apply, residual add and next-BN stats are all fused into the conv kernels."""
    Z, Cin, P = x.shape
    count = Z * P
    sc1, sh1 = _bn_affine(stats, count, p["bn1"]["gamma"], p["bn1"]["beta"])
    h, h_stats = subm_conv3(x, dims, p["conv1"], sc1, sh1,
                            residual=None, out_dtype=jnp.bfloat16)
    sc2, sh2 = _bn_affine(h_stats, count, p["bn2"]["gamma"], p["bn2"]["beta"])
    if "i_branch" in p:
        # TODO(synk): the 1x1 identity branch stays a tiny XLA einsum; it could be
        # folded into conv2's contraction with a BN-bypass path.
        res = jnp.einsum("co,zcp->zop", p["i_branch"][0], x.astype(jnp.float32))
    else:
        res = x
    out, out_stats = subm_conv3(h, dims, p["conv2"], sc2, sh2,
                                residual=res, out_dtype=jnp.float32)
    return out, out_stats


def ublock_fwd(p, x, stats, nPlanes, dims):
    B, D, H, W = dims
    out, st = x, stats
    for bp in p["blocks"]:
        out, st = residual_block_fwd(bp, out, st, dims)

    if len(nPlanes) > 1:
        C0, C1 = nPlanes[0], nPlanes[1]
        identity, id_st = out, st
        Z, _, P = out.shape

        # encoder: BN, ReLU, SparseConv3d(k=2, s=2)  (space-to-depth + fused matmul)
        sc, sh = _bn_affine(st, Z * P, p["conv_bn"]["gamma"], p["conv_bn"]["beta"])
        enc_in = _space_to_depth2(out, dims)                       # [Zo, 8*C0, Po]
        w_enc = jnp.transpose(p["conv_w"], (2, 0, 1)).reshape(C1, 8 * C0)
        dec, dec_st = mm_bn_conv(enc_in, w_enc,
                                 jnp.tile(sc, (8, 1)), jnp.tile(sh, (8, 1)),
                                 out_dtype=jnp.float32)

        half = (B, D // 2, H // 2, W // 2)
        dec, dec_st = ublock_fwd(p["u"], dec, dec_st, nPlanes[1:], half)

        # decoder: BN, ReLU, SparseInverseConv3d(k=2) (fused matmul + depth-to-space)
        Zc, _, Pc = dec.shape
        dsc, dsh = _bn_affine(dec_st, Zc * Pc,
                              p["deconv_bn"]["gamma"], p["deconv_bn"]["beta"])
        w_dec = jnp.transpose(p["deconv_w"], (0, 2, 1)).reshape(8 * C0, C1)
        up8, up8_st = mm_bn_conv(dec, w_dec, dsc, dsh, out_dtype=jnp.float32)
        # TODO(synk): depth-to-space stays an XLA permutation (one pass over a small
        # tensor); in-kernel strided stores would remove this extra HBM round trip.
        up = _depth_to_space2(up8, half, C0)
        up_st = up8_st.reshape(8, C0, 2).sum(axis=0)

        out = jnp.concatenate([identity, up], axis=1)
        st = jnp.concatenate([id_st, up_st], axis=0)
        for bp in p["blocks_tail"]:
            out, st = residual_block_fwd(bp, out, st, dims)
    return out, st


# ------------------------------------ main ------------------------------------

if __name__ == "__main__":
    nPlanes = [16, 32]       # 2-level UBlock
    block_reps = 2
    B, D, H, W = 1, 16, 16, 16

    pg = ParamGen(seed=42)
    params = init_ublock(pg, nPlanes, block_reps)

    # --- validate the fused subm-conv kernel against a pure-JAX reference ---
    k1, k2, k3, k4, k5 = jax.random.split(jax.random.PRNGKey(123), 5)
    cx = jax.random.normal(k1, (B * D, nPlanes[0], H * W), jnp.float32)
    cw = 0.1 * jax.random.normal(k2, (27, nPlanes[0], nPlanes[0]), jnp.float32)
    csc = (0.5 + jnp.abs(jax.random.normal(k3, (nPlanes[0], 1)))).astype(jnp.float32)
    csh = (0.1 * jax.random.normal(k4, (nPlanes[0], 1))).astype(jnp.float32)
    cres = jax.random.normal(k5, (B * D, nPlanes[0], H * W), jnp.float32)
    conv_fn = jax.jit(lambda a, ww, s0, s1, r: subm_conv3(
        a, (B, D, H, W), ww, s0, s1, residual=r, out_dtype=jnp.float32))
    got, got_stats = jax.block_until_ready(conv_fn(cx, cw, csc, csh, cres))
    ref = _subm_conv3_reference(cx, (B, D, H, W), cw, csc, csh, cres)
    err = float(jnp.max(jnp.abs(got - ref)))
    assert err < 2e-2, f"fused subm conv mismatch: max abs err {err}"
    ref_stats = jnp.stack([ref.sum(axis=(0, 2)), (ref * ref).sum(axis=(0, 2))], axis=1)
    assert bool(jnp.allclose(got_stats, ref_stats, rtol=5e-3, atol=1.0)), \
        "fused BN stats mismatch"

    # --- full UBlock forward ---
    key = jax.random.PRNGKey(0)
    x = jax.random.normal(key, (B, D, H, W, nPlanes[0]), jnp.float32)

    def fwd(p, xin):
        trunk = _to_trunk(xin)                       # [B*D, C0, H*W] f32
        st = _tensor_stats(trunk)
        out, _ = ublock_fwd(p, trunk, st, nPlanes, (B, D, H, W))
        return _from_trunk(out, (B, D, H, W))

    out = jax.block_until_ready(jax.jit(fwd)(params, x))
    assert out.shape == (B, D, H, W, nPlanes[0]), out.shape
    assert out.dtype == jnp.float32
    assert bool(jnp.all(jnp.isfinite(out)))
    print("KERNEL_OK")
</pallas_src>

<mosaic_0001>
module attributes {stable_mosaic.version = 11 : i64} {
  func.func @kernel(%arg0: i32, %arg1: i32, %arg2: memref<18x16x290xf32, #tpu.memory_space<vmem>>, %arg3: memref<18x1x290xf32, #tpu.memory_space<vmem>>, %arg4: memref<2x256xbf16, #tpu.memory_space<vmem>>, %arg5: memref<16x512xbf16, #tpu.memory_space<vmem>>, %arg6: memref<16x1xf32, #tpu.memory_space<vmem>>, %arg7: memref<16x1xf32, #tpu.memory_space<vmem>>, %arg8: memref<4x16x256xf32, #tpu.memory_space<vmem>>, %arg9: memref<4x16x256xf32, #tpu.memory_space<vmem>>, %arg10: memref<1x1x16x2xf32, #tpu.memory_space<vmem>>, %arg11: memref<6x16x290xbf16, #tpu.memory_space<vmem>>, %arg12: memref<512x256xbf16, #tpu.memory_space<vmem>>) attributes {dimension_semantics = [#tpu.dimension_semantics<parallel>, #tpu.dimension_semantics<parallel>], iteration_bounds = array<i64: 1, 4>, scalar_prefetch = 0 : i64, scratch_operands = 2 : i64, tpu.core_type = #tpu.core_type<tc>, window_params = [{pipeline_mode = #tpu.pipeline_mode<synchronous>, transform_indices = @transform_0, window_bounds = array<i64: 18, 16, 290>}, {pipeline_mode = #tpu.pipeline_mode<synchronous>, transform_indices = @transform_1, window_bounds = array<i64: 18, 1, 290>}, {pipeline_mode = #tpu.pipeline_mode<synchronous>, transform_indices = @transform_2, window_bounds = array<i64: 2, 256>}, {pipeline_mode = #tpu.pipeline_mode<synchronous>, transform_indices = @transform_3, window_bounds = array<i64: 16, 512>}, {pipeline_mode = #tpu.pipeline_mode<synchronous>, transform_indices = @transform_4, window_bounds = array<i64: 16, 1>}, {pipeline_mode = #tpu.pipeline_mode<synchronous>, transform_indices = @transform_5, window_bounds = array<i64: 16, 1>}, {transform_indices = @transform_6, window_bounds = array<i64: 4, 16, 256>}, {transform_indices = @transform_7, window_bounds = array<i64: 4, 16, 256>}, {transform_indices = @transform_8, window_bounds = array<i64: 1, 1, 16, 2>}]} {
    %c18_i32 = arith.constant 18 : i32
    %0 = arith.muli %arg0, %c18_i32 : i32
    %c4_i32 = arith.constant 4 : i32
    %1 = arith.muli %arg1, %c4_i32 : i32
    %2 = arith.addi %0, %1 : i32
    %cst = arith.constant 0.000000e+00 : bf16
    %3 = vector.broadcast %cst : bf16 to vector<80x256xbf16>
    %c432 = arith.constant 432 : index
    %c0 = arith.constant 0 : index
    %4 = vector.load %arg12[%c432, %c0] : memref<512x256xbf16, #tpu.memory_space<vmem>>, vector<80x256xbf16>
    tpu.vector_store %arg12[%c432, %c0], %3 {strides = array<i32>} : memref<512x256xbf16, #tpu.memory_space<vmem>>, vector<80x256xbf16>,
    %c0_0 = arith.constant 0 : index
    %c0_1 = arith.constant 0 : index
    %5 = vector.load %arg6[%c0_0, %c0_1] : memref<16x1xf32, #tpu.memory_space<vmem>>, vector<16x1xf32>
    %c0_2 = arith.constant 0 : index
    %c0_3 = arith.constant 0 : index
    %6 = vector.load %arg7[%c0_2, %c0_3] : memref<16x1xf32, #tpu.memory_space<vmem>>, vector<16x1xf32>
    %c0_i32 = arith.constant 0 : i32
    %7 = arith.addi %2, %c0_i32 : i32
    %8 = arith.index_cast %7 : i32 to index
    %c0_4 = arith.constant 0 : index
    %c0_5 = arith.constant 0 : index
    %9 = vector.load %arg2[%8, %c0_4, %c0_5] : memref<18x16x290xf32, #tpu.memory_space<vmem>>, vector<1x16x290xf32>
    %10 = vector.shape_cast %9 : vector<1x16x290xf32> to vector<16x290xf32>
    %11 = vector.broadcast %5 : vector<16x1xf32> to vector<16x290xf32>
    %12 = arith.mulf %10, %11 : vector<16x290xf32>
    %13 = vector.broadcast %6 : vector<16x1xf32> to vector<16x290xf32>
    %14 = arith.addf %12, %13 : vector<16x290xf32>
    %cst_6 = arith.constant 0.000000e+00 : f32
    %15 = vector.broadcast %cst_6 : f32 to vector<16x290xf32>
    %16 = arith.maximumf %14, %15 : vector<16x290xf32>
    %17 = arith.index_cast %7 : i32 to index
    %c0_7 = arith.constant 0 : index
    %c0_8 = arith.constant 0 : index
    %18 = vector.load %arg3[%17, %c0_7, %c0_8] : memref<18x1x290xf32, #tpu.memory_space<vmem>>, vector<1x1x290xf32>
    %19 = vector.shape_cast %18 : vector<1x1x290xf32> to vector<1x290xf32>
    %20 = vector.broadcast %19 : vector<1x290xf32> to vector<16x290xf32>
    %21 = arith.mulf %16, %20 : vector<16x290xf32>
    %22 = arith.truncf %21 : vector<16x290xf32> to vector<16x290xbf16>
    %c0_9 = arith.constant 0 : index
    %c0_10 = arith.constant 0 : index
    %c0_11 = arith.constant 0 : index
    %23 = vector.load %arg11[%c0_9, %c0_10, %c0_11] : memref<6x16x290xbf16, #tpu.memory_space<vmem>>, vector<1x16x290xbf16>
    %24 = vector.shape_cast %23 : vector<1x16x290xbf16> to vector<16x290xbf16>
    %25 = vector.shape_cast %22 : vector<16x290xbf16> to vector<1x16x290xbf16>
    tpu.vector_store %arg11[%c0_9, %c0_10, %c0_11], %25 {strides = array<i32>} : memref<6x16x290xbf16, #tpu.memory_space<vmem>>, vector<1x16x290xbf16>,
    %c1_i32 = arith.constant 1 : i32
    %26 = arith.addi %2, %c1_i32 : i32
    %27 = arith.index_cast %26 : i32 to index
    %c0_12 = arith.constant 0 : index
    %c0_13 = arith.constant 0 : index
    %28 = vector.load %arg2[%27, %c0_12, %c0_13] : memref<18x16x290xf32, #tpu.memory_space<vmem>>, vector<1x16x290xf32>
    %29 = vector.shape_cast %28 : vector<1x16x290xf32> to vector<16x290xf32>
    %30 = vector.broadcast %5 : vector<16x1xf32> to vector<16x290xf32>
    %31 = arith.mulf %29, %30 : vector<16x290xf32>
    %32 = vector.broadcast %6 : vector<16x1xf32> to vector<16x290xf32>
    %33 = arith.addf %31, %32 : vector<16x290xf32>
    %cst_14 = arith.constant 0.000000e+00 : f32
    %34 = vector.broadcast %cst_14 : f32 to vector<16x290xf32>
    %35 = arith.maximumf %33, %34 : vector<16x290xf32>
    %36 = arith.index_cast %26 : i32 to index
    %c0_15 = arith.constant 0 : index
    %c0_16 = arith.constant 0 : index
    %37 = vector.load %arg3[%36, %c0_15, %c0_16] : memref<18x1x290xf32, #tpu.memory_space<vmem>>, vector<1x1x290xf32>
    %38 = vector.shape_cast %37 : vector<1x1x290xf32> to vector<1x290xf32>
    %39 = vector.broadcast %38 : vector<1x290xf32> to vector<16x290xf32>
    %40 = arith.mulf %35, %39 : vector<16x290xf32>
    %41 = arith.truncf %40 : vector<16x290xf32> to vector<16x290xbf16>
    %c1 = arith.constant 1 : index
    %c0_17 = arith.constant 0 : index
    %c0_18 = arith.constant 0 : index
    %42 = vector.load %arg11[%c1, %c0_17, %c0_18] : memref<6x16x290xbf16, #tpu.memory_space<vmem>>, vector<1x16x290xbf16>
    %43 = vector.shape_cast %42 : vector<1x16x290xbf16> to vector<16x290xbf16>
    %44 = vector.shape_cast %41 : vector<16x290xbf16> to vector<1x16x290xbf16>
    tpu.vector_store %arg11[%c1, %c0_17, %c0_18], %44 {strides = array<i32>} : memref<6x16x290xbf16, #tpu.memory_space<vmem>>, vector<1x16x290xbf16>,
    %c2_i32 = arith.constant 2 : i32
    %45 = arith.addi %2, %c2_i32 : i32
    %46 = arith.index_cast %45 : i32 to index
    %c0_19 = arith.constant 0 : index
    %c0_20 = arith.constant 0 : index
    %47 = vector.load %arg2[%46, %c0_19, %c0_20] : memref<18x16x290xf32, #tpu.memory_space<vmem>>, vector<1x16x290xf32>
    %48 = vector.shape_cast %47 : vector<1x16x290xf32> to vector<16x290xf32>
    %49 = vector.broadcast %5 : vector<16x1xf32> to vector<16x290xf32>
    %50 = arith.mulf %48, %49 : vector<16x290xf32>
    %51 = vector.broadcast %6 : vector<16x1xf32> to vector<16x290xf32>
    %52 = arith.addf %50, %51 : vector<16x290xf32>
    %cst_21 = arith.constant 0.000000e+00 : f32
    %53 = vector.broadcast %cst_21 : f32 to vector<16x290xf32>
    %54 = arith.maximumf %52, %53 : vector<16x290xf32>
    %55 = arith.index_cast %45 : i32 to index
    %c0_22 = arith.constant 0 : index
    %c0_23 = arith.constant 0 : index
    %56 = vector.load %arg3[%55, %c0_22, %c0_23] : memref<18x1x290xf32, #tpu.memory_space<vmem>>, vector<1x1x290xf32>
    %57 = vector.shape_cast %56 : vector<1x1x290xf32> to vector<1x290xf32>
    %58 = vector.broadcast %57 : vector<1x290xf32> to vector<16x290xf32>
    %59 = arith.mulf %54, %58 : vector<16x290xf32>
    %60 = arith.truncf %59 : vector<16x290xf32> to vector<16x290xbf16>
    %c2 = arith.constant 2 : index
    %c0_24 = arith.constant 0 : index
    %c0_25 = arith.constant 0 : index
    %61 = vector.load %arg11[%c2, %c0_24, %c0_25] : memref<6x16x290xbf16, #tpu.memory_space<vmem>>, vector<1x16x290xbf16>
    %62 = vector.shape_cast %61 : vector<1x16x290xbf16> to vector<16x290xbf16>
    %63 = vector.shape_cast %60 : vector<16x290xbf16> to vector<1x16x290xbf16>
    tpu.vector_store %arg11[%c2, %c0_24, %c0_25], %63 {strides = array<i32>} : memref<6x16x290xbf16, #tpu.memory_space<vmem>>, vector<1x16x290xbf16>,
    %c3_i32 = arith.constant 3 : i32
    %64 = arith.addi %2, %c3_i32 : i32
    %65 = arith.index_cast %64 : i32 to index
    %c0_26 = arith.constant 0 : index
    %c0_27 = arith.constant 0 : index
    %66 = vector.load %arg2[%65, %c0_26, %c0_27] : memref<18x16x290xf32, #tpu.memory_space<vmem>>, vector<1x16x290xf32>
    %67 = vector.shape_cast %66 : vector<1x16x290xf32> to vector<16x290xf32>
    %68 = vector.broadcast %5 : vector<16x1xf32> to vector<16x290xf32>
    %69 = arith.mulf %67, %68 : vector<16x290xf32>
    %70 = vector.broadcast %6 : vector<16x1xf32> to vector<16x290xf32>
    %71 = arith.addf %69, %70 : vector<16x290xf32>
    %cst_28 = arith.constant 0.000000e+00 : f32
    %72 = vector.broadcast %cst_28 : f32 to vector<16x290xf32>
    %73 = arith.maximumf %71, %72 : vector<16x290xf32>
    %74 = arith.index_cast %64 : i32 to index
    %c0_29 = arith.constant 0 : index
    %c0_30 = arith.constant 0 : index
    %75 = vector.load %arg3[%74, %c0_29, %c0_30] : memref<18x1x290xf32, #tpu.memory_space<vmem>>, vector<1x1x290xf32>
    %76 = vector.shape_cast %75 : vector<1x1x290xf32> to vector<1x290xf32>
    %77 = vector.broadcast %76 : vector<1x290xf32> to vector<16x290xf32>
    %78 = arith.mulf %73, %77 : vector<16x290xf32>
    %79 = arith.truncf %78 : vector<16x290xf32> to vector<16x290xbf16>
    %c3 = arith.constant 3 : index
    %c0_31 = arith.constant 0 : index
    %c0_32 = arith.constant 0 : index
    %80 = vector.load %arg11[%c3, %c0_31, %c0_32] : memref<6x16x290xbf16, #tpu.memory_space<vmem>>, vector<1x16x290xbf16>
    %81 = vector.shape_cast %80 : vector<1x16x290xbf16> to vector<16x290xbf16>
    %82 = vector.shape_cast %79 : vector<16x290xbf16> to vector<1x16x290xbf16>
    tpu.vector_store %arg11[%c3, %c0_31, %c0_32], %82 {strides = array<i32>} : memref<6x16x290xbf16, #tpu.memory_space<vmem>>, vector<1x16x290xbf16>,
    %c4_i32_33 = arith.constant 4 : i32
    %83 = arith.addi %2, %c4_i32_33 : i32
    %84 = arith.index_cast %83 : i32 to index
    %c0_34 = arith.constant 0 : index
    %c0_35 = arith.constant 0 : index
    %85 = vector.load %arg2[%84, %c0_34, %c0_35] : memref<18x16x290xf32, #tpu.memory_space<vmem>>, vector<1x16x290xf32>
    %86 = vector.shape_cast %85 : vector<1x16x290xf32> to vector<16x290xf32>
    %87 = vector.broadcast %5 : vector<16x1xf32> to vector<16x290xf32>
    %88 = arith.mulf %86, %87 : vector<16x290xf32>
    %89 = vector.broadcast %6 : vector<16x1xf32> to vector<16x290xf32>
    %90 = arith.addf %88, %89 : vector<16x290xf32>
    %cst_36 = arith.constant 0.000000e+00 : f32
    %91 = vector.broadcast %cst_36 : f32 to vector<16x290xf32>
    %92 = arith.maximumf %90, %91 : vector<16x290xf32>
    %93 = arith.index_cast %83 : i32 to index
    %c0_37 = arith.constant 0 : index
    %c0_38 = arith.constant 0 : index
    %94 = vector.load %arg3[%93, %c0_37, %c0_38] : memref<18x1x290xf32, #tpu.memory_space<vmem>>, vector<1x1x290xf32>
    %95 = vector.shape_cast %94 : vector<1x1x290xf32> to vector<1x290xf32>
    %96 = vector.broadcast %95 : vector<1x290xf32> to vector<16x290xf32>
    %97 = arith.mulf %92, %96 : vector<16x290xf32>
    %98 = arith.truncf %97 : vector<16x290xf32> to vector<16x290xbf16>
    %c4 = arith.constant 4 : index
    %c0_39 = arith.constant 0 : index
    %c0_40 = arith.constant 0 : index
    %99 = vector.load %arg11[%c4, %c0_39, %c0_40] : memref<6x16x290xbf16, #tpu.memory_space<vmem>>, vector<1x16x290xbf16>
    %100 = vector.shape_cast %99 : vector<1x16x290xbf16> to vector<16x290xbf16>
    %101 = vector.shape_cast %98 : vector<16x290xbf16> to vector<1x16x290xbf16>
    tpu.vector_store %arg11[%c4, %c0_39, %c0_40], %101 {strides = array<i32>} : memref<6x16x290xbf16, #tpu.memory_space<vmem>>, vector<1x16x290xbf16>,
    %c5_i32 = arith.constant 5 : i32
    %102 = arith.addi %2, %c5_i32 : i32
    %103 = arith.index_cast %102 : i32 to index
    %c0_41 = arith.constant 0 : index
    %c0_42 = arith.constant 0 : index
    %104 = vector.load %arg2[%103, %c0_41, %c0_42] : memref<18x16x290xf32, #tpu.memory_space<vmem>>, vector<1x16x290xf32>
    %105 = vector.shape_cast %104 : vector<1x16x290xf32> to vector<16x290xf32>
    %106 = vector.broadcast %5 : vector<16x1xf32> to vector<16x290xf32>
    %107 = arith.mulf %105, %106 : vector<16x290xf32>
    %108 = vector.broadcast %6 : vector<16x1xf32> to vector<16x290xf32>
    %109 = arith.addf %107, %108 : vector<16x290xf32>
    %cst_43 = arith.constant 0.000000e+00 : f32
    %110 = vector.broadcast %cst_43 : f32 to vector<16x290xf32>
    %111 = arith.maximumf %109, %110 : vector<16x290xf32>
    %112 = arith.index_cast %102 : i32 to index
    %c0_44 = arith.constant 0 : index
    %c0_45 = arith.constant 0 : index
    %113 = vector.load %arg3[%112, %c0_44, %c0_45] : memref<18x1x290xf32, #tpu.memory_space<vmem>>, vector<1x1x290xf32>
    %114 = vector.shape_cast %113 : vector<1x1x290xf32> to vector<1x290xf32>
    %115 = vector.broadcast %114 : vector<1x290xf32> to vector<16x290xf32>
    %116 = arith.mulf %111, %115 : vector<16x290xf32>
    %117 = arith.truncf %116 : vector<16x290xf32> to vector<16x290xbf16>
    %c5 = arith.constant 5 : index
    %c0_46 = arith.constant 0 : index
    %c0_47 = arith.constant 0 : index
    %118 = vector.load %arg11[%c5, %c0_46, %c0_47] : memref<6x16x290xbf16, #tpu.memory_space<vmem>>, vector<1x16x290xbf16>
    %119 = vector.shape_cast %118 : vector<1x16x290xbf16> to vector<16x290xbf16>
    %120 = vector.shape_cast %117 : vector<16x290xbf16> to vector<1x16x290xbf16>
    tpu.vector_store %arg11[%c5, %c0_46, %c0_47], %120 {strides = array<i32>} : memref<6x16x290xbf16, #tpu.memory_space<vmem>>, vector<1x16x290xbf16>,
    %c0_48 = arith.constant 0 : index
    %c0_49 = arith.constant 0 : index
    %121 = vector.load %arg4[%c0_48, %c0_49] : memref<2x256xbf16, #tpu.memory_space<vmem>>, vector<2x256xbf16>
    %cst_50 = arith.constant 0.000000e+00 : f32
    %122 = vector.broadcast %cst_50 : f32 to vector<16x1xf32>
    %cst_51 = arith.constant 0.000000e+00 : f32
    %123 = vector.broadcast %cst_51 : f32 to vector<16x1xf32>
    %c0_52 = arith.constant 0 : index
    %c0_53 = arith.constant 0 : index
    %c0_54 = arith.constant 0 : index
    %124 = vector.load %arg11[%c0_52, %c0_53, %c0_54] : memref<6x16x290xbf16, #tpu.memory_space<vmem>>, vector<1x16x256xbf16>
    %125 = vector.shape_cast %124 : vector<1x16x256xbf16> to vector<16x256xbf16>
    %126 = vector.extract_strided_slice %121 {offsets = [0, 0], sizes = [1, 256], strides = [1, 1]} : vector<2x256xbf16> to vector<1x256xbf16>
    %127 = vector.broadcast %126 : vector<1x256xbf16> to vector<16x256xbf16>
    %128 = arith.mulf %125, %127 : vector<16x256xbf16>
    %c0_55 = arith.constant 0 : index
    %c0_56 = arith.constant 0 : index
    %129 = vector.load %arg12[%c0_55, %c0_56] : memref<512x256xbf16, #tpu.memory_space<vmem>>, vector<16x256xbf16>
    tpu.vector_store %arg12[%c0_55, %c0_56], %128 {strides = array<i32>} : memref<512x256xbf16, #tpu.memory_space<vmem>>, vector<16x256xbf16>,
    %c0_57 = arith.constant 0 : index
    %c0_58 = arith.constant 0 : index
    %c1_59 = arith.constant 1 : index
    %130 = vector.load %arg11[%c0_57, %c0_58, %c1_59] : memref<6x16x290xbf16, #tpu.memory_space<vmem>>, vector<1x16x256xbf16>
    %131 = vector.shape_cast %130 : vector<1x16x256xbf16> to vector<16x256xbf16>
    %c16 = arith.constant 16 : index
    %c0_60 = arith.constant 0 : index
    %132 = vector.load %arg12[%c16, %c0_60] : memref<512x256xbf16, #tpu.memory_space<vmem>>, vector<16x256xbf16>
    tpu.vector_store %arg12[%c16, %c0_60], %131 {strides = array<i32>} : memref<512x256xbf16, #tpu.memory_space<vmem>>, vector<16x256xbf16>,
    %c0_61 = arith.constant 0 : index
    %c0_62 = arith.constant 0 : index
    %c2_63 = arith.constant 2 : index
    %133 = vector.load %arg11[%c0_61, %c0_62, %c2_63] : memref<6x16x290xbf16, #tpu.memory_space<vmem>>, vector<1x16x256xbf16>
    %134 = vector.shape_cast %133 : vector<1x16x256xbf16> to vector<16x256xbf16>
    %135 = vector.extract_strided_slice %121 {offsets = [1, 0], sizes = [1, 256], strides = [1, 1]} : vector<2x256xbf16> to vector<1x256xbf16>
    %136 = vector.broadcast %135 : vector<1x256xbf16> to vector<16x256xbf16>
    %137 = arith.mulf %134, %136 : vector<16x256xbf16>
    %c32 = arith.constant 32 : index
    %c0_64 = arith.constant 0 : index
    %138 = vector.load %arg12[%c32, %c0_64] : memref<512x256xbf16, #tpu.memory_space<vmem>>, vector<16x256xbf16>
    tpu.vector_store %arg12[%c32, %c0_64], %137 {strides = array<i32>} : memref<512x256xbf16, #tpu.memory_space<vmem>>, vector<16x256xbf16>,
    %c0_65 = arith.constant 0 : index
    %c0_66 = arith.constant 0 : index
    %c16_67 = arith.constant 16 : index
    %139 = vector.load %arg11[%c0_65, %c0_66, %c16_67] : memref<6x16x290xbf16, #tpu.memory_space<vmem>>, vector<1x16x256xbf16>
    %140 = vector.shape_cast %139 : vector<1x16x256xbf16> to vector<16x256xbf16>
    %141 = vector.extract_strided_slice %121 {offsets = [0, 0], sizes = [1, 256], strides = [1, 1]} : vector<2x256xbf16> to vector<1x256xbf16>
    %142 = vector.broadcast %141 : vector<1x256xbf16> to vector<16x256xbf16>
    %143 = arith.mulf %140, %142 : vector<16x256xbf16>
    %c48 = arith.constant 48 : index
    %c0_68 = arith.constant 0 : index
    %144 = vector.load %arg12[%c48, %c0_68] : memref<512x256xbf16, #tpu.memory_space<vmem>>, vector<16x256xbf16>
    tpu.vector_store %arg12[%c48, %c0_68], %143 {strides = array<i32>} : memref<512x256xbf16, #tpu.memory_space<vmem>>, vector<16x256xbf16>,
    %c0_69 = arith.constant 0 : index
    %c0_70 = arith.constant 0 : index
    %c17 = arith.constant 17 : index
    %145 = vector.load %arg11[%c0_69, %c0_70, %c17] : memref<6x16x290xbf16, #tpu.memory_space<vmem>>, vector<1x16x256xbf16>
    %146 = vector.shape_cast %145 : vector<1x16x256xbf16> to vector<16x256xbf16>
    %c64 = arith.constant 64 : index
    %c0_71 = arith.constant 0 : index
    %147 = vector.load %arg12[%c64, %c0_71] : memref<512x256xbf16, #tpu.memory_space<vmem>>, vector<16x256xbf16>
    tpu.vector_store %arg12[%c64, %c0_71], %146 {strides = array<i32>} : memref<512x256xbf16, #tpu.memory_space<vmem>>, vector<16x256xbf16>,
    %c0_72 = arith.constant 0 : index
    %c0_73 = arith.constant 0 : index
    %c18 = arith.constant 18 : index
    %148 = vector.load %arg11[%c0_72, %c0_73, %c18] : memref<6x16x290xbf16, #tpu.memory_space<vmem>>, vector<1x16x256xbf16>
    %149 = vector.shape_cast %148 : vector<1x16x256xbf16> to vector<16x256xbf16>
    %150 = vector.extract_strided_slice %121 {offsets = [1, 0], sizes = [1, 256], strides = [1, 1]} : vector<2x256xbf16> to vector<1x256xbf16>
    %151 = vector.broadcast %150 : vector<1x256xbf16> to vector<16x256xbf16>
    %152 = arith.mulf %149, %151 : vector<16x256xbf16>
    %c80 = arith.constant 80 : index
    %c0_74 = arith.constant 0 : index
    %153 = vector.load %arg12[%c80, %c0_74] : memref<512x256xbf16, #tpu.memory_space<vmem>>, vector<16x256xbf16>
    tpu.vector_store %arg12[%c80, %c0_74], %152 {strides = array<i32>} : memref<512x256xbf16, #tpu.memory_space<vmem>>, vector<16x256xbf16>,
    %c0_75 = arith.constant 0 : index
    %c0_76 = arith.constant 0 : index
    %c32_77 = arith.constant 32 : index
    %154 = vector.load %arg11[%c0_75, %c0_76, %c32_77] : memref<6x16x290xbf16, #tpu.memory_space<vmem>>, vector<1x16x256xbf16>
    %155 = vector.shape_cast %154 : vector<1x16x256xbf16> to vector<16x256xbf16>
    %156 = vector.extract_strided_slice %121 {offsets = [0, 0], sizes = [1, 256], strides = [1, 1]} : vector<2x256xbf16> to vector<1x256xbf16>
    %157 = vector.broadcast %156 : vector<1x256xbf16> to vector<16x256xbf16>
    %158 = arith.mulf %155, %157 : vector<16x256xbf16>
    %c96 = arith.constant 96 : index
    %c0_78 = arith.constant 0 : index
    %159 = vector.load %arg12[%c96, %c0_78] : memref<512x256xbf16, #tpu.memory_space<vmem>>, vector<16x256xbf16>
    tpu.vector_store %arg12[%c96, %c0_78], %158 {strides = array<i32>} : memref<512x256xbf16, #tpu.memory_space<vmem>>, vector<16x256xbf16>,
    %c0_79 = arith.constant 0 : index
    %c0_80 = arith.constant 0 : index
    %c33 = arith.constant 33 : index
    %160 = vector.load %arg11[%c0_79, %c0_80, %c33] : memref<6x16x290xbf16, #tpu.memory_space<vmem>>, vector<1x16x256xbf16>
    %161 = vector.shape_cast %160 : vector<1x16x256xbf16> to vector<16x256xbf16>
    %c112 = arith.constant 112 : index
    %c0_81 = arith.constant 0 : index
    %162 = vector.load %arg12[%c112, %c0_81] : memref<512x256xbf16, #tpu.memory_space<vmem>>, vector<16x256xbf16>
    tpu.vector_store %arg12[%c112, %c0_81], %161 {strides = array<i32>} : memref<512x256xbf16, #tpu.memory_space<vmem>>, vector<16x256xbf16>,
    %c0_82 = arith.constant 0 : index
    %c0_83 = arith.constant 0 : index
    %c34 = arith.constant 34 : index
    %163 = vector.load %arg11[%c0_82, %c0_83, %c34] : memref<6x16x290xbf16, #tpu.memory_space<vmem>>, vector<1x16x256xbf16>
    %164 = vector.shape_cast %163 : vector<1x16x256xbf16> to vector<16x256xbf16>
    %165 = vector.extract_strided_slice %121 {offsets = [1, 0], sizes = [1, 256], strides = [1, 1]} : vector<2x256xbf16> to vector<1x256xbf16>
    %166 = vector.broadcast %165 : vector<1x256xbf16> to vector<16x256xbf16>
    %167 = arith.mulf %164, %166 : vector<16x256xbf16>
    %c128 = arith.constant 128 : index
    %c0_84 = arith.constant 0 : index
    %168 = vector.load %arg12[%c128, %c0_84] : memref<512x256xbf16, #tpu.memory_space<vmem>>, vector<16x256xbf16>
    tpu.vector_store %arg12[%c128, %c0_84], %167 {strides = array<i32>} : memref<512x256xbf16, #tpu.memory_space<vmem>>, vector<16x256xbf16>,
    %c1_85 = arith.constant 1 : index
    %c0_86 = arith.constant 0 : index
    %c0_87 = arith.constant 0 : index
    %169 = vector.load %arg11[%c1_85, %c0_86, %c0_87] : memref<6x16x290xbf16, #tpu.memory_space<vmem>>, vector<1x16x256xbf16>
    %170 = vector.shape_cast %169 : vector<1x16x256xbf16> to vector<16x256xbf16>
    %171 = vector.extract_strided_slice %121 {offsets = [0, 0], sizes = [1, 256], strides = [1, 1]} : vector<2x256xbf16> to vector<1x256xbf16>
    %172 = vector.broadcast %171 : vector<1x256xbf16> to vector<16x256xbf16>
    %173 = arith.mulf %170, %172 : vector<16x256xbf16>
    %c144 = arith.constant 144 : index
    %c0_88 = arith.constant 0 : index
    %174 = vector.load %arg12[%c144, %c0_88] : memref<512x256xbf16, #tpu.memory_space<vmem>>, vector<16x256xbf16>
    tpu.vector_store %arg12[%c144, %c0_88], %173 {strides = array<i32>} : memref<512x256xbf16, #tpu.memory_space<vmem>>, vector<16x256xbf16>,
    %c1_89 = arith.constant 1 : index
    %c0_90 = arith.constant 0 : index
    %c1_91 = arith.constant 1 : index
    %175 = vector.load %arg11[%c1_89, %c0_90, %c1_91] : memref<6x16x290xbf16, #tpu.memory_space<vmem>>, vector<1x16x256xbf16>
    %176 = vector.shape_cast %175 : vector<1x16x256xbf16> to vector<16x256xbf16>
    %c160 = arith.constant 160 : index
    %c0_92 = arith.constant 0 : index
    %177 = vector.load %arg12[%c160, %c0_92] : memref<512x256xbf16, #tpu.memory_space<vmem>>, vector<16x256xbf16>
    tpu.vector_store %arg12[%c160, %c0_92], %176 {strides = array<i32>} : memref<512x256xbf16, #tpu.memory_space<vmem>>, vector<16x256xbf16>,
    %c1_93 = arith.constant 1 : index
    %c0_94 = arith.constant 0 : index
    %c2_95 = arith.constant 2 : index
    %178 = vector.load %arg11[%c1_93, %c0_94, %c2_95] : memref<6x16x290xbf16, #tpu.memory_space<vmem>>, vector<1x16x256xbf16>
    %179 = vector.shape_cast %178 : vector<1x16x256xbf16> to vector<16x256xbf16>
    %180 = vector.extract_strided_slice %121 {offsets = [1, 0], sizes = [1, 256], strides = [1, 1]} : vector<2x256xbf16> to vector<1x256xbf16>
    %181 = vector.broadcast %180 : vector<1x256xbf16> to vector<16x256xbf16>
    %182 = arith.mulf %179, %181 : vector<16x256xbf16>
    %c176 = arith.constant 176 : index
    %c0_96 = arith.constant 0 : index
    %183 = vector.load %arg12[%c176, %c0_96] : memref<512x256xbf16, #tpu.memory_space<vmem>>, vector<16x256xbf16>
    tpu.vector_store %arg12[%c176, %c0_96], %182 {strides = array<i32>} : memref<512x256xbf16, #tpu.memory_space<vmem>>, vector<16x256xbf16>,
    %c1_97 = arith.constant 1 : index
    %c0_98 = arith.constant 0 : index
    %c16_99 = arith.constant 16 : index
    %184 = vector.load %arg11[%c1_97, %c0_98, %c16_99] : memref<6x16x290xbf16, #tpu.memory_space<vmem>>, vector<1x16x256xbf16>
    %185 = vector.shape_cast %184 : vector<1x16x256xbf16> to vector<16x256xbf16>
    %186 = vector.extract_strided_slice %121 {offsets = [0, 0], sizes = [1, 256], strides = [1, 1]} : vector<2x256xbf16> to vector<1x256xbf16>
    %187 = vector.broadcast %186 : vector<1x256xbf16> to vector<16x256xbf16>
    %188 = arith.mulf %185, %187 : vector<16x256xbf16>
    %c192 = arith.constant 192 : index
    %c0_100 = arith.constant 0 : index
    %189 = vector.load %arg12[%c192, %c0_100] : memref<512x256xbf16, #tpu.memory_space<vmem>>, vector<16x256xbf16>
    tpu.vector_store %arg12[%c192, %c0_100], %188 {strides = array<i32>} : memref<512x256xbf16, #tpu.memory_space<vmem>>, vector<16x256xbf16>,
    %c1_101 = arith.constant 1 : index
    %c0_102 = arith.constant 0 : index
    %c17_103 = arith.constant 17 : index
    %190 = vector.load %arg11[%c1_101, %c0_102, %c17_103] : memref<6x16x290xbf16, #tpu.memory_space<vmem>>, vector<1x16x256xbf16>
    %191 = vector.shape_cast %190 : vector<1x16x256xbf16> to vector<16x256xbf16>
    %c208 = arith.constant 208 : index
    %c0_104 = arith.constant 0 : index
    %192 = vector.load %arg12[%c208, %c0_104] : memref<512x256xbf16, #tpu.memory_space<vmem>>, vector<16x256xbf16>
    tpu.vector_store %arg12[%c208, %c0_104], %191 {strides = array<i32>} : memref<512x256xbf16, #tpu.memory_space<vmem>>, vector<16x256xbf16>,
    %c1_105 = arith.constant 1 : index
    %c0_106 = arith.constant 0 : index
    %c18_107 = arith.constant 18 : index
    %193 = vector.load %arg11[%c1_105, %c0_106, %c18_107] : memref<6x16x290xbf16, #tpu.memory_space<vmem>>, vector<1x16x256xbf16>
    %194 = vector.shape_cast %193 : vector<1x16x256xbf16> to vector<16x256xbf16>
    %195 = vector.extract_strided_slice %121 {offsets = [1, 0], sizes = [1, 256], strides = [1, 1]} : vector<2x256xbf16> to vector<1x256xbf16>
    %196 = vector.broadcast %195 : vector<1x256xbf16> to vector<16x256xbf16>
    %197 = arith.mulf %194, %196 : vector<16x256xbf16>
    %c224 = arith.constant 224 : index
    %c0_108 = arith.constant 0 : index
    %198 = vector.load %arg12[%c224, %c0_108] : memref<512x256xbf16, #tpu.memory_space<vmem>>, vector<16x256xbf16>
    tpu.vector_store %arg12[%c224, %c0_108], %197 {strides = array<i32>} : memref<512x256xbf16, #tpu.memory_space<vmem>>, vector<16x256xbf16>,
    %c1_109 = arith.constant 1 : index
    %c0_110 = arith.constant 0 : index
    %c32_111 = arith.constant 32 : index
    %199 = vector.load %arg11[%c1_109, %c0_110, %c32_111] : memref<6x16x290xbf16, #tpu.memory_space<vmem>>, vector<1x16x256xbf16>
    %200 = vector.shape_cast %199 : vector<1x16x256xbf16> to vector<16x256xbf16>
    %201 = vector.extract_strided_slice %121 {offsets = [0, 0], sizes = [1, 256], strides = [1, 1]} : vector<2x256xbf16> to vector<1x256xbf16>
    %202 = vector.broadcast %201 : vector<1x256xbf16> to vector<16x256xbf16>
    %203 = arith.mulf %200, %202 : vector<16x256xbf16>
    %c240 = arith.constant 240 : index
    %c0_112 = arith.constant 0 : index
    %204 = vector.load %arg12[%c240, %c0_112] : memref<512x256xbf16, #tpu.memory_space<vmem>>, vector<16x256xbf16>
    tpu.vector_store %arg12[%c240, %c0_112], %203 {strides = array<i32>} : memref<512x256xbf16, #tpu.memory_space<vmem>>, vector<16x256xbf16>,
    %c1_113 = arith.constant 1 : index
    %c0_114 = arith.constant 0 : index
    %c33_115 = arith.constant 33 : index
    %205 = vector.load %arg11[%c1_113, %c0_114, %c33_115] : memref<6x16x290xbf16, #tpu.memory_space<vmem>>, vector<1x16x256xbf16>
    %206 = vector.shape_cast %205 : vector<1x16x256xbf16> to vector<16x256xbf16>
    %c256 = arith.constant 256 : index
    %c0_116 = arith.constant 0 : index
    %207 = vector.load %arg12[%c256, %c0_116] : memref<512x256xbf16, #tpu.memory_space<vmem>>, vector<16x256xbf16>
    tpu.vector_store %arg12[%c256, %c0_116], %206 {strides = array<i32>} : memref<512x256xbf16, #tpu.memory_space<vmem>>, vector<16x256xbf16>,
    %c1_117 = arith.constant 1 : index
    %c0_118 = arith.constant 0 : index
    %c34_119 = arith.constant 34 : index
    %208 = vector.load %arg11[%c1_117, %c0_118, %c34_119] : memref<6x16x290xbf16, #tpu.memory_space<vmem>>, vector<1x16x256xbf16>
    %209 = vector.shape_cast %208 : vector<1x16x256xbf16> to vector<16x256xbf16>
    %210 = vector.extract_strided_slice %121 {offsets = [1, 0], sizes = [1, 256], strides = [1, 1]} : vector<2x256xbf16> to vector<1x256xbf16>
    %211 = vector.broadcast %210 : vector<1x256xbf16> to vector<16x256xbf16>
    %212 = arith.mulf %209, %211 : vector<16x256xbf16>
    %c272 = arith.constant 272 : index
    %c0_120 = arith.constant 0 : index
    %213 = vector.load %arg12[%c272, %c0_120] : memref<512x256xbf16, #tpu.memory_space<vmem>>, vector<16x256xbf16>
    tpu.vector_store %arg12[%c272, %c0_120], %212 {strides = array<i32>} : memref<512x256xbf16, #tpu.memory_space<vmem>>, vector<16x256xbf16>,
    %c2_121 = arith.constant 2 : index
    %c0_122 = arith.constant 0 : index
    %c0_123 = arith.constant 0 : index
    %214 = vector.load %arg11[%c2_121, %c0_122, %c0_123] : memref<6x16x290xbf16, #tpu.memory_space<vmem>>, vector<1x16x256xbf16>
    %215 = vector.shape_cast %214 : vector<1x16x256xbf16> to vector<16x256xbf16>
    %216 = vector.extract_strided_slice %121 {offsets = [0, 0], sizes = [1, 256], strides = [1, 1]} : vector<2x256xbf16> to vector<1x256xbf16>
    %217 = vector.broadcast %216 : vector<1x256xbf16> to vector<16x256xbf16>
    %218 = arith.mulf %215, %217 : vector<16x256xbf16>
    %c288 = arith.constant 288 : index
    %c0_124 = arith.constant 0 : index
    %219 = vector.load %arg12[%c288, %c0_124] : memref<512x256xbf16, #tpu.memory_space<vmem>>, vector<16x256xbf16>
    tpu.vector_store %arg12[%c288, %c0_124], %218 {strides = array<i32>} : memref<512x256xbf16, #tpu.memory_space<vmem>>, vector<16x256xbf16>,
    %c2_125 = arith.constant 2 : index
    %c0_126 = arith.constant 0 : index
    %c1_127 = arith.constant 1 : index
    %220 = vector.load %arg11[%c2_125, %c0_126, %c1_127] : memref<6x16x290xbf16, #tpu.memory_space<vmem>>, vector<1x16x256xbf16>
    %221 = vector.shape_cast %220 : vector<1x16x256xbf16> to vector<16x256xbf16>
    %c304 = arith.constant 304 : index
    %c0_128 = arith.constant 0 : index
    %222 = vector.load %arg12[%c304, %c0_128] : memref<512x256xbf16, #tpu.memory_space<vmem>>, vector<16x256xbf16>
    tpu.vector_store %arg12[%c304, %c0_128], %221 {strides = array<i32>} : memref<512x256xbf16, #tpu.memory_space<vmem>>, vector<16x256xbf16>,
    %c2_129 = arith.constant 2 : index
    %c0_130 = arith.constant 0 : index
    %c2_131 = arith.constant 2 : index
    %223 = vector.load %arg11[%c2_129, %c0_130, %c2_131] : memref<6x16x290xbf16, #tpu.memory_space<vmem>>, vector<1x16x256xbf16>
    %224 = vector.shape_cast %223 : vector<1x16x256xbf16> to vector<16x256xbf16>
    %225 = vector.extract_strided_slice %121 {offsets = [1, 0], sizes = [1, 256], strides = [1, 1]} : vector<2x256xbf16> to vector<1x256xbf16>
    %226 = vector.broadcast %225 : vector<1x256xbf16> to vector<16x256xbf16>
    %227 = arith.mulf %224, %226 : vector<16x256xbf16>
    %c320 = arith.constant 320 : index
    %c0_132 = arith.constant 0 : index
    %228 = vector.load %arg12[%c320, %c0_132] : memref<512x256xbf16, #tpu.memory_space<vmem>>, vector<16x256xbf16>
    tpu.vector_store %arg12[%c320, %c0_132], %227 {strides = array<i32>} : memref<512x256xbf16, #tpu.memory_space<vmem>>, vector<16x256xbf16>,
    %c2_133 = arith.constant 2 : index
    %c0_134 = arith.constant 0 : index
    %c16_135 = arith.constant 16 : index
    %229 = vector.load %arg11[%c2_133, %c0_134, %c16_135] : memref<6x16x290xbf16, #tpu.memory_space<vmem>>, vector<1x16x256xbf16>
    %230 = vector.shape_cast %229 : vector<1x16x256xbf16> to vector<16x256xbf16>
    %231 = vector.extract_strided_slice %121 {offsets = [0, 0], sizes = [1, 256], strides = [1, 1]} : vector<2x256xbf16> to vector<1x256xbf16>
    %232 = vector.broadcast %231 : vector<1x256xbf16> to vector<16x256xbf16>
    %233 = arith.mulf %230, %232 : vector<16x256xbf16>
    %c336 = arith.constant 336 : index
    %c0_136 = arith.constant 0 : index
    %234 = vector.load %arg12[%c336, %c0_136] : memref<512x256xbf16, #tpu.memory_space<vmem>>, vector<16x256xbf16>
    tpu.vector_store %arg12[%c336, %c0_136], %233 {strides = array<i32>} : memref<512x256xbf16, #tpu.memory_space<vmem>>, vector<16x256xbf16>,
    %c2_137 = arith.constant 2 : index
    %c0_138 = arith.constant 0 : index
    %c17_139 = arith.constant 17 : index
    %235 = vector.load %arg11[%c2_137, %c0_138, %c17_139] : memref<6x16x290xbf16, #tpu.memory_space<vmem>>, vector<1x16x256xbf16>
    %236 = vector.shape_cast %235 : vector<1x16x256xbf16> to vector<16x256xbf16>
    %c352 = arith.constant 352 : index
    %c0_140 = arith.constant 0 : index
    %237 = vector.load %arg12[%c352, %c0_140] : memref<512x256xbf16, #tpu.memory_space<vmem>>, vector<16x256xbf16>
    tpu.vector_store %arg12[%c352, %c0_140], %236 {strides = array<i32>} : memref<512x256xbf16, #tpu.memory_space<vmem>>, vector<16x256xbf16>,
    %c2_141 = arith.constant 2 : index
    %c0_142 = arith.constant 0 : index
    %c18_143 = arith.constant 18 : index
    %238 = vector.load %arg11[%c2_141, %c0_142, %c18_143] : memref<6x16x290xbf16, #tpu.memory_space<vmem>>, vector<1x16x256xbf16>
    %239 = vector.shape_cast %238 : vector<1x16x256xbf16> to vector<16x256xbf16>
    %240 = vector.extract_strided_slice %121 {offsets = [1, 0], sizes = [1, 256], strides = [1, 1]} : vector<2x256xbf16> to vector<1x256xbf16>
    %241 = vector.broadcast %240 : vector<1x256xbf16> to vector<16x256xbf16>
    %242 = arith.mulf %239, %241 : vector<16x256xbf16>
    %c368 = arith.constant 368 : index
    %c0_144 = arith.constant 0 : index
    %243 = vector.load %arg12[%c368, %c0_144] : memref<512x256xbf16, #tpu.memory_space<vmem>>, vector<16x256xbf16>
    tpu.vector_store %arg12[%c368, %c0_144], %242 {strides = array<i32>} : memref<512x256xbf16, #tpu.memory_space<vmem>>, vector<16x256xbf16>,
    %c2_145 = arith.constant 2 : index
    %c0_146 = arith.constant 0 : index
    %c32_147 = arith.constant 32 : index
    %244 = vector.load %arg11[%c2_145, %c0_146, %c32_147] : memref<6x16x290xbf16, #tpu.memory_space<vmem>>, vector<1x16x256xbf16>
    %245 = vector.shape_cast %244 : vector<1x16x256xbf16> to vector<16x256xbf16>
    %246 = vector.extract_strided_slice %121 {offsets = [0, 0], sizes = [1, 256], strides = [1, 1]} : vector<2x256xbf16> to vector<1x256xbf16>
    %247 = vector.broadcast %246 : vector<1x256xbf16> to vector<16x256xbf16>
    %248 = arith.mulf %245, %247 : vector<16x256xbf16>
    %c384 = arith.constant 384 : index
    %c0_148 = arith.constant 0 : index
    %249 = vector.load %arg12[%c384, %c0_148] : memref<512x256xbf16, #tpu.memory_space<vmem>>, vector<16x256xbf16>
    tpu.vector_store %arg12[%c384, %c0_148], %248 {strides = array<i32>} : memref<512x256xbf16, #tpu.memory_space<vmem>>, vector<16x256xbf16>,
    %c2_149 = arith.constant 2 : index
    %c0_150 = arith.constant 0 : index
    %c33_151 = arith.constant 33 : index
    %250 = vector.load %arg11[%c2_149, %c0_150, %c33_151] : memref<6x16x290xbf16, #tpu.memory_space<vmem>>, vector<1x16x256xbf16>
    %251 = vector.shape_cast %250 : vector<1x16x256xbf16> to vector<16x256xbf16>
    %c400 = arith.constant 400 : index
    %c0_152 = arith.constant 0 : index
    %252 = vector.load %arg12[%c400, %c0_152] : memref<512x256xbf16, #tpu.memory_space<vmem>>, vector<16x256xbf16>
    tpu.vector_store %arg12[%c400, %c0_152], %251 {strides = array<i32>} : memref<512x256xbf16, #tpu.memory_space<vmem>>, vector<16x256xbf16>,
    %c2_153 = arith.constant 2 : index
    %c0_154 = arith.constant 0 : index
    %c34_155 = arith.constant 34 : index
    %253 = vector.load %arg11[%c2_153, %c0_154, %c34_155] : memref<6x16x290xbf16, #tpu.memory_space<vmem>>, vector<1x16x256xbf16>
    %254 = vector.shape_cast %253 : vector<1x16x256xbf16> to vector<16x256xbf16>
    %255 = vector.extract_strided_slice %121 {offsets = [1, 0], sizes = [1, 256], strides = [1, 1]} : vector<2x256xbf16> to vector<1x256xbf16>
    %256 = vector.broadcast %255 : vector<1x256xbf16> to vector<16x256xbf16>
    %257 = arith.mulf %254, %256 : vector<16x256xbf16>
    %c416 = arith.constant 416 : index
    %c0_156 = arith.constant 0 : index
    %258 = vector.load %arg12[%c416, %c0_156] : memref<512x256xbf16, #tpu.memory_space<vmem>>, vector<16x256xbf16>
    tpu.vector_store %arg12[%c416, %c0_156], %257 {strides = array<i32>} : memref<512x256xbf16, #tpu.memory_space<vmem>>, vector<16x256xbf16>,
    %c0_157 = arith.constant 0 : index
    %c0_158 = arith.constant 0 : index
    %259 = vector.load %arg5[%c0_157, %c0_158] : memref<16x512xbf16, #tpu.memory_space<vmem>>, vector<16x512xbf16>
    %c0_159 = arith.constant 0 : index
    %c0_160 = arith.constant 0 : index
    %260 = vector.load %arg12[%c0_159, %c0_160] : memref<512x256xbf16, #tpu.memory_space<vmem>>, vector<512x256xbf16>
    %cst_161 = arith.constant dense<0.000000e+00> : vector<16x256xf32>
    %261 = tpu.matmul %259, %260, %cst_161 {dimension_numbers = #tpu.dot_dimension_numbers<[1], [0], [0], [1], [0, 0, 1, 1], [], []>} : vector<16x512xbf16>, vector<512x256xbf16>, vector<16x256xf32> -> vector<16x256xf32>
    %c0_162 = arith.constant 0 : index
    %c0_163 = arith.constant 0 : index
    %c0_164 = arith.constant 0 : index
    %262 = vector.load %arg8[%c0_162, %c0_163, %c0_164] : memref<4x16x256xf32, #tpu.memory_space<vmem>>, vector<1x16x256xf32>
    %263 = vector.shape_cast %262 : vector<1x16x256xf32> to vector<16x256xf32>
    %264 = arith.addf %261, %263 : vector<16x256xf32>
    %c0_165 = arith.constant 0 : index
    %c0_166 = arith.constant 0 : index
    %c0_167 = arith.constant 0 : index
    %265 = vector.load %arg9[%c0_165, %c0_166, %c0_167] : memref<4x16x256xf32, #tpu.memory_space<vmem>>, vector<1x16x256xf32>
    %266 = vector.shape_cast %265 : vector<1x16x256xf32> to vector<16x256xf32>
    %267 = vector.shape_cast %264 : vector<16x256xf32> to vector<1x16x256xf32>
    tpu.vector_store %arg9[%c0_165, %c0_166, %c0_167], %267 {strides = array<i32>} : memref<4x16x256xf32, #tpu.memory_space<vmem>>, vector<1x16x256xf32>,
    %cst_168 = arith.constant dense<0.000000e+00> : vector<16xf32>
    %268 = vector.multi_reduction <add>, %264, %cst_168 [1] : vector<16x256xf32> to vector<16xf32>
    %269 = vector.shape_cast %268 : vector<16xf32> to vector<16x1xf32>
    %270 = arith.addf %122, %269 : vector<16x1xf32>
    %271 = arith.mulf %264, %264 : vector<16x256xf32>
    %cst_169 = arith.constant dense<0.000000e+00> : vector<16xf32>
    %272 = vector.multi_reduction <add>, %271, %cst_169 [1] : vector<16x256xf32> to vector<16xf32>
    %273 = vector.shape_cast %272 : vector<16xf32> to vector<16x1xf32>
    %274 = arith.addf %123, %273 : vector<16x1xf32>
    %c1_170 = arith.constant 1 : index
    %c0_171 = arith.constant 0 : index
    %c0_172 = arith.constant 0 : index
    %275 = vector.load %arg11[%c1_170, %c0_171, %c0_172] : memref<6x16x290xbf16, #tpu.memory_space<vmem>>, vector<1x16x256xbf16>
    %276 = vector.shape_cast %275 : vector<1x16x256xbf16> to vector<16x256xbf16>
    %277 = vector.extract_strided_slice %121 {offsets = [0, 0], sizes = [1, 256], strides = [1, 1]} : vector<2x256xbf16> to vector<1x256xbf16>
    %278 = vector.broadcast %277 : vector<1x256xbf16> to vector<16x256xbf16>
    %279 = arith.mulf %276, %278 : vector<16x256xbf16>
    %c0_173 = arith.constant 0 : index
    %c0_174 = arith.constant 0 : index
    %280 = vector.load %arg12[%c0_173, %c0_174] : memref<512x256xbf16, #tpu.memory_space<vmem>>, vector<16x256xbf16>
    tpu.vector_store %arg12[%c0_173, %c0_174], %279 {strides = array<i32>} : memref<512x256xbf16, #tpu.memory_space<vmem>>, vector<16x256xbf16>,
    %c1_175 = arith.constant 1 : index
    %c0_176 = arith.constant 0 : index
    %c1_177 = arith.constant 1 : index
    %281 = vector.load %arg11[%c1_175, %c0_176, %c1_177] : memref<6x16x290xbf16, #tpu.memory_space<vmem>>, vector<1x16x256xbf16>
    %282 = vector.shape_cast %281 : vector<1x16x256xbf16> to vector<16x256xbf16>
    %c16_178 = arith.constant 16 : index
    %c0_179 = arith.constant 0 : index
    %283 = vector.load %arg12[%c16_178, %c0_179] : memref<512x256xbf16, #tpu.memory_space<vmem>>, vector<16x256xbf16>
    tpu.vector_store %arg12[%c16_178, %c0_179], %282 {strides = array<i32>} : memref<512x256xbf16, #tpu.memory_space<vmem>>, vector<16x256xbf16>,
    %c1_180 = arith.constant 1 : index
    %c0_181 = arith.constant 0 : index
    %c2_182 = arith.constant 2 : index
    %284 = vector.load %arg11[%c1_180, %c0_181, %c2_182] : memref<6x16x290xbf16, #tpu.memory_space<vmem>>, vector<1x16x256xbf16>
    %285 = vector.shape_cast %284 : vector<1x16x256xbf16> to vector<16x256xbf16>
    %286 = vector.extract_strided_slice %121 {offsets = [1, 0], sizes = [1, 256], strides = [1, 1]} : vector<2x256xbf16> to vector<1x256xbf16>
    %287 = vector.broadcast %286 : vector<1x256xbf16> to vector<16x256xbf16>
    %288 = arith.mulf %285, %287 : vector<16x256xbf16>
    %c32_183 = arith.constant 32 : index
    %c0_184 = arith.constant 0 : index
    %289 = vector.load %arg12[%c32_183, %c0_184] : memref<512x256xbf16, #tpu.memory_space<vmem>>, vector<16x256xbf16>
    tpu.vector_store %arg12[%c32_183, %c0_184], %288 {strides = array<i32>} : memref<512x256xbf16, #tpu.memory_space<vmem>>, vector<16x256xbf16>,
    %c1_185 = arith.constant 1 : index
    %c0_186 = arith.constant 0 : index
    %c16_187 = arith.constant 16 : index
    %290 = vector.load %arg11[%c1_185, %c0_186, %c16_187] : memref<6x16x290xbf16, #tpu.memory_space<vmem>>, vector<1x16x256xbf16>
    %291 = vector.shape_cast %290 : vector<1x16x256xbf16> to vector<16x256xbf16>
    %292 = vector.extract_strided_slice %121 {offsets = [0, 0], sizes = [1, 256], strides = [1, 1]} : vector<2x256xbf16> to vector<1x256xbf16>
    %293 = vector.broadcast %292 : vector<1x256xbf16> to vector<16x256xbf16>
    %294 = arith.mulf %291, %293 : vector<16x256xbf16>
    %c48_188 = arith.constant 48 : index
    %c0_189 = arith.constant 0 : index
    %295 = vector.load %arg12[%c48_188, %c0_189] : memref<512x256xbf16, #tpu.memory_space<vmem>>, vector<16x256xbf16>
    tpu.vector_store %arg12[%c48_188, %c0_189], %294 {strides = array<i32>} : memref<512x256xbf16, #tpu.memory_space<vmem>>, vector<16x256xbf16>,
    %c1_190 = arith.constant 1 : index
    %c0_191 = arith.constant 0 : index
    %c17_192 = arith.constant 17 : index
    %296 = vector.load %arg11[%c1_190, %c0_191, %c17_192] : memref<6x16x290xbf16, #tpu.memory_space<vmem>>, vector<1x16x256xbf16>
    %297 = vector.shape_cast %296 : vector<1x16x256xbf16> to vector<16x256xbf16>
    %c64_193 = arith.constant 64 : index
    %c0_194 = arith.constant 0 : index
    %298 = vector.load %arg12[%c64_193, %c0_194] : memref<512x256xbf16, #tpu.memory_space<vmem>>, vector<16x256xbf16>
    tpu.vector_store %arg12[%c64_193, %c0_194], %297 {strides = array<i32>} : memref<512x256xbf16, #tpu.memory_space<vmem>>, vector<16x256xbf16>,
    %c1_195 = arith.constant 1 : index
    %c0_196 = arith.constant 0 : index
    %c18_197 = arith.constant 18 : index
    %299 = vector.load %arg11[%c1_195, %c0_196, %c18_197] : memref<6x16x290xbf16, #tpu.memory_space<vmem>>, vector<1x16x256xbf16>
    %300 = vector.shape_cast %299 : vector<1x16x256xbf16> to vector<16x256xbf16>
    %301 = vector.extract_strided_slice %121 {offsets = [1, 0], sizes = [1, 256], strides = [1, 1]} : vector<2x256xbf16> to vector<1x256xbf16>
    %302 = vector.broadcast %301 : vector<1x256xbf16> to vector<16x256xbf16>
    %303 = arith.mulf %300, %302 : vector<16x256xbf16>
    %c80_198 = arith.constant 80 : index
    %c0_199 = arith.constant 0 : index
    %304 = vector.load %arg12[%c80_198, %c0_199] : memref<512x256xbf16, #tpu.memory_space<vmem>>, vector<16x256xbf16>
    tpu.vector_store %arg12[%c80_198, %c0_199], %303 {strides = array<i32>} : memref<512x256xbf16, #tpu.memory_space<vmem>>, vector<16x256xbf16>,
    %c1_200 = arith.constant 1 : index
    %c0_201 = arith.constant 0 : index
    %c32_202 = arith.constant 32 : index
    %305 = vector.load %arg11[%c1_200, %c0_201, %c32_202] : memref<6x16x290xbf16, #tpu.memory_space<vmem>>, vector<1x16x256xbf16>
    %306 = vector.shape_cast %305 : vector<1x16x256xbf16> to vector<16x256xbf16>
    %307 = vector.extract_strided_slice %121 {offsets = [0, 0], sizes = [1, 256], strides = [1, 1]} : vector<2x256xbf16> to vector<1x256xbf16>
    %308 = vector.broadcast %307 : vector<1x256xbf16> to vector<16x256xbf16>
    %309 = arith.mulf %306, %308 : vector<16x256xbf16>
    %c96_203 = arith.constant 96 : index
    %c0_204 = arith.constant 0 : index
    %310 = vector.load %arg12[%c96_203, %c0_204] : memref<512x256xbf16, #tpu.memory_space<vmem>>, vector<16x256xbf16>
    tpu.vector_store %arg12[%c96_203, %c0_204], %309 {strides = array<i32>} : memref<512x256xbf16, #tpu.memory_space<vmem>>, vector<16x256xbf16>,
    %c1_205 = arith.constant 1 : index
    %c0_206 = arith.constant 0 : index
    %c33_207 = arith.constant 33 : index
    %311 = vector.load %arg11[%c1_205, %c0_206, %c33_207] : memref<6x16x290xbf16, #tpu.memory_space<vmem>>, vector<1x16x256xbf16>
    %312 = vector.shape_cast %311 : vector<1x16x256xbf16> to vector<16x256xbf16>
    %c112_208 = arith.constant 112 : index
    %c0_209 = arith.constant 0 : index
    %313 = vector.load %arg12[%c112_208, %c0_209] : memref<512x256xbf16, #tpu.memory_space<vmem>>, vector<16x256xbf16>
    tpu.vector_store %arg12[%c112_208, %c0_209], %312 {strides = array<i32>} : memref<512x256xbf16, #tpu.memory_space<vmem>>, vector<16x256xbf16>,
    %c1_210 = arith.constant 1 : index
    %c0_211 = arith.constant 0 : index
    %c34_212 = arith.constant 34 : index
    %314 = vector.load %arg11[%c1_210, %c0_211, %c34_212] : memref<6x16x290xbf16, #tpu.memory_space<vmem>>, vector<1x16x256xbf16>
    %315 = vector.shape_cast %314 : vector<1x16x256xbf16> to vector<16x256xbf16>
    %316 = vector.extract_strided_slice %121 {offsets = [1, 0], sizes = [1, 256], strides = [1, 1]} : vector<2x256xbf16> to vector<1x256xbf16>
    %317 = vector.broadcast %316 : vector<1x256xbf16> to vector<16x256xbf16>
    %318 = arith.mulf %315, %317 : vector<16x256xbf16>
    %c128_213 = arith.constant 128 : index
    %c0_214 = arith.constant 0 : index
    %319 = vector.load %arg12[%c128_213, %c0_214] : memref<512x256xbf16, #tpu.memory_space<vmem>>, vector<16x256xbf16>
    tpu.vector_store %arg12[%c128_213, %c0_214], %318 {strides = array<i32>} : memref<512x256xbf16, #tpu.memory_space<vmem>>, vector<16x256xbf16>,
    %c2_215 = arith.constant 2 : index
    %c0_216 = arith.constant 0 : index
    %c0_217 = arith.constant 0 : index
    %320 = vector.load %arg11[%c2_215, %c0_216, %c0_217] : memref<6x16x290xbf16, #tpu.memory_space<vmem>>, vector<1x16x256xbf16>
    %321 = vector.shape_cast %320 : vector<1x16x256xbf16> to vector<16x256xbf16>
    %322 = vector.extract_strided_slice %121 {offsets = [0, 0], sizes = [1, 256], strides = [1, 1]} : vector<2x256xbf16> to vector<1x256xbf16>
    %323 = vector.broadcast %322 : vector<1x256xbf16> to vector<16x256xbf16>
    %324 = arith.mulf %321, %323 : vector<16x256xbf16>
    %c144_218 = arith.constant 144 : index
    %c0_219 = arith.constant 0 : index
    %325 = vector.load %arg12[%c144_218, %c0_219] : memref<512x256xbf16, #tpu.memory_space<vmem>>, vector<16x256xbf16>
    tpu.vector_store %arg12[%c144_218, %c0_219], %324 {strides = array<i32>} : memref<512x256xbf16, #tpu.memory_space<vmem>>, vector<16x256xbf16>,
    %c2_220 = arith.constant 2 : index
    %c0_221 = arith.constant 0 : index
    %c1_222 = arith.constant 1 : index
    %326 = vector.load %arg11[%c2_220, %c0_221, %c1_222] : memref<6x16x290xbf16, #tpu.memory_space<vmem>>, vector<1x16x256xbf16>
    %327 = vector.shape_cast %326 : vector<1x16x256xbf16> to vector<16x256xbf16>
    %c160_223 = arith.constant 160 : index
    %c0_224 = arith.constant 0 : index
    %328 = vector.load %arg12[%c160_223, %c0_224] : memref<512x256xbf16, #tpu.memory_space<vmem>>, vector<16x256xbf16>
    tpu.vector_store %arg12[%c160_223, %c0_224], %327 {strides = array<i32>} : memref<512x256xbf16, #tpu.memory_space<vmem>>, vector<16x256xbf16>,
    %c2_225 = arith.constant 2 : index
    %c0_226 = arith.constant 0 : index
    %c2_227 = arith.constant 2 : index
    %329 = vector.load %arg11[%c2_225, %c0_226, %c2_227] : memref<6x16x290xbf16, #tpu.memory_space<vmem>>, vector<1x16x256xbf16>
    %330 = vector.shape_cast %329 : vector<1x16x256xbf16> to vector<16x256xbf16>
    %331 = vector.extract_strided_slice %121 {offsets = [1, 0], sizes = [1, 256], strides = [1, 1]} : vector<2x256xbf16> to vector<1x256xbf16>
    %332 = vector.broadcast %331 : vector<1x256xbf16> to vector<16x256xbf16>
    %333 = arith.mulf %330, %332 : vector<16x256xbf16>
    %c176_228 = arith.constant 176 : index
    %c0_229 = arith.constant 0 : index
    %334 = vector.load %arg12[%c176_228, %c0_229] : memref<512x256xbf16, #tpu.memory_space<vmem>>, vector<16x256xbf16>
    tpu.vector_store %arg12[%c176_228, %c0_229], %333 {strides = array<i32>} : memref<512x256xbf16, #tpu.memory_space<vmem>>, vector<16x256xbf16>,
    %c2_230 = arith.constant 2 : index
    %c0_231 = arith.constant 0 : index
    %c16_232 = arith.constant 16 : index
    %335 = vector.load %arg11[%c2_230, %c0_231, %c16_232] : memref<6x16x290xbf16, #tpu.memory_space<vmem>>, vector<1x16x256xbf16>
    %336 = vector.shape_cast %335 : vector<1x16x256xbf16> to vector<16x256xbf16>
    %337 = vector.extract_strided_slice %121 {offsets = [0, 0], sizes = [1, 256], strides = [1, 1]} : vector<2x256xbf16> to vector<1x256xbf16>
    %338 = vector.broadcast %337 : vector<1x256xbf16> to vector<16x256xbf16>
    %339 = arith.mulf %336, %338 : vector<16x256xbf16>
    %c192_233 = arith.constant 192 : index
    %c0_234 = arith.constant 0 : index
    %340 = vector.load %arg12[%c192_233, %c0_234] : memref<512x256xbf16, #tpu.memory_space<vmem>>, vector<16x256xbf16>
    tpu.vector_store %arg12[%c192_233, %c0_234], %339 {strides = array<i32>} : memref<512x256xbf16, #tpu.memory_space<vmem>>, vector<16x256xbf16>,
    %c2_235 = arith.constant 2 : index
    %c0_236 = arith.constant 0 : index
    %c17_237 = arith.constant 17 : index
    %341 = vector.load %arg11[%c2_235, %c0_236, %c17_237] : memref<6x16x290xbf16, #tpu.memory_space<vmem>>, vector<1x16x256xbf16>
    %342 = vector.shape_cast %341 : vector<1x16x256xbf16> to vector<16x256xbf16>
    %c208_238 = arith.constant 208 : index
    %c0_239 = arith.constant 0 : index
    %343 = vector.load %arg12[%c208_238, %c0_239] : memref<512x256xbf16, #tpu.memory_space<vmem>>, vector<16x256xbf16>
    tpu.vector_store %arg12[%c208_238, %c0_239], %342 {strides = array<i32>} : memref<512x256xbf16, #tpu.memory_space<vmem>>, vector<16x256xbf16>,
    %c2_240 = arith.constant 2 : index
    %c0_241 = arith.constant 0 : index
    %c18_242 = arith.constant 18 : index
    %344 = vector.load %arg11[%c2_240, %c0_241, %c18_242] : memref<6x16x290xbf16, #tpu.memory_space<vmem>>, vector<1x16x256xbf16>
    %345 = vector.shape_cast %344 : vector<1x16x256xbf16> to vector<16x256xbf16>
    %346 = vector.extract_strided_slice %121 {offsets = [1, 0], sizes = [1, 256], strides = [1, 1]} : vector<2x256xbf16> to vector<1x256xbf16>
    %347 = vector.broadcast %346 : vector<1x256xbf16> to vector<16x256xbf16>
    %348 = arith.mulf %345, %347 : vector<16x256xbf16>
    %c224_243 = arith.constant 224 : index
    %c0_244 = arith.constant 0 : index
    %349 = vector.load %arg12[%c224_243, %c0_244] : memref<512x256xbf16, #tpu.memory_space<vmem>>, vector<16x256xbf16>
    tpu.vector_store %arg12[%c224_243, %c0_244], %348 {strides = array<i32>} : memref<512x256xbf16, #tpu.memory_space<vmem>>, vector<16x256xbf16>,
    %c2_245 = arith.constant 2 : index
    %c0_246 = arith.constant 0 : index
    %c32_247 = arith.constant 32 : index
    %350 = vector.load %arg11[%c2_245, %c0_246, %c32_247] : memref<6x16x290xbf16, #tpu.memory_space<vmem>>, vector<1x16x256xbf16>
    %351 = vector.shape_cast %350 : vector<1x16x256xbf16> to vector<16x256xbf16>
    %352 = vector.extract_strided_slice %121 {offsets = [0, 0], sizes = [1, 256], strides = [1, 1]} : vector<2x256xbf16> to vector<1x256xbf16>
    %353 = vector.broadcast %352 : vector<1x256xbf16> to vector<16x256xbf16>
    %354 = arith.mulf %351, %353 : vector<16x256xbf16>
    %c240_248 = arith.constant 240 : index
    %c0_249 = arith.constant 0 : index
    %355 = vector.load %arg12[%c240_248, %c0_249] : memref<512x256xbf16, #tpu.memory_space<vmem>>, vector<16x256xbf16>
    tpu.vector_store %arg12[%c240_248, %c0_249], %354 {strides = array<i32>} : memref<512x256xbf16, #tpu.memory_space<vmem>>, vector<16x256xbf16>,
    %c2_250 = arith.constant 2 : index
    %c0_251 = arith.constant 0 : index
    %c33_252 = arith.constant 33 : index
    %356 = vector.load %arg11[%c2_250, %c0_251, %c33_252] : memref<6x16x290xbf16, #tpu.memory_space<vmem>>, vector<1x16x256xbf16>
    %357 = vector.shape_cast %356 : vector<1x16x256xbf16> to vector<16x256xbf16>
    %c256_253 = arith.constant 256 : index
    %c0_254 = arith.constant 0 : index
    %358 = vector.load %arg12[%c256_253, %c0_254] : memref<512x256xbf16, #tpu.memory_space<vmem>>, vector<16x256xbf16>
    tpu.vector_store %arg12[%c256_253, %c0_254], %357 {strides = array<i32>} : memref<512x256xbf16, #tpu.memory_space<vmem>>, vector<16x256xbf16>,
    %c2_255 = arith.constant 2 : index
    %c0_256 = arith.constant 0 : index
    %c34_257 = arith.constant 34 : index
    %359 = vector.load %arg11[%c2_255, %c0_256, %c34_257] : memref<6x16x290xbf16, #tpu.memory_space<vmem>>, vector<1x16x256xbf16>
    %360 = vector.shape_cast %359 : vector<1x16x256xbf16> to vector<16x256xbf16>
    %361 = vector.extract_strided_slice %121 {offsets = [1, 0], sizes = [1, 256], strides = [1, 1]} : vector<2x256xbf16> to vector<1x256xbf16>
    %362 = vector.broadcast %361 : vector<1x256xbf16> to vector<16x256xbf16>
    %363 = arith.mulf %360, %362 : vector<16x256xbf16>
    %c272_258 = arith.constant 272 : index
    %c0_259 = arith.constant 0 : index
    %364 = vector.load %arg12[%c272_258, %c0_259] : memref<512x256xbf16, #tpu.memory_space<vmem>>, vector<16x256xbf16>
    tpu.vector_store %arg12[%c272_258, %c0_259], %363 {strides = array<i32>} : memref<512x256xbf16, #tpu.memory_space<vmem>>, vector<16x256xbf16>,
    %c3_260 = arith.constant 3 : index
    %c0_261 = arith.constant 0 : index
    %c0_262 = arith.constant 0 : index
    %365 = vector.load %arg11[%c3_260, %c0_261, %c0_262] : memref<6x16x290xbf16, #tpu.memory_space<vmem>>, vector<1x16x256xbf16>
    %366 = vector.shape_cast %365 : vector<1x16x256xbf16> to vector<16x256xbf16>
    %367 = vector.extract_strided_slice %121 {offsets = [0, 0], sizes = [1, 256], strides = [1, 1]} : vector<2x256xbf16> to vector<1x256xbf16>
    %368 = vector.broadcast %367 : vector<1x256xbf16> to vector<16x256xbf16>
    %369 = arith.mulf %366, %368 : vector<16x256xbf16>
    %c288_263 = arith.constant 288 : index
    %c0_264 = arith.constant 0 : index
    %370 = vector.load %arg12[%c288_263, %c0_264] : memref<512x256xbf16, #tpu.memory_space<vmem>>, vector<16x256xbf16>
    tpu.vector_store %arg12[%c288_263, %c0_264], %369 {strides = array<i32>} : memref<512x256xbf16, #tpu.memory_space<vmem>>, vector<16x256xbf16>,
    %c3_265 = arith.constant 3 : index
    %c0_266 = arith.constant 0 : index
    %c1_267 = arith.constant 1 : index
    %371 = vector.load %arg11[%c3_265, %c0_266, %c1_267] : memref<6x16x290xbf16, #tpu.memory_space<vmem>>, vector<1x16x256xbf16>
    %372 = vector.shape_cast %371 : vector<1x16x256xbf16> to vector<16x256xbf16>
    %c304_268 = arith.constant 304 : index
    %c0_269 = arith.constant 0 : index
    %373 = vector.load %arg12[%c304_268, %c0_269] : memref<512x256xbf16, #tpu.memory_space<vmem>>, vector<16x256xbf16>
    tpu.vector_store %arg12[%c304_268, %c0_269], %372 {strides = array<i32>} : memref<512x256xbf16, #tpu.memory_space<vmem>>, vector<16x256xbf16>,
    %c3_270 = arith.constant 3 : index
    %c0_271 = arith.constant 0 : index
    %c2_272 = arith.constant 2 : index
    %374 = vector.load %arg11[%c3_270, %c0_271, %c2_272] : memref<6x16x290xbf16, #tpu.memory_space<vmem>>, vector<1x16x256xbf16>
    %375 = vector.shape_cast %374 : vector<1x16x256xbf16> to vector<16x256xbf16>
    %376 = vector.extract_strided_slice %121 {offsets = [1, 0], sizes = [1, 256], strides = [1, 1]} : vector<2x256xbf16> to vector<1x256xbf16>
    %377 = vector.broadcast %376 : vector<1x256xbf16> to vector<16x256xbf16>
    %378 = arith.mulf %375, %377 : vector<16x256xbf16>
    %c320_273 = arith.constant 320 : index
    %c0_274 = arith.constant 0 : index
    %379 = vector.load %arg12[%c320_273, %c0_274] : memref<512x256xbf16, #tpu.memory_space<vmem>>, vector<16x256xbf16>
    tpu.vector_store %arg12[%c320_273, %c0_274], %378 {strides = array<i32>} : memref<512x256xbf16, #tpu.memory_space<vmem>>, vector<16x256xbf16>,
    %c3_275 = arith.constant 3 : index
    %c0_276 = arith.constant 0 : index
    %c16_277 = arith.constant 16 : index
    %380 = vector.load %arg11[%c3_275, %c0_276, %c16_277] : memref<6x16x290xbf16, #tpu.memory_space<vmem>>, vector<1x16x256xbf16>
    %381 = vector.shape_cast %380 : vector<1x16x256xbf16> to vector<16x256xbf16>
    %382 = vector.extract_strided_slice %121 {offsets = [0, 0], sizes = [1, 256], strides = [1, 1]} : vector<2x256xbf16> to vector<1x256xbf16>
    %383 = vector.broadcast %382 : vector<1x256xbf16> to vector<16x256xbf16>
    %384 = arith.mulf %381, %383 : vector<16x256xbf16>
    %c336_278 = arith.constant 336 : index
    %c0_279 = arith.constant 0 : index
    %385 = vector.load %arg12[%c336_278, %c0_279] : memref<512x256xbf16, #tpu.memory_space<vmem>>, vector<16x256xbf16>
    tpu.vector_store %arg12[%c336_278, %c0_279], %384 {strides = array<i32>} : memref<512x256xbf16, #tpu.memory_space<vmem>>, vector<16x256xbf16>,
    %c3_280 = arith.constant 3 : index
    %c0_281 = arith.constant 0 : index
    %c17_282 = arith.constant 17 : index
    %386 = vector.load %arg11[%c3_280, %c0_281, %c17_282] : memref<6x16x290xbf16, #tpu.memory_space<vmem>>, vector<1x16x256xbf16>
    %387 = vector.shape_cast %386 : vector<1x16x256xbf16> to vector<16x256xbf16>
    %c352_283 = arith.constant 352 : index
    %c0_284 = arith.constant 0 : index
    %388 = vector.load %arg12[%c352_283, %c0_284] : memref<512x256xbf16, #tpu.memory_space<vmem>>, vector<16x256xbf16>
    tpu.vector_store %arg12[%c352_283, %c0_284], %387 {strides = array<i32>} : memref<512x256xbf16, #tpu.memory_space<vmem>>, vector<16x256xbf16>,
    %c3_285 = arith.constant 3 : index
    %c0_286 = arith.constant 0 : index
    %c18_287 = arith.constant 18 : index
    %389 = vector.load %arg11[%c3_285, %c0_286, %c18_287] : memref<6x16x290xbf16, #tpu.memory_space<vmem>>, vector<1x16x256xbf16>
    %390 = vector.shape_cast %389 : vector<1x16x256xbf16> to vector<16x256xbf16>
    %391 = vector.extract_strided_slice %121 {offsets = [1, 0], sizes = [1, 256], strides = [1, 1]} : vector<2x256xbf16> to vector<1x256xbf16>
    %392 = vector.broadcast %391 : vector<1x256xbf16> to vector<16x256xbf16>
    %393 = arith.mulf %390, %392 : vector<16x256xbf16>
    %c368_288 = arith.constant 368 : index
    %c0_289 = arith.constant 0 : index
    %394 = vector.load %arg12[%c368_288, %c0_289] : memref<512x256xbf16, #tpu.memory_space<vmem>>, vector<16x256xbf16>
    tpu.vector_store %arg12[%c368_288, %c0_289], %393 {strides = array<i32>} : memref<512x256xbf16, #tpu.memory_space<vmem>>, vector<16x256xbf16>,
    %c3_290 = arith.constant 3 : index
    %c0_291 = arith.constant 0 : index
    %c32_292 = arith.constant 32 : index
    %395 = vector.load %arg11[%c3_290, %c0_291, %c32_292] : memref<6x16x290xbf16, #tpu.memory_space<vmem>>, vector<1x16x256xbf16>
    %396 = vector.shape_cast %395 : vector<1x16x256xbf16> to vector<16x256xbf16>
    %397 = vector.extract_strided_slice %121 {offsets = [0, 0], sizes = [1, 256], strides = [1, 1]} : vector<2x256xbf16> to vector<1x256xbf16>
    %398 = vector.broadcast %397 : vector<1x256xbf16> to vector<16x256xbf16>
    %399 = arith.mulf %396, %398 : vector<16x256xbf16>
    %c384_293 = arith.constant 384 : index
    %c0_294 = arith.constant 0 : index
    %400 = vector.load %arg12[%c384_293, %c0_294] : memref<512x256xbf16, #tpu.memory_space<vmem>>, vector<16x256xbf16>
    tpu.vector_store %arg12[%c384_293, %c0_294], %399 {strides = array<i32>} : memref<512x256xbf16, #tpu.memory_space<vmem>>, vector<16x256xbf16>,
    %c3_295 = arith.constant 3 : index
    %c0_296 = arith.constant 0 : index
    %c33_297 = arith.constant 33 : index
    %401 = vector.load %arg11[%c3_295, %c0_296, %c33_297] : memref<6x16x290xbf16, #tpu.memory_space<vmem>>, vector<1x16x256xbf16>
    %402 = vector.shape_cast %401 : vector<1x16x256xbf16> to vector<16x256xbf16>
    %c400_298 = arith.constant 400 : index
    %c0_299 = arith.constant 0 : index
    %403 = vector.load %arg12[%c400_298, %c0_299] : memref<512x256xbf16, #tpu.memory_space<vmem>>, vector<16x256xbf16>
    tpu.vector_store %arg12[%c400_298, %c0_299], %402 {strides = array<i32>} : memref<512x256xbf16, #tpu.memory_space<vmem>>, vector<16x256xbf16>,
    %c3_300 = arith.constant 3 : index
    %c0_301 = arith.constant 0 : index
    %c34_302 = arith.constant 34 : index
    %404 = vector.load %arg11[%c3_300, %c0_301, %c34_302] : memref<6x16x290xbf16, #tpu.memory_space<vmem>>, vector<1x16x256xbf16>
    %405 = vector.shape_cast %404 : vector<1x16x256xbf16> to vector<16x256xbf16>
    %406 = vector.extract_strided_slice %121 {offsets = [1, 0], sizes = [1, 256], strides = [1, 1]} : vector<2x256xbf16> to vector<1x256xbf16>
    %407 = vector.broadcast %406 : vector<1x256xbf16> to vector<16x256xbf16>
    %408 = arith.mulf %405, %407 : vector<16x256xbf16>
    %c416_303 = arith.constant 416 : index
    %c0_304 = arith.constant 0 : index
    %409 = vector.load %arg12[%c416_303, %c0_304] : memref<512x256xbf16, #tpu.memory_space<vmem>>, vector<16x256xbf16>
    tpu.vector_store %arg12[%c416_303, %c0_304], %408 {strides = array<i32>} : memref<512x256xbf16, #tpu.memory_space<vmem>>, vector<16x256xbf16>,
    %c0_305 = arith.constant 0 : index
    %c0_306 = arith.constant 0 : index
    %410 = vector.load %arg5[%c0_305, %c0_306] : memref<16x512xbf16, #tpu.memory_space<vmem>>, vector<16x512xbf16>
    %c0_307 = arith.constant 0 : index
    %c0_308 = arith.constant 0 : index
    %411 = vector.load %arg12[%c0_307, %c0_308] : memref<512x256xbf16, #tpu.memory_space<vmem>>, vector<512x256xbf16>
    %cst_309 = arith.constant dense<0.000000e+00> : vector<16x256xf32>
    %412 = tpu.matmul %410, %411, %cst_309 {dimension_numbers = #tpu.dot_dimension_numbers<[1], [0], [0], [1], [0, 0, 1, 1], [], []>} : vector<16x512xbf16>, vector<512x256xbf16>, vector<16x256xf32> -> vector<16x256xf32>
    %c1_310 = arith.constant 1 : index
    %c0_311 = arith.constant 0 : index
    %c0_312 = arith.constant 0 : index
    %413 = vector.load %arg8[%c1_310, %c0_311, %c0_312] : memref<4x16x256xf32, #tpu.memory_space<vmem>>, vector<1x16x256xf32>
    %414 = vector.shape_cast %413 : vector<1x16x256xf32> to vector<16x256xf32>
    %415 = arith.addf %412, %414 : vector<16x256xf32>
    %c1_313 = arith.constant 1 : index
    %c0_314 = arith.constant 0 : index
    %c0_315 = arith.constant 0 : index
    %416 = vector.load %arg9[%c1_313, %c0_314, %c0_315] : memref<4x16x256xf32, #tpu.memory_space<vmem>>, vector<1x16x256xf32>
    %417 = vector.shape_cast %416 : vector<1x16x256xf32> to vector<16x256xf32>
    %418 = vector.shape_cast %415 : vector<16x256xf32> to vector<1x16x256xf32>
    tpu.vector_store %arg9[%c1_313, %c0_314, %c0_315], %418 {strides = array<i32>} : memref<4x16x256xf32, #tpu.memory_space<vmem>>, vector<1x16x256xf32>,
    %cst_316 = arith.constant dense<0.000000e+00> : vector<16xf32>
    %419 = vector.multi_reduction <add>, %415, %cst_316 [1] : vector<16x256xf32> to vector<16xf32>
    %420 = vector.shape_cast %419 : vector<16xf32> to vector<16x1xf32>
    %421 = arith.addf %270, %420 : vector<16x1xf32>
    %422 = arith.mulf %415, %415 : vector<16x256xf32>
    %cst_317 = arith.constant dense<0.000000e+00> : vector<16xf32>
    %423 = vector.multi_reduction <add>, %422, %cst_317 [1] : vector<16x256xf32> to vector<16xf32>
    %424 = vector.shape_cast %423 : vector<16xf32> to vector<16x1xf32>
    %425 = arith.addf %274, %424 : vector<16x1xf32>
    %c2_318 = arith.constant 2 : index
    %c0_319 = arith.constant 0 : index
    %c0_320 = arith.constant 0 : index
    %426 = vector.load %arg11[%c2_318, %c0_319, %c0_320] : memref<6x16x290xbf16, #tpu.memory_space<vmem>>, vector<1x16x256xbf16>
    %427 = vector.shape_cast %426 : vector<1x16x256xbf16> to vector<16x256xbf16>
    %428 = vector.extract_strided_slice %121 {offsets = [0, 0], sizes = [1, 256], strides = [1, 1]} : vector<2x256xbf16> to vector<1x256xbf16>
    %429 = vector.broadcast %428 : vector<1x256xbf16> to vector<16x256xbf16>
    %430 = arith.mulf %427, %429 : vector<16x256xbf16>
    %c0_321 = arith.constant 0 : index
    %c0_322 = arith.constant 0 : index
    %431 = vector.load %arg12[%c0_321, %c0_322] : memref<512x256xbf16, #tpu.memory_space<vmem>>, vector<16x256xbf16>
    tpu.vector_store %arg12[%c0_321, %c0_322], %430 {strides = array<i32>} : memref<512x256xbf16, #tpu.memory_space<vmem>>, vector<16x256xbf16>,
    %c2_323 = arith.constant 2 : index
    %c0_324 = arith.constant 0 : index
    %c1_325 = arith.constant 1 : index
    %432 = vector.load %arg11[%c2_323, %c0_324, %c1_325] : memref<6x16x290xbf16, #tpu.memory_space<vmem>>, vector<1x16x256xbf16>
    %433 = vector.shape_cast %432 : vector<1x16x256xbf16> to vector<16x256xbf16>
    %c16_326 = arith.constant 16 : index
    %c0_327 = arith.constant 0 : index
    %434 = vector.load %arg12[%c16_326, %c0_327] : memref<512x256xbf16, #tpu.memory_space<vmem>>, vector<16x256xbf16>
    tpu.vector_store %arg12[%c16_326, %c0_327], %433 {strides = array<i32>} : memref<512x256xbf16, #tpu.memory_space<vmem>>, vector<16x256xbf16>,
    %c2_328 = arith.constant 2 : index
    %c0_329 = arith.constant 0 : index
    %c2_330 = arith.constant 2 : index
    %435 = vector.load %arg11[%c2_328, %c0_329, %c2_330] : memref<6x16x290xbf16, #tpu.memory_space<vmem>>, vector<1x16x256xbf16>
    %436 = vector.shape_cast %435 : vector<1x16x256xbf16> to vector<16x256xbf16>
    %437 = vector.extract_strided_slice %121 {offsets = [1, 0], sizes = [1, 256], strides = [1, 1]} : vector<2x256xbf16> to vector<1x256xbf16>
    %438 = vector.broadcast %437 : vector<1x256xbf16> to vector<16x256xbf16>
    %439 = arith.mulf %436, %438 : vector<16x256xbf16>
    %c32_331 = arith.constant 32 : index
    %c0_332 = arith.constant 0 : index
    %440 = vector.load %arg12[%c32_331, %c0_332] : memref<512x256xbf16, #tpu.memory_space<vmem>>, vector<16x256xbf16>
    tpu.vector_store %arg12[%c32_331, %c0_332], %439 {strides = array<i32>} : memref<512x256xbf16, #tpu.memory_space<vmem>>, vector<16x256xbf16>,
    %c2_333 = arith.constant 2 : index
    %c0_334 = arith.constant 0 : index
    %c16_335 = arith.constant 16 : index
    %441 = vector.load %arg11[%c2_333, %c0_334, %c16_335] : memref<6x16x290xbf16, #tpu.memory_space<vmem>>, vector<1x16x256xbf16>
    %442 = vector.shape_cast %441 : vector<1x16x256xbf16> to vector<16x256xbf16>
    %443 = vector.extract_strided_slice %121 {offsets = [0, 0], sizes = [1, 256], strides = [1, 1]} : vector<2x256xbf16> to vector<1x256xbf16>
    %444 = vector.broadcast %443 : vector<1x256xbf16> to vector<16x256xbf16>
    %445 = arith.mulf %442, %444 : vector<16x256xbf16>
    %c48_336 = arith.constant 48 : index
    %c0_337 = arith.constant 0 : index
    %446 = vector.load %arg12[%c48_336, %c0_337] : memref<512x256xbf16, #tpu.memory_space<vmem>>, vector<16x256xbf16>
    tpu.vector_store %arg12[%c48_336, %c0_337], %445 {strides = array<i32>} : memref<512x256xbf16, #tpu.memory_space<vmem>>, vector<16x256xbf16>,
    %c2_338 = arith.constant 2 : index
    %c0_339 = arith.constant 0 : index
    %c17_340 = arith.constant 17 : index
    %447 = vector.load %arg11[%c2_338, %c0_339, %c17_340] : memref<6x16x290xbf16, #tpu.memory_space<vmem>>, vector<1x16x256xbf16>
    %448 = vector.shape_cast %447 : vector<1x16x256xbf16> to vector<16x256xbf16>
    %c64_341 = arith.constant 64 : index
    %c0_342 = arith.constant 0 : index
    %449 = vector.load %arg12[%c64_341, %c0_342] : memref<512x256xbf16, #tpu.memory_space<vmem>>, vector<16x256xbf16>
    tpu.vector_store %arg12[%c64_341, %c0_342], %448 {strides = array<i32>} : memref<512x256xbf16, #tpu.memory_space<vmem>>, vector<16x256xbf16>,
    %c2_343 = arith.constant 2 : index
    %c0_344 = arith.constant 0 : index
    %c18_345 = arith.constant 18 : index
    %450 = vector.load %arg11[%c2_343, %c0_344, %c18_345] : memref<6x16x290xbf16, #tpu.memory_space<vmem>>, vector<1x16x256xbf16>
    %451 = vector.shape_cast %450 : vector<1x16x256xbf16> to vector<16x256xbf16>
    %452 = vector.extract_strided_slice %121 {offsets = [1, 0], sizes = [1, 256], strides = [1, 1]} : vector<2x256xbf16> to vector<1x256xbf16>
    %453 = vector.broadcast %452 : vector<1x256xbf16> to vector<16x256xbf16>
    %454 = arith.mulf %451, %453 : vector<16x256xbf16>
    %c80_346 = arith.constant 80 : index
    %c0_347 = arith.constant 0 : index
    %455 = vector.load %arg12[%c80_346, %c0_347] : memref<512x256xbf16, #tpu.memory_space<vmem>>, vector<16x256xbf16>
    tpu.vector_store %arg12[%c80_346, %c0_347], %454 {strides = array<i32>} : memref<512x256xbf16, #tpu.memory_space<vmem>>, vector<16x256xbf16>,
    %c2_348 = arith.constant 2 : index
    %c0_349 = arith.constant 0 : index
    %c32_350 = arith.constant 32 : index
    %456 = vector.load %arg11[%c2_348, %c0_349, %c32_350] : memref<6x16x290xbf16, #tpu.memory_space<vmem>>, vector<1x16x256xbf16>
    %457 = vector.shape_cast %456 : vector<1x16x256xbf16> to vector<16x256xbf16>
    %458 = vector.extract_strided_slice %121 {offsets = [0, 0], sizes = [1, 256], strides = [1, 1]} : vector<2x256xbf16> to vector<1x256xbf16>
    %459 = vector.broadcast %458 : vector<1x256xbf16> to vector<16x256xbf16>
    %460 = arith.mulf %457, %459 : vector<16x256xbf16>
    %c96_351 = arith.constant 96 : index
    %c0_352 = arith.constant 0 : index
    %461 = vector.load %arg12[%c96_351, %c0_352] : memref<512x256xbf16, #tpu.memory_space<vmem>>, vector<16x256xbf16>
    tpu.vector_store %arg12[%c96_351, %c0_352], %460 {strides = array<i32>} : memref<512x256xbf16, #tpu.memory_space<vmem>>, vector<16x256xbf16>,
    %c2_353 = arith.constant 2 : index
    %c0_354 = arith.constant 0 : index
    %c33_355 = arith.constant 33 : index
    %462 = vector.load %arg11[%c2_353, %c0_354, %c33_355] : memref<6x16x290xbf16, #tpu.memory_space<vmem>>, vector<1x16x256xbf16>
    %463 = vector.shape_cast %462 : vector<1x16x256xbf16> to vector<16x256xbf16>
    %c112_356 = arith.constant 112 : index
    %c0_357 = arith.constant 0 : index
    %464 = vector.load %arg12[%c112_356, %c0_357] : memref<512x256xbf16, #tpu.memory_space<vmem>>, vector<16x256xbf16>
    tpu.vector_store %arg12[%c112_356, %c0_357], %463 {strides = array<i32>} : memref<512x256xbf16, #tpu.memory_space<vmem>>, vector<16x256xbf16>,
    %c2_358 = arith.constant 2 : index
    %c0_359 = arith.constant 0 : index
    %c34_360 = arith.constant 34 : index
    %465 = vector.load %arg11[%c2_358, %c0_359, %c34_360] : memref<6x16x290xbf16, #tpu.memory_space<vmem>>, vector<1x16x256xbf16>
    %466 = vector.shape_cast %465 : vector<1x16x256xbf16> to vector<16x256xbf16>
    %467 = vector.extract_strided_slice %121 {offsets = [1, 0], sizes = [1, 256], strides = [1, 1]} : vector<2x256xbf16> to vector<1x256xbf16>
    %468 = vector.broadcast %467 : vector<1x256xbf16> to vector<16x256xbf16>
    %469 = arith.mulf %466, %468 : vector<16x256xbf16>
    %c128_361 = arith.constant 128 : index
    %c0_362 = arith.constant 0 : index
    %470 = vector.load %arg12[%c128_361, %c0_362] : memref<512x256xbf16, #tpu.memory_space<vmem>>, vector<16x256xbf16>
    tpu.vector_store %arg12[%c128_361, %c0_362], %469 {strides = array<i32>} : memref<512x256xbf16, #tpu.memory_space<vmem>>, vector<16x256xbf16>,
    %c3_363 = arith.constant 3 : index
    %c0_364 = arith.constant 0 : index
    %c0_365 = arith.constant 0 : index
    %471 = vector.load %arg11[%c3_363, %c0_364, %c0_365] : memref<6x16x290xbf16, #tpu.memory_space<vmem>>, vector<1x16x256xbf16>
    %472 = vector.shape_cast %471 : vector<1x16x256xbf16> to vector<16x256xbf16>
    %473 = vector.extract_strided_slice %121 {offsets = [0, 0], sizes = [1, 256], strides = [1, 1]} : vector<2x256xbf16> to vector<1x256xbf16>
    %474 = vector.broadcast %473 : vector<1x256xbf16> to vector<16x256xbf16>
    %475 = arith.mulf %472, %474 : vector<16x256xbf16>
    %c144_366 = arith.constant 144 : index
    %c0_367 = arith.constant 0 : index
    %476 = vector.load %arg12[%c144_366, %c0_367] : memref<512x256xbf16, #tpu.memory_space<vmem>>, vector<16x256xbf16>
    tpu.vector_store %arg12[%c144_366, %c0_367], %475 {strides = array<i32>} : memref<512x256xbf16, #tpu.memory_space<vmem>>, vector<16x256xbf16>,
    %c3_368 = arith.constant 3 : index
    %c0_369 = arith.constant 0 : index
    %c1_370 = arith.constant 1 : index
    %477 = vector.load %arg11[%c3_368, %c0_369, %c1_370] : memref<6x16x290xbf16, #tpu.memory_space<vmem>>, vector<1x16x256xbf16>
    %478 = vector.shape_cast %477 : vector<1x16x256xbf16> to vector<16x256xbf16>
    %c160_371 = arith.constant 160 : index
    %c0_372 = arith.constant 0 : index
    %479 = vector.load %arg12[%c160_371, %c0_372] : memref<512x256xbf16, #tpu.memory_space<vmem>>, vector<16x256xbf16>
    tpu.vector_store %arg12[%c160_371, %c0_372], %478 {strides = array<i32>} : memref<512x256xbf16, #tpu.memory_space<vmem>>, vector<16x256xbf16>,
    %c3_373 = arith.constant 3 : index
    %c0_374 = arith.constant 0 : index
    %c2_375 = arith.constant 2 : index
    %480 = vector.load %arg11[%c3_373, %c0_374, %c2_375] : memref<6x16x290xbf16, #tpu.memory_space<vmem>>, vector<1x16x256xbf16>
    %481 = vector.shape_cast %480 : vector<1x16x256xbf16> to vector<16x256xbf16>
    %482 = vector.extract_strided_slice %121 {offsets = [1, 0], sizes = [1, 256], strides = [1, 1]} : vector<2x256xbf16> to vector<1x256xbf16>
    %483 = vector.broadcast %482 : vector<1x256xbf16> to vector<16x256xbf16>
    %484 = arith.mulf %481, %483 : vector<16x256xbf16>
    %c176_376 = arith.constant 176 : index
    %c0_377 = arith.constant 0 : index
    %485 = vector.load %arg12[%c176_376, %c0_377] : memref<512x256xbf16, #tpu.memory_space<vmem>>, vector<16x256xbf16>
    tpu.vector_store %arg12[%c176_376, %c0_377], %484 {strides = array<i32>} : memref<512x256xbf16, #tpu.memory_space<vmem>>, vector<16x256xbf16>,
    %c3_378 = arith.constant 3 : index
    %c0_379 = arith.constant 0 : index
    %c16_380 = arith.constant 16 : index
    %486 = vector.load %arg11[%c3_378, %c0_379, %c16_380] : memref<6x16x290xbf16, #tpu.memory_space<vmem>>, vector<1x16x256xbf16>
    %487 = vector.shape_cast %486 : vector<1x16x256xbf16> to vector<16x256xbf16>
    %488 = vector.extract_strided_slice %121 {offsets = [0, 0], sizes = [1, 256], strides = [1, 1]} : vector<2x256xbf16> to vector<1x256xbf16>
    %489 = vector.broadcast %488 : vector<1x256xbf16> to vector<16x256xbf16>
    %490 = arith.mulf %487, %489 : vector<16x256xbf16>
    %c192_381 = arith.constant 192 : index
    %c0_382 = arith.constant 0 : index
    %491 = vector.load %arg12[%c192_381, %c0_382] : memref<512x256xbf16, #tpu.memory_space<vmem>>, vector<16x256xbf16>
    tpu.vector_store %arg12[%c192_381, %c0_382], %490 {strides = array<i32>} : memref<512x256xbf16, #tpu.memory_space<vmem>>, vector<16x256xbf16>,
    %c3_383 = arith.constant 3 : index
    %c0_384 = arith.constant 0 : index
    %c17_385 = arith.constant 17 : index
    %492 = vector.load %arg11[%c3_383, %c0_384, %c17_385] : memref<6x16x290xbf16, #tpu.memory_space<vmem>>, vector<1x16x256xbf16>
    %493 = vector.shape_cast %492 : vector<1x16x256xbf16> to vector<16x256xbf16>
    %c208_386 = arith.constant 208 : index
    %c0_387 = arith.constant 0 : index
    %494 = vector.load %arg12[%c208_386, %c0_387] : memref<512x256xbf16, #tpu.memory_space<vmem>>, vector<16x256xbf16>
    tpu.vector_store %arg12[%c208_386, %c0_387], %493 {strides = array<i32>} : memref<512x256xbf16, #tpu.memory_space<vmem>>, vector<16x256xbf16>,
    %c3_388 = arith.constant 3 : index
    %c0_389 = arith.constant 0 : index
    %c18_390 = arith.constant 18 : index
    %495 = vector.load %arg11[%c3_388, %c0_389, %c18_390] : memref<6x16x290xbf16, #tpu.memory_space<vmem>>, vector<1x16x256xbf16>
    %496 = vector.shape_cast %495 : vector<1x16x256xbf16> to vector<16x256xbf16>
    %497 = vector.extract_strided_slice %121 {offsets = [1, 0], sizes = [1, 256], strides = [1, 1]} : vector<2x256xbf16> to vector<1x256xbf16>
    %498 = vector.broadcast %497 : vector<1x256xbf16> to vector<16x256xbf16>
    %499 = arith.mulf %496, %498 : vector<16x256xbf16>
    %c224_391 = arith.constant 224 : index
    %c0_392 = arith.constant 0 : index
    %500 = vector.load %arg12[%c224_391, %c0_392] : memref<512x256xbf16, #tpu.memory_space<vmem>>, vector<16x256xbf16>
    tpu.vector_store %arg12[%c224_391, %c0_392], %499 {strides = array<i32>} : memref<512x256xbf16, #tpu.memory_space<vmem>>, vector<16x256xbf16>,
    %c3_393 = arith.constant 3 : index
    %c0_394 = arith.constant 0 : index
    %c32_395 = arith.constant 32 : index
    %501 = vector.load %arg11[%c3_393, %c0_394, %c32_395] : memref<6x16x290xbf16, #tpu.memory_space<vmem>>, vector<1x16x256xbf16>
    %502 = vector.shape_cast %501 : vector<1x16x256xbf16> to vector<16x256xbf16>
    %503 = vector.extract_strided_slice %121 {offsets = [0, 0], sizes = [1, 256], strides = [1, 1]} : vector<2x256xbf16> to vector<1x256xbf16>
    %504 = vector.broadcast %503 : vector<1x256xbf16> to vector<16x256xbf16>
    %505 = arith.mulf %502, %504 : vector<16x256xbf16>
    %c240_396 = arith.constant 240 : index
    %c0_397 = arith.constant 0 : index
    %506 = vector.load %arg12[%c240_396, %c0_397] : memref<512x256xbf16, #tpu.memory_space<vmem>>, vector<16x256xbf16>
    tpu.vector_store %arg12[%c240_396, %c0_397], %505 {strides = array<i32>} : memref<512x256xbf16, #tpu.memory_space<vmem>>, vector<16x256xbf16>,
    %c3_398 = arith.constant 3 : index
    %c0_399 = arith.constant 0 : index
    %c33_400 = arith.constant 33 : index
    %507 = vector.load %arg11[%c3_398, %c0_399, %c33_400] : memref<6x16x290xbf16, #tpu.memory_space<vmem>>, vector<1x16x256xbf16>
    %508 = vector.shape_cast %507 : vector<1x16x256xbf16> to vector<16x256xbf16>
    %c256_401 = arith.constant 256 : index
    %c0_402 = arith.constant 0 : index
    %509 = vector.load %arg12[%c256_401, %c0_402] : memref<512x256xbf16, #tpu.memory_space<vmem>>, vector<16x256xbf16>
    tpu.vector_store %arg12[%c256_401, %c0_402], %508 {strides = array<i32>} : memref<512x256xbf16, #tpu.memory_space<vmem>>, vector<16x256xbf16>,
    %c3_403 = arith.constant 3 : index
    %c0_404 = arith.constant 0 : index
    %c34_405 = arith.constant 34 : index
    %510 = vector.load %arg11[%c3_403, %c0_404, %c34_405] : memref<6x16x290xbf16, #tpu.memory_space<vmem>>, vector<1x16x256xbf16>
    %511 = vector.shape_cast %510 : vector<1x16x256xbf16> to vector<16x256xbf16>
    %512 = vector.extract_strided_slice %121 {offsets = [1, 0], sizes = [1, 256], strides = [1, 1]} : vector<2x256xbf16> to vector<1x256xbf16>
    %513 = vector.broadcast %512 : vector<1x256xbf16> to vector<16x256xbf16>
    %514 = arith.mulf %511, %513 : vector<16x256xbf16>
    %c272_406 = arith.constant 272 : index
    %c0_407 = arith.constant 0 : index
    %515 = vector.load %arg12[%c272_406, %c0_407] : memref<512x256xbf16, #tpu.memory_space<vmem>>, vector<16x256xbf16>
    tpu.vector_store %arg12[%c272_406, %c0_407], %514 {strides = array<i32>} : memref<512x256xbf16, #tpu.memory_space<vmem>>, vector<16x256xbf16>,
    %c4_408 = arith.constant 4 : index
    %c0_409 = arith.constant 0 : index
    %c0_410 = arith.constant 0 : index
    %516 = vector.load %arg11[%c4_408, %c0_409, %c0_410] : memref<6x16x290xbf16, #tpu.memory_space<vmem>>, vector<1x16x256xbf16>
    %517 = vector.shape_cast %516 : vector<1x16x256xbf16> to vector<16x256xbf16>
    %518 = vector.extract_strided_slice %121 {offsets = [0, 0], sizes = [1, 256], strides = [1, 1]} : vector<2x256xbf16> to vector<1x256xbf16>
    %519 = vector.broadcast %518 : vector<1x256xbf16> to vector<16x256xbf16>
    %520 = arith.mulf %517, %519 : vector<16x256xbf16>
    %c288_411 = arith.constant 288 : index
    %c0_412 = arith.constant 0 : index
    %521 = vector.load %arg12[%c288_411, %c0_412] : memref<512x256xbf16, #tpu.memory_space<vmem>>, vector<16x256xbf16>
    tpu.vector_store %arg12[%c288_411, %c0_412], %520 {strides = array<i32>} : memref<512x256xbf16, #tpu.memory_space<vmem>>, vector<16x256xbf16>,
    %c4_413 = arith.constant 4 : index
    %c0_414 = arith.constant 0 : index
    %c1_415 = arith.constant 1 : index
    %522 = vector.load %arg11[%c4_413, %c0_414, %c1_415] : memref<6x16x290xbf16, #tpu.memory_space<vmem>>, vector<1x16x256xbf16>
    %523 = vector.shape_cast %522 : vector<1x16x256xbf16> to vector<16x256xbf16>
    %c304_416 = arith.constant 304 : index
    %c0_417 = arith.constant 0 : index
    %524 = vector.load %arg12[%c304_416, %c0_417] : memref<512x256xbf16, #tpu.memory_space<vmem>>, vector<16x256xbf16>
    tpu.vector_store %arg12[%c304_416, %c0_417], %523 {strides = array<i32>} : memref<512x256xbf16, #tpu.memory_space<vmem>>, vector<16x256xbf16>,
    %c4_418 = arith.constant 4 : index
    %c0_419 = arith.constant 0 : index
    %c2_420 = arith.constant 2 : index
    %525 = vector.load %arg11[%c4_418, %c0_419, %c2_420] : memref<6x16x290xbf16, #tpu.memory_space<vmem>>, vector<1x16x256xbf16>
    %526 = vector.shape_cast %525 : vector<1x16x256xbf16> to vector<16x256xbf16>
    %527 = vector.extract_strided_slice %121 {offsets = [1, 0], sizes = [1, 256], strides = [1, 1]} : vector<2x256xbf16> to vector<1x256xbf16>
    %528 = vector.broadcast %527 : vector<1x256xbf16> to vector<16x256xbf16>
    %529 = arith.mulf %526, %528 : vector<16x256xbf16>
    %c320_421 = arith.constant 320 : index
    %c0_422 = arith.constant 0 : index
    %530 = vector.load %arg12[%c320_421, %c0_422] : memref<512x256xbf16, #tpu.memory_space<vmem>>, vector<16x256xbf16>
    tpu.vector_store %arg12[%c320_421, %c0_422], %529 {strides = array<i32>} : memref<512x256xbf16, #tpu.memory_space<vmem>>, vector<16x256xbf16>,
    %c4_423 = arith.constant 4 : index
    %c0_424 = arith.constant 0 : index
    %c16_425 = arith.constant 16 : index
    %531 = vector.load %arg11[%c4_423, %c0_424, %c16_425] : memref<6x16x290xbf16, #tpu.memory_space<vmem>>, vector<1x16x256xbf16>
    %532 = vector.shape_cast %531 : vector<1x16x256xbf16> to vector<16x256xbf16>
    %533 = vector.extract_strided_slice %121 {offsets = [0, 0], sizes = [1, 256], strides = [1, 1]} : vector<2x256xbf16> to vector<1x256xbf16>
    %534 = vector.broadcast %533 : vector<1x256xbf16> to vector<16x256xbf16>
    %535 = arith.mulf %532, %534 : vector<16x256xbf16>
    %c336_426 = arith.constant 336 : index
    %c0_427 = arith.constant 0 : index
    %536 = vector.load %arg12[%c336_426, %c0_427] : memref<512x256xbf16, #tpu.memory_space<vmem>>, vector<16x256xbf16>
    tpu.vector_store %arg12[%c336_426, %c0_427], %535 {strides = array<i32>} : memref<512x256xbf16, #tpu.memory_space<vmem>>, vector<16x256xbf16>,
    %c4_428 = arith.constant 4 : index
    %c0_429 = arith.constant 0 : index
    %c17_430 = arith.constant 17 : index
    %537 = vector.load %arg11[%c4_428, %c0_429, %c17_430] : memref<6x16x290xbf16, #tpu.memory_space<vmem>>, vector<1x16x256xbf16>
    %538 = vector.shape_cast %537 : vector<1x16x256xbf16> to vector<16x256xbf16>
    %c352_431 = arith.constant 352 : index
    %c0_432 = arith.constant 0 : index
    %539 = vector.load %arg12[%c352_431, %c0_432] : memref<512x256xbf16, #tpu.memory_space<vmem>>, vector<16x256xbf16>
    tpu.vector_store %arg12[%c352_431, %c0_432], %538 {strides = array<i32>} : memref<512x256xbf16, #tpu.memory_space<vmem>>, vector<16x256xbf16>,
    %c4_433 = arith.constant 4 : index
    %c0_434 = arith.constant 0 : index
    %c18_435 = arith.constant 18 : index
    %540 = vector.load %arg11[%c4_433, %c0_434, %c18_435] : memref<6x16x290xbf16, #tpu.memory_space<vmem>>, vector<1x16x256xbf16>
    %541 = vector.shape_cast %540 : vector<1x16x256xbf16> to vector<16x256xbf16>
    %542 = vector.extract_strided_slice %121 {offsets = [1, 0], sizes = [1, 256], strides = [1, 1]} : vector<2x256xbf16> to vector<1x256xbf16>
    %543 = vector.broadcast %542 : vector<1x256xbf16> to vector<16x256xbf16>
    %544 = arith.mulf %541, %543 : vector<16x256xbf16>
    %c368_436 = arith.constant 368 : index
    %c0_437 = arith.constant 0 : index
    %545 = vector.load %arg12[%c368_436, %c0_437] : memref<512x256xbf16, #tpu.memory_space<vmem>>, vector<16x256xbf16>
    tpu.vector_store %arg12[%c368_436, %c0_437], %544 {strides = array<i32>} : memref<512x256xbf16, #tpu.memory_space<vmem>>, vector<16x256xbf16>,
    %c4_438 = arith.constant 4 : index
    %c0_439 = arith.constant 0 : index
    %c32_440 = arith.constant 32 : index
    %546 = vector.load %arg11[%c4_438, %c0_439, %c32_440] : memref<6x16x290xbf16, #tpu.memory_space<vmem>>, vector<1x16x256xbf16>
    %547 = vector.shape_cast %546 : vector<1x16x256xbf16> to vector<16x256xbf16>
    %548 = vector.extract_strided_slice %121 {offsets = [0, 0], sizes = [1, 256], strides = [1, 1]} : vector<2x256xbf16> to vector<1x256xbf16>
    %549 = vector.broadcast %548 : vector<1x256xbf16> to vector<16x256xbf16>
    %550 = arith.mulf %547, %549 : vector<16x256xbf16>
    %c384_441 = arith.constant 384 : index
    %c0_442 = arith.constant 0 : index
    %551 = vector.load %arg12[%c384_441, %c0_442] : memref<512x256xbf16, #tpu.memory_space<vmem>>, vector<16x256xbf16>
    tpu.vector_store %arg12[%c384_441, %c0_442], %550 {strides = array<i32>} : memref<512x256xbf16, #tpu.memory_space<vmem>>, vector<16x256xbf16>,
    %c4_443 = arith.constant 4 : index
    %c0_444 = arith.constant 0 : index
    %c33_445 = arith.constant 33 : index
    %552 = vector.load %arg11[%c4_443, %c0_444, %c33_445] : memref<6x16x290xbf16, #tpu.memory_space<vmem>>, vector<1x16x256xbf16>
    %553 = vector.shape_cast %552 : vector<1x16x256xbf16> to vector<16x256xbf16>
    %c400_446 = arith.constant 400 : index
    %c0_447 = arith.constant 0 : index
    %554 = vector.load %arg12[%c400_446, %c0_447] : memref<512x256xbf16, #tpu.memory_space<vmem>>, vector<16x256xbf16>
    tpu.vector_store %arg12[%c400_446, %c0_447], %553 {strides = array<i32>} : memref<512x256xbf16, #tpu.memory_space<vmem>>, vector<16x256xbf16>,
    %c4_448 = arith.constant 4 : index
    %c0_449 = arith.constant 0 : index
    %c34_450 = arith.constant 34 : index
    %555 = vector.load %arg11[%c4_448, %c0_449, %c34_450] : memref<6x16x290xbf16, #tpu.memory_space<vmem>>, vector<1x16x256xbf16>
    %556 = vector.shape_cast %555 : vector<1x16x256xbf16> to vector<16x256xbf16>
    %557 = vector.extract_strided_slice %121 {offsets = [1, 0], sizes = [1, 256], strides = [1, 1]} : vector<2x256xbf16> to vector<1x256xbf16>
    %558 = vector.broadcast %557 : vector<1x256xbf16> to vector<16x256xbf16>
    %559 = arith.mulf %556, %558 : vector<16x256xbf16>
    %c416_451 = arith.constant 416 : index
    %c0_452 = arith.constant 0 : index
    %560 = vector.load %arg12[%c416_451, %c0_452] : memref<512x256xbf16, #tpu.memory_space<vmem>>, vector<16x256xbf16>
    tpu.vector_store %arg12[%c416_451, %c0_452], %559 {strides = array<i32>} : memref<512x256xbf16, #tpu.memory_space<vmem>>, vector<16x256xbf16>,
    %c0_453 = arith.constant 0 : index
    %c0_454 = arith.constant 0 : index
    %561 = vector.load %arg5[%c0_453, %c0_454] : memref<16x512xbf16, #tpu.memory_space<vmem>>, vector<16x512xbf16>
    %c0_455 = arith.constant 0 : index
    %c0_456 = arith.constant 0 : index
    %562 = vector.load %arg12[%c0_455, %c0_456] : memref<512x256xbf16, #tpu.memory_space<vmem>>, vector<512x256xbf16>
    %cst_457 = arith.constant dense<0.000000e+00> : vector<16x256xf32>
    %563 = tpu.matmul %561, %562, %cst_457 {dimension_numbers = #tpu.dot_dimension_numbers<[1], [0], [0], [1], [0, 0, 1, 1], [], []>} : vector<16x512xbf16>, vector<512x256xbf16>, vector<16x256xf32> -> vector<16x256xf32>
    %c2_458 = arith.constant 2 : index
    %c0_459 = arith.constant 0 : index
    %c0_460 = arith.constant 0 : index
    %564 = vector.load %arg8[%c2_458, %c0_459, %c0_460] : memref<4x16x256xf32, #tpu.memory_space<vmem>>, vector<1x16x256xf32>
    %565 = vector.shape_cast %564 : vector<1x16x256xf32> to vector<16x256xf32>
    %566 = arith.addf %563, %565 : vector<16x256xf32>
    %c2_461 = arith.constant 2 : index
    %c0_462 = arith.constant 0 : index
    %c0_463 = arith.constant 0 : index
    %567 = vector.load %arg9[%c2_461, %c0_462, %c0_463] : memref<4x16x256xf32, #tpu.memory_space<vmem>>, vector<1x16x256xf32>
    %568 = vector.shape_cast %567 : vector<1x16x256xf32> to vector<16x256xf32>
    %569 = vector.shape_cast %566 : vector<16x256xf32> to vector<1x16x256xf32>
    tpu.vector_store %arg9[%c2_461, %c0_462, %c0_463], %569 {strides = array<i32>} : memref<4x16x256xf32, #tpu.memory_space<vmem>>, vector<1x16x256xf32>,
    %cst_464 = arith.constant dense<0.000000e+00> : vector<16xf32>
    %570 = vector.multi_reduction <add>, %566, %cst_464 [1] : vector<16x256xf32> to vector<16xf32>
    %571 = vector.shape_cast %570 : vector<16xf32> to vector<16x1xf32>
    %572 = arith.addf %421, %571 : vector<16x1xf32>
    %573 = arith.mulf %566, %566 : vector<16x256xf32>
    %cst_465 = arith.constant dense<0.000000e+00> : vector<16xf32>
    %574 = vector.multi_reduction <add>, %573, %cst_465 [1] : vector<16x256xf32> to vector<16xf32>
    %575 = vector.shape_cast %574 : vector<16xf32> to vector<16x1xf32>
    %576 = arith.addf %425, %575 : vector<16x1xf32>
    %c3_466 = arith.constant 3 : index
    %c0_467 = arith.constant 0 : index
    %c0_468 = arith.constant 0 : index
    %577 = vector.load %arg11[%c3_466, %c0_467, %c0_468] : memref<6x16x290xbf16, #tpu.memory_space<vmem>>, vector<1x16x256xbf16>
    %578 = vector.shape_cast %577 : vector<1x16x256xbf16> to vector<16x256xbf16>
    %579 = vector.extract_strided_slice %121 {offsets = [0, 0], sizes = [1, 256], strides = [1, 1]} : vector<2x256xbf16> to vector<1x256xbf16>
    %580 = vector.broadcast %579 : vector<1x256xbf16> to vector<16x256xbf16>
    %581 = arith.mulf %578, %580 : vector<16x256xbf16>
    %c0_469 = arith.constant 0 : index
    %c0_470 = arith.constant 0 : index
    %582 = vector.load %arg12[%c0_469, %c0_470] : memref<512x256xbf16, #tpu.memory_space<vmem>>, vector<16x256xbf16>
    tpu.vector_store %arg12[%c0_469, %c0_470], %581 {strides = array<i32>} : memref<512x256xbf16, #tpu.memory_space<vmem>>, vector<16x256xbf16>,
    %c3_471 = arith.constant 3 : index
    %c0_472 = arith.constant 0 : index
    %c1_473 = arith.constant 1 : index
    %583 = vector.load %arg11[%c3_471, %c0_472, %c1_473] : memref<6x16x290xbf16, #tpu.memory_space<vmem>>, vector<1x16x256xbf16>
    %584 = vector.shape_cast %583 : vector<1x16x256xbf16> to vector<16x256xbf16>
    %c16_474 = arith.constant 16 : index
    %c0_475 = arith.constant 0 : index
    %585 = vector.load %arg12[%c16_474, %c0_475] : memref<512x256xbf16, #tpu.memory_space<vmem>>, vector<16x256xbf16>
    tpu.vector_store %arg12[%c16_474, %c0_475], %584 {strides = array<i32>} : memref<512x256xbf16, #tpu.memory_space<vmem>>, vector<16x256xbf16>,
    %c3_476 = arith.constant 3 : index
    %c0_477 = arith.constant 0 : index
    %c2_478 = arith.constant 2 : index
    %586 = vector.load %arg11[%c3_476, %c0_477, %c2_478] : memref<6x16x290xbf16, #tpu.memory_space<vmem>>, vector<1x16x256xbf16>
    %587 = vector.shape_cast %586 : vector<1x16x256xbf16> to vector<16x256xbf16>
    %588 = vector.extract_strided_slice %121 {offsets = [1, 0], sizes = [1, 256], strides = [1, 1]} : vector<2x256xbf16> to vector<1x256xbf16>
    %589 = vector.broadcast %588 : vector<1x256xbf16> to vector<16x256xbf16>
    %590 = arith.mulf %587, %589 : vector<16x256xbf16>
    %c32_479 = arith.constant 32 : index
    %c0_480 = arith.constant 0 : index
    %591 = vector.load %arg12[%c32_479, %c0_480] : memref<512x256xbf16, #tpu.memory_space<vmem>>, vector<16x256xbf16>
    tpu.vector_store %arg12[%c32_479, %c0_480], %590 {strides = array<i32>} : memref<512x256xbf16, #tpu.memory_space<vmem>>, vector<16x256xbf16>,
    %c3_481 = arith.constant 3 : index
    %c0_482 = arith.constant 0 : index
    %c16_483 = arith.constant 16 : index
    %592 = vector.load %arg11[%c3_481, %c0_482, %c16_483] : memref<6x16x290xbf16, #tpu.memory_space<vmem>>, vector<1x16x256xbf16>
    %593 = vector.shape_cast %592 : vector<1x16x256xbf16> to vector<16x256xbf16>
    %594 = vector.extract_strided_slice %121 {offsets = [0, 0], sizes = [1, 256], strides = [1, 1]} : vector<2x256xbf16> to vector<1x256xbf16>
    %595 = vector.broadcast %594 : vector<1x256xbf16> to vector<16x256xbf16>
    %596 = arith.mulf %593, %595 : vector<16x256xbf16>
    %c48_484 = arith.constant 48 : index
    %c0_485 = arith.constant 0 : index
    %597 = vector.load %arg12[%c48_484, %c0_485] : memref<512x256xbf16, #tpu.memory_space<vmem>>, vector<16x256xbf16>
    tpu.vector_store %arg12[%c48_484, %c0_485], %596 {strides = array<i32>} : memref<512x256xbf16, #tpu.memory_space<vmem>>, vector<16x256xbf16>,
    %c3_486 = arith.constant 3 : index
    %c0_487 = arith.constant 0 : index
    %c17_488 = arith.constant 17 : index
    %598 = vector.load %arg11[%c3_486, %c0_487, %c17_488] : memref<6x16x290xbf16, #tpu.memory_space<vmem>>, vector<1x16x256xbf16>
    %599 = vector.shape_cast %598 : vector<1x16x256xbf16> to vector<16x256xbf16>
    %c64_489 = arith.constant 64 : index
    %c0_490 = arith.constant 0 : index
    %600 = vector.load %arg12[%c64_489, %c0_490] : memref<512x256xbf16, #tpu.memory_space<vmem>>, vector<16x256xbf16>
    tpu.vector_store %arg12[%c64_489, %c0_490], %599 {strides = array<i32>} : memref<512x256xbf16, #tpu.memory_space<vmem>>, vector<16x256xbf16>,
    %c3_491 = arith.constant 3 : index
    %c0_492 = arith.constant 0 : index
    %c18_493 = arith.constant 18 : index
    %601 = vector.load %arg11[%c3_491, %c0_492, %c18_493] : memref<6x16x290xbf16, #tpu.memory_space<vmem>>, vector<1x16x256xbf16>
    %602 = vector.shape_cast %601 : vector<1x16x256xbf16> to vector<16x256xbf16>
    %603 = vector.extract_strided_slice %121 {offsets = [1, 0], sizes = [1, 256], strides = [1, 1]} : vector<2x256xbf16> to vector<1x256xbf16>
    %604 = vector.broadcast %603 : vector<1x256xbf16> to vector<16x256xbf16>
    %605 = arith.mulf %602, %604 : vector<16x256xbf16>
    %c80_494 = arith.constant 80 : index
    %c0_495 = arith.constant 0 : index
    %606 = vector.load %arg12[%c80_494, %c0_495] : memref<512x256xbf16, #tpu.memory_space<vmem>>, vector<16x256xbf16>
    tpu.vector_store %arg12[%c80_494, %c0_495], %605 {strides = array<i32>} : memref<512x256xbf16, #tpu.memory_space<vmem>>, vector<16x256xbf16>,
    %c3_496 = arith.constant 3 : index
    %c0_497 = arith.constant 0 : index
    %c32_498 = arith.constant 32 : index
    %607 = vector.load %arg11[%c3_496, %c0_497, %c32_498] : memref<6x16x290xbf16, #tpu.memory_space<vmem>>, vector<1x16x256xbf16>
    %608 = vector.shape_cast %607 : vector<1x16x256xbf16> to vector<16x256xbf16>
    %609 = vector.extract_strided_slice %121 {offsets = [0, 0], sizes = [1, 256], strides = [1, 1]} : vector<2x256xbf16> to vector<1x256xbf16>
    %610 = vector.broadcast %609 : vector<1x256xbf16> to vector<16x256xbf16>
    %611 = arith.mulf %608, %610 : vector<16x256xbf16>
    %c96_499 = arith.constant 96 : index
    %c0_500 = arith.constant 0 : index
    %612 = vector.load %arg12[%c96_499, %c0_500] : memref<512x256xbf16, #tpu.memory_space<vmem>>, vector<16x256xbf16>
    tpu.vector_store %arg12[%c96_499, %c0_500], %611 {strides = array<i32>} : memref<512x256xbf16, #tpu.memory_space<vmem>>, vector<16x256xbf16>,
    %c3_501 = arith.constant 3 : index
    %c0_502 = arith.constant 0 : index
    %c33_503 = arith.constant 33 : index
    %613 = vector.load %arg11[%c3_501, %c0_502, %c33_503] : memref<6x16x290xbf16, #tpu.memory_space<vmem>>, vector<1x16x256xbf16>
    %614 = vector.shape_cast %613 : vector<1x16x256xbf16> to vector<16x256xbf16>
    %c112_504 = arith.constant 112 : index
    %c0_505 = arith.constant 0 : index
    %615 = vector.load %arg12[%c112_504, %c0_505] : memref<512x256xbf16, #tpu.memory_space<vmem>>, vector<16x256xbf16>
    tpu.vector_store %arg12[%c112_504, %c0_505], %614 {strides = array<i32>} : memref<512x256xbf16, #tpu.memory_space<vmem>>, vector<16x256xbf16>,
    %c3_506 = arith.constant 3 : index
    %c0_507 = arith.constant 0 : index
    %c34_508 = arith.constant 34 : index
    %616 = vector.load %arg11[%c3_506, %c0_507, %c34_508] : memref<6x16x290xbf16, #tpu.memory_space<vmem>>, vector<1x16x256xbf16>
    %617 = vector.shape_cast %616 : vector<1x16x256xbf16> to vector<16x256xbf16>
    %618 = vector.extract_strided_slice %121 {offsets = [1, 0], sizes = [1, 256], strides = [1, 1]} : vector<2x256xbf16> to vector<1x256xbf16>
    %619 = vector.broadcast %618 : vector<1x256xbf16> to vector<16x256xbf16>
    %620 = arith.mulf %617, %619 : vector<16x256xbf16>
    %c128_509 = arith.constant 128 : index
    %c0_510 = arith.constant 0 : index
    %621 = vector.load %arg12[%c128_509, %c0_510] : memref<512x256xbf16, #tpu.memory_space<vmem>>, vector<16x256xbf16>
    tpu.vector_store %arg12[%c128_509, %c0_510], %620 {strides = array<i32>} : memref<512x256xbf16, #tpu.memory_space<vmem>>, vector<16x256xbf16>,
    %c4_511 = arith.constant 4 : index
    %c0_512 = arith.constant 0 : index
    %c0_513 = arith.constant 0 : index
    %622 = vector.load %arg11[%c4_511, %c0_512, %c0_513] : memref<6x16x290xbf16, #tpu.memory_space<vmem>>, vector<1x16x256xbf16>
    %623 = vector.shape_cast %622 : vector<1x16x256xbf16> to vector<16x256xbf16>
    %624 = vector.extract_strided_slice %121 {offsets = [0, 0], sizes = [1, 256], strides = [1, 1]} : vector<2x256xbf16> to vector<1x256xbf16>
    %625 = vector.broadcast %624 : vector<1x256xbf16> to vector<16x256xbf16>
    %626 = arith.mulf %623, %625 : vector<16x256xbf16>
    %c144_514 = arith.constant 144 : index
    %c0_515 = arith.constant 0 : index
    %627 = vector.load %arg12[%c144_514, %c0_515] : memref<512x256xbf16, #tpu.memory_space<vmem>>, vector<16x256xbf16>
    tpu.vector_store %arg12[%c144_514, %c0_515], %626 {strides = array<i32>} : memref<512x256xbf16, #tpu.memory_space<vmem>>, vector<16x256xbf16>,
    %c4_516 = arith.constant 4 : index
    %c0_517 = arith.constant 0 : index
    %c1_518 = arith.constant 1 : index
    %628 = vector.load %arg11[%c4_516, %c0_517, %c1_518] : memref<6x16x290xbf16, #tpu.memory_space<vmem>>, vector<1x16x256xbf16>
    %629 = vector.shape_cast %628 : vector<1x16x256xbf16> to vector<16x256xbf16>
    %c160_519 = arith.constant 160 : index
    %c0_520 = arith.constant 0 : index
    %630 = vector.load %arg12[%c160_519, %c0_520] : memref<512x256xbf16, #tpu.memory_space<vmem>>, vector<16x256xbf16>
    tpu.vector_store %arg12[%c160_519, %c0_520], %629 {strides = array<i32>} : memref<512x256xbf16, #tpu.memory_space<vmem>>, vector<16x256xbf16>,
    %c4_521 = arith.constant 4 : index
    %c0_522 = arith.constant 0 : index
    %c2_523 = arith.constant 2 : index
    %631 = vector.load %arg11[%c4_521, %c0_522, %c2_523] : memref<6x16x290xbf16, #tpu.memory_space<vmem>>, vector<1x16x256xbf16>
    %632 = vector.shape_cast %631 : vector<1x16x256xbf16> to vector<16x256xbf16>
    %633 = vector.extract_strided_slice %121 {offsets = [1, 0], sizes = [1, 256], strides = [1, 1]} : vector<2x256xbf16> to vector<1x256xbf16>
    %634 = vector.broadcast %633 : vector<1x256xbf16> to vector<16x256xbf16>
    %635 = arith.mulf %632, %634 : vector<16x256xbf16>
    %c176_524 = arith.constant 176 : index
    %c0_525 = arith.constant 0 : index
    %636 = vector.load %arg12[%c176_524, %c0_525] : memref<512x256xbf16, #tpu.memory_space<vmem>>, vector<16x256xbf16>
    tpu.vector_store %arg12[%c176_524, %c0_525], %635 {strides = array<i32>} : memref<512x256xbf16, #tpu.memory_space<vmem>>, vector<16x256xbf16>,
    %c4_526 = arith.constant 4 : index
    %c0_527 = arith.constant 0 : index
    %c16_528 = arith.constant 16 : index
    %637 = vector.load %arg11[%c4_526, %c0_527, %c16_528] : memref<6x16x290xbf16, #tpu.memory_space<vmem>>, vector<1x16x256xbf16>
    %638 = vector.shape_cast %637 : vector<1x16x256xbf16> to vector<16x256xbf16>
    %639 = vector.extract_strided_slice %121 {offsets = [0, 0], sizes = [1, 256], strides = [1, 1]} : vector<2x256xbf16> to vector<1x256xbf16>
    %640 = vector.broadcast %639 : vector<1x256xbf16> to vector<16x256xbf16>
    %641 = arith.mulf %638, %640 : vector<16x256xbf16>
    %c192_529 = arith.constant 192 : index
    %c0_530 = arith.constant 0 : index
    %642 = vector.load %arg12[%c192_529, %c0_530] : memref<512x256xbf16, #tpu.memory_space<vmem>>, vector<16x256xbf16>
    tpu.vector_store %arg12[%c192_529, %c0_530], %641 {strides = array<i32>} : memref<512x256xbf16, #tpu.memory_space<vmem>>, vector<16x256xbf16>,
    %c4_531 = arith.constant 4 : index
    %c0_532 = arith.constant 0 : index
    %c17_533 = arith.constant 17 : index
    %643 = vector.load %arg11[%c4_531, %c0_532, %c17_533] : memref<6x16x290xbf16, #tpu.memory_space<vmem>>, vector<1x16x256xbf16>
    %644 = vector.shape_cast %643 : vector<1x16x256xbf16> to vector<16x256xbf16>
    %c208_534 = arith.constant 208 : index
    %c0_535 = arith.constant 0 : index
    %645 = vector.load %arg12[%c208_534, %c0_535] : memref<512x256xbf16, #tpu.memory_space<vmem>>, vector<16x256xbf16>
    tpu.vector_store %arg12[%c208_534, %c0_535], %644 {strides = array<i32>} : memref<512x256xbf16, #tpu.memory_space<vmem>>, vector<16x256xbf16>,
    %c4_536 = arith.constant 4 : index
    %c0_537 = arith.constant 0 : index
    %c18_538 = arith.constant 18 : index
    %646 = vector.load %arg11[%c4_536, %c0_537, %c18_538] : memref<6x16x290xbf16, #tpu.memory_space<vmem>>, vector<1x16x256xbf16>
    %647 = vector.shape_cast %646 : vector<1x16x256xbf16> to vector<16x256xbf16>
    %648 = vector.extract_strided_slice %121 {offsets = [1, 0], sizes = [1, 256], strides = [1, 1]} : vector<2x256xbf16> to vector<1x256xbf16>
    %649 = vector.broadcast %648 : vector<1x256xbf16> to vector<16x256xbf16>
    %650 = arith.mulf %647, %649 : vector<16x256xbf16>
    %c224_539 = arith.constant 224 : index
    %c0_540 = arith.constant 0 : index
    %651 = vector.load %arg12[%c224_539, %c0_540] : memref<512x256xbf16, #tpu.memory_space<vmem>>, vector<16x256xbf16>
    tpu.vector_store %arg12[%c224_539, %c0_540], %650 {strides = array<i32>} : memref<512x256xbf16, #tpu.memory_space<vmem>>, vector<16x256xbf16>,
    %c4_541 = arith.constant 4 : index
    %c0_542 = arith.constant 0 : index
    %c32_543 = arith.constant 32 : index
    %652 = vector.load %arg11[%c4_541, %c0_542, %c32_543] : memref<6x16x290xbf16, #tpu.memory_space<vmem>>, vector<1x16x256xbf16>
    %653 = vector.shape_cast %652 : vector<1x16x256xbf16> to vector<16x256xbf16>
    %654 = vector.extract_strided_slice %121 {offsets = [0, 0], sizes = [1, 256], strides = [1, 1]} : vector<2x256xbf16> to vector<1x256xbf16>
    %655 = vector.broadcast %654 : vector<1x256xbf16> to vector<16x256xbf16>
    %656 = arith.mulf %653, %655 : vector<16x256xbf16>
    %c240_544 = arith.constant 240 : index
    %c0_545 = arith.constant 0 : index
    %657 = vector.load %arg12[%c240_544, %c0_545] : memref<512x256xbf16, #tpu.memory_space<vmem>>, vector<16x256xbf16>
    tpu.vector_store %arg12[%c240_544, %c0_545], %656 {strides = array<i32>} : memref<512x256xbf16, #tpu.memory_space<vmem>>, vector<16x256xbf16>,
    %c4_546 = arith.constant 4 : index
    %c0_547 = arith.constant 0 : index
    %c33_548 = arith.constant 33 : index
    %658 = vector.load %arg11[%c4_546, %c0_547, %c33_548] : memref<6x16x290xbf16, #tpu.memory_space<vmem>>, vector<1x16x256xbf16>
    %659 = vector.shape_cast %658 : vector<1x16x256xbf16> to vector<16x256xbf16>
    %c256_549 = arith.constant 256 : index
    %c0_550 = arith.constant 0 : index
    %660 = vector.load %arg12[%c256_549, %c0_550] : memref<512x256xbf16, #tpu.memory_space<vmem>>, vector<16x256xbf16>
    tpu.vector_store %arg12[%c256_549, %c0_550], %659 {strides = array<i32>} : memref<512x256xbf16, #tpu.memory_space<vmem>>, vector<16x256xbf16>,
    %c4_551 = arith.constant 4 : index
    %c0_552 = arith.constant 0 : index
    %c34_553 = arith.constant 34 : index
    %661 = vector.load %arg11[%c4_551, %c0_552, %c34_553] : memref<6x16x290xbf16, #tpu.memory_space<vmem>>, vector<1x16x256xbf16>
    %662 = vector.shape_cast %661 : vector<1x16x256xbf16> to vector<16x256xbf16>
    %663 = vector.extract_strided_slice %121 {offsets = [1, 0], sizes = [1, 256], strides = [1, 1]} : vector<2x256xbf16> to vector<1x256xbf16>
    %664 = vector.broadcast %663 : vector<1x256xbf16> to vector<16x256xbf16>
    %665 = arith.mulf %662, %664 : vector<16x256xbf16>
    %c272_554 = arith.constant 272 : index
    %c0_555 = arith.constant 0 : index
    %666 = vector.load %arg12[%c272_554, %c0_555] : memref<512x256xbf16, #tpu.memory_space<vmem>>, vector<16x256xbf16>
    tpu.vector_store %arg12[%c272_554, %c0_555], %665 {strides = array<i32>} : memref<512x256xbf16, #tpu.memory_space<vmem>>, vector<16x256xbf16>,
    %c5_556 = arith.constant 5 : index
    %c0_557 = arith.constant 0 : index
    %c0_558 = arith.constant 0 : index
    %667 = vector.load %arg11[%c5_556, %c0_557, %c0_558] : memref<6x16x290xbf16, #tpu.memory_space<vmem>>, vector<1x16x256xbf16>
    %668 = vector.shape_cast %667 : vector<1x16x256xbf16> to vector<16x256xbf16>
    %669 = vector.extract_strided_slice %121 {offsets = [0, 0], sizes = [1, 256], strides = [1, 1]} : vector<2x256xbf16> to vector<1x256xbf16>
    %670 = vector.broadcast %669 : vector<1x256xbf16> to vector<16x256xbf16>
    %671 = arith.mulf %668, %670 : vector<16x256xbf16>
    %c288_559 = arith.constant 288 : index
    %c0_560 = arith.constant 0 : index
    %672 = vector.load %arg12[%c288_559, %c0_560] : memref<512x256xbf16, #tpu.memory_space<vmem>>, vector<16x256xbf16>
    tpu.vector_store %arg12[%c288_559, %c0_560], %671 {strides = array<i32>} : memref<512x256xbf16, #tpu.memory_space<vmem>>, vector<16x256xbf16>,
    %c5_561 = arith.constant 5 : index
    %c0_562 = arith.constant 0 : index
    %c1_563 = arith.constant 1 : index
    %673 = vector.load %arg11[%c5_561, %c0_562, %c1_563] : memref<6x16x290xbf16, #tpu.memory_space<vmem>>, vector<1x16x256xbf16>
    %674 = vector.shape_cast %673 : vector<1x16x256xbf16> to vector<16x256xbf16>
    %c304_564 = arith.constant 304 : index
    %c0_565 = arith.constant 0 : index
    %675 = vector.load %arg12[%c304_564, %c0_565] : memref<512x256xbf16, #tpu.memory_space<vmem>>, vector<16x256xbf16>
    tpu.vector_store %arg12[%c304_564, %c0_565], %674 {strides = array<i32>} : memref<512x256xbf16, #tpu.memory_space<vmem>>, vector<16x256xbf16>,
    %c5_566 = arith.constant 5 : index
    %c0_567 = arith.constant 0 : index
    %c2_568 = arith.constant 2 : index
    %676 = vector.load %arg11[%c5_566, %c0_567, %c2_568] : memref<6x16x290xbf16, #tpu.memory_space<vmem>>, vector<1x16x256xbf16>
    %677 = vector.shape_cast %676 : vector<1x16x256xbf16> to vector<16x256xbf16>
    %678 = vector.extract_strided_slice %121 {offsets = [1, 0], sizes = [1, 256], strides = [1, 1]} : vector<2x256xbf16> to vector<1x256xbf16>
    %679 = vector.broadcast %678 : vector<1x256xbf16> to vector<16x256xbf16>
    %680 = arith.mulf %677, %679 : vector<16x256xbf16>
    %c320_569 = arith.constant 320 : index
    %c0_570 = arith.constant 0 : index
    %681 = vector.load %arg12[%c320_569, %c0_570] : memref<512x256xbf16, #tpu.memory_space<vmem>>, vector<16x256xbf16>
    tpu.vector_store %arg12[%c320_569, %c0_570], %680 {strides = array<i32>} : memref<512x256xbf16, #tpu.memory_space<vmem>>, vector<16x256xbf16>,
    %c5_571 = arith.constant 5 : index
    %c0_572 = arith.constant 0 : index
    %c16_573 = arith.constant 16 : index
    %682 = vector.load %arg11[%c5_571, %c0_572, %c16_573] : memref<6x16x290xbf16, #tpu.memory_space<vmem>>, vector<1x16x256xbf16>
    %683 = vector.shape_cast %682 : vector<1x16x256xbf16> to vector<16x256xbf16>
    %684 = vector.extract_strided_slice %121 {offsets = [0, 0], sizes = [1, 256], strides = [1, 1]} : vector<2x256xbf16> to vector<1x256xbf16>
    %685 = vector.broadcast %684 : vector<1x256xbf16> to vector<16x256xbf16>
    %686 = arith.mulf %683, %685 : vector<16x256xbf16>
    %c336_574 = arith.constant 336 : index
    %c0_575 = arith.constant 0 : index
    %687 = vector.load %arg12[%c336_574, %c0_575] : memref<512x256xbf16, #tpu.memory_space<vmem>>, vector<16x256xbf16>
    tpu.vector_store %arg12[%c336_574, %c0_575], %686 {strides = array<i32>} : memref<512x256xbf16, #tpu.memory_space<vmem>>, vector<16x256xbf16>,
    %c5_576 = arith.constant 5 : index
    %c0_577 = arith.constant 0 : index
    %c17_578 = arith.constant 17 : index
    %688 = vector.load %arg11[%c5_576, %c0_577, %c17_578] : memref<6x16x290xbf16, #tpu.memory_space<vmem>>, vector<1x16x256xbf16>
    %689 = vector.shape_cast %688 : vector<1x16x256xbf16> to vector<16x256xbf16>
    %c352_579 = arith.constant 352 : index
    %c0_580 = arith.constant 0 : index
    %690 = vector.load %arg12[%c352_579, %c0_580] : memref<512x256xbf16, #tpu.memory_space<vmem>>, vector<16x256xbf16>
    tpu.vector_store %arg12[%c352_579, %c0_580], %689 {strides = array<i32>} : memref<512x256xbf16, #tpu.memory_space<vmem>>, vector<16x256xbf16>,
    %c5_581 = arith.constant 5 : index
    %c0_582 = arith.constant 0 : index
    %c18_583 = arith.constant 18 : index
    %691 = vector.load %arg11[%c5_581, %c0_582, %c18_583] : memref<6x16x290xbf16, #tpu.memory_space<vmem>>, vector<1x16x256xbf16>
    %692 = vector.shape_cast %691 : vector<1x16x256xbf16> to vector<16x256xbf16>
    %693 = vector.extract_strided_slice %121 {offsets = [1, 0], sizes = [1, 256], strides = [1, 1]} : vector<2x256xbf16> to vector<1x256xbf16>
    %694 = vector.broadcast %693 : vector<1x256xbf16> to vector<16x256xbf16>
    %695 = arith.mulf %692, %694 : vector<16x256xbf16>
    %c368_584 = arith.constant 368 : index
    %c0_585 = arith.constant 0 : index
    %696 = vector.load %arg12[%c368_584, %c0_585] : memref<512x256xbf16, #tpu.memory_space<vmem>>, vector<16x256xbf16>
    tpu.vector_store %arg12[%c368_584, %c0_585], %695 {strides = array<i32>} : memref<512x256xbf16, #tpu.memory_space<vmem>>, vector<16x256xbf16>,
    %c5_586 = arith.constant 5 : index
    %c0_587 = arith.constant 0 : index
    %c32_588 = arith.constant 32 : index
    %697 = vector.load %arg11[%c5_586, %c0_587, %c32_588] : memref<6x16x290xbf16, #tpu.memory_space<vmem>>, vector<1x16x256xbf16>
    %698 = vector.shape_cast %697 : vector<1x16x256xbf16> to vector<16x256xbf16>
    %699 = vector.extract_strided_slice %121 {offsets = [0, 0], sizes = [1, 256], strides = [1, 1]} : vector<2x256xbf16> to vector<1x256xbf16>
    %700 = vector.broadcast %699 : vector<1x256xbf16> to vector<16x256xbf16>
    %701 = arith.mulf %698, %700 : vector<16x256xbf16>
    %c384_589 = arith.constant 384 : index
    %c0_590 = arith.constant 0 : index
    %702 = vector.load %arg12[%c384_589, %c0_590] : memref<512x256xbf16, #tpu.memory_space<vmem>>, vector<16x256xbf16>
    tpu.vector_store %arg12[%c384_589, %c0_590], %701 {strides = array<i32>} : memref<512x256xbf16, #tpu.memory_space<vmem>>, vector<16x256xbf16>,
    %c5_591 = arith.constant 5 : index
    %c0_592 = arith.constant 0 : index
    %c33_593 = arith.constant 33 : index
    %703 = vector.load %arg11[%c5_591, %c0_592, %c33_593] : memref<6x16x290xbf16, #tpu.memory_space<vmem>>, vector<1x16x256xbf16>
    %704 = vector.shape_cast %703 : vector<1x16x256xbf16> to vector<16x256xbf16>
    %c400_594 = arith.constant 400 : index
    %c0_595 = arith.constant 0 : index
    %705 = vector.load %arg12[%c400_594, %c0_595] : memref<512x256xbf16, #tpu.memory_space<vmem>>, vector<16x256xbf16>
    tpu.vector_store %arg12[%c400_594, %c0_595], %704 {strides = array<i32>} : memref<512x256xbf16, #tpu.memory_space<vmem>>, vector<16x256xbf16>,
    %c5_596 = arith.constant 5 : index
    %c0_597 = arith.constant 0 : index
    %c34_598 = arith.constant 34 : index
    %706 = vector.load %arg11[%c5_596, %c0_597, %c34_598] : memref<6x16x290xbf16, #tpu.memory_space<vmem>>, vector<1x16x256xbf16>
    %707 = vector.shape_cast %706 : vector<1x16x256xbf16> to vector<16x256xbf16>
    %708 = vector.extract_strided_slice %121 {offsets = [1, 0], sizes = [1, 256], strides = [1, 1]} : vector<2x256xbf16> to vector<1x256xbf16>
    %709 = vector.broadcast %708 : vector<1x256xbf16> to vector<16x256xbf16>
    %710 = arith.mulf %707, %709 : vector<16x256xbf16>
    %c416_599 = arith.constant 416 : index
    %c0_600 = arith.constant 0 : index
    %711 = vector.load %arg12[%c416_599, %c0_600] : memref<512x256xbf16, #tpu.memory_space<vmem>>, vector<16x256xbf16>
    tpu.vector_store %arg12[%c416_599, %c0_600], %710 {strides = array<i32>} : memref<512x256xbf16, #tpu.memory_space<vmem>>, vector<16x256xbf16>,
    %c0_601 = arith.constant 0 : index
    %c0_602 = arith.constant 0 : index
    %712 = vector.load %arg5[%c0_601, %c0_602] : memref<16x512xbf16, #tpu.memory_space<vmem>>, vector<16x512xbf16>
    %c0_603 = arith.constant 0 : index
    %c0_604 = arith.constant 0 : index
    %713 = vector.load %arg12[%c0_603, %c0_604] : memref<512x256xbf16, #tpu.memory_space<vmem>>, vector<512x256xbf16>
    %cst_605 = arith.constant dense<0.000000e+00> : vector<16x256xf32>
    %714 = tpu.matmul %712, %713, %cst_605 {dimension_numbers = #tpu.dot_dimension_numbers<[1], [0], [0], [1], [0, 0, 1, 1], [], []>} : vector<16x512xbf16>, vector<512x256xbf16>, vector<16x256xf32> -> vector<16x256xf32>
    %c3_606 = arith.constant 3 : index
    %c0_607 = arith.constant 0 : index
    %c0_608 = arith.constant 0 : index
    %715 = vector.load %arg8[%c3_606, %c0_607, %c0_608] : memref<4x16x256xf32, #tpu.memory_space<vmem>>, vector<1x16x256xf32>
    %716 = vector.shape_cast %715 : vector<1x16x256xf32> to vector<16x256xf32>
    %717 = arith.addf %714, %716 : vector<16x256xf32>
    %c3_609 = arith.constant 3 : index
    %c0_610 = arith.constant 0 : index
    %c0_611 = arith.constant 0 : index
    %718 = vector.load %arg9[%c3_609, %c0_610, %c0_611] : memref<4x16x256xf32, #tpu.memory_space<vmem>>, vector<1x16x256xf32>
    %719 = vector.shape_cast %718 : vector<1x16x256xf32> to vector<16x256xf32>
    %720 = vector.shape_cast %717 : vector<16x256xf32> to vector<1x16x256xf32>
    tpu.vector_store %arg9[%c3_609, %c0_610, %c0_611], %720 {strides = array<i32>} : memref<4x16x256xf32, #tpu.memory_space<vmem>>, vector<1x16x256xf32>,
    %cst_612 = arith.constant dense<0.000000e+00> : vector<16xf32>
    %721 = vector.multi_reduction <add>, %717, %cst_612 [1] : vector<16x256xf32> to vector<16xf32>
    %722 = vector.shape_cast %721 : vector<16xf32> to vector<16x1xf32>
    %723 = arith.addf %572, %722 : vector<16x1xf32>
    %724 = arith.mulf %717, %717 : vector<16x256xf32>
    %cst_613 = arith.constant dense<0.000000e+00> : vector<16xf32>
    %725 = vector.multi_reduction <add>, %724, %cst_613 [1] : vector<16x256xf32> to vector<16xf32>
    %726 = vector.shape_cast %725 : vector<16xf32> to vector<16x1xf32>
    %727 = arith.addf %576, %726 : vector<16x1xf32>
    %c0_614 = arith.constant 0 : index
    %c0_615 = arith.constant 0 : index
    %c0_616 = arith.constant 0 : index
    %c0_617 = arith.constant 0 : index
    %728 = vector.load %arg10[%c0_614, %c0_615, %c0_616, %c0_617] : memref<1x1x16x2xf32, #tpu.memory_space<vmem>>, vector<1x1x16x1xf32>
    %729 = vector.shape_cast %728 : vector<1x1x16x1xf32> to vector<16x1xf32>
    %730 = vector.shape_cast %723 : vector<16x1xf32> to vector<1x1x16x1xf32>
    tpu.vector_store %arg10[%c0_614, %c0_615, %c0_616, %c0_617], %730 {strides = array<i32>} : memref<1x1x16x2xf32, #tpu.memory_space<vmem>>, vector<1x1x16x1xf32>,
    %c0_618 = arith.constant 0 : index
    %c0_619 = arith.constant 0 : index
    %c0_620 = arith.constant 0 : index
    %c1_621 = arith.constant 1 : index
    %731 = vector.load %arg10[%c0_618, %c0_619, %c0_620, %c1_621] : memref<1x1x16x2xf32, #tpu.memory_space<vmem>>, vector<1x1x16x1xf32>
    %732 = vector.shape_cast %731 : vector<1x1x16x1xf32> to vector<16x1xf32>
    %733 = vector.shape_cast %727 : vector<16x1xf32> to vector<1x1x16x1xf32>
    tpu.vector_store %arg10[%c0_618, %c0_619, %c0_620, %c1_621], %733 {strides = array<i32>} : memref<1x1x16x2xf32, #tpu.memory_space<vmem>>, vector<1x1x16x1xf32>,
    return
  }
  func.func @transform_0(%arg0: i32, %arg1: i32) -> (i32, i32, i32) {
    %c0_i32 = arith.constant 0 : i32
    %c0_i32_0 = arith.constant 0 : i32
    %c0_i32_1 = arith.constant 0 : i32
    %c0_i32_2 = arith.constant 0 : i32
    return %c0_i32, %c0_i32_0, %c0_i32_1 : i32, i32, i32
  }
  func.func @transform_1(%arg0: i32, %arg1: i32) -> (i32, i32, i32) {
    %c0_i32 = arith.constant 0 : i32
    %c0_i32_0 = arith.constant 0 : i32
    %c0_i32_1 = arith.constant 0 : i32
    %c0_i32_2 = arith.constant 0 : i32
    return %c0_i32, %c0_i32_0, %c0_i32_1 : i32, i32, i32
  }
  func.func @transform_2(%arg0: i32, %arg1: i32) -> (i32, i32) {
    %c0_i32 = arith.constant 0 : i32
    %c0_i32_0 = arith.constant 0 : i32
    %c0_i32_1 = arith.constant 0 : i32
    return %c0_i32, %c0_i32_0 : i32, i32
  }
  func.func @transform_3(%arg0: i32, %arg1: i32) -> (i32, i32) {
    %c0_i32 = arith.constant 0 : i32
    %c0_i32_0 = arith.constant 0 : i32
    %c0_i32_1 = arith.constant 0 : i32
    return %c0_i32, %c0_i32_0 : i32, i32
  }
  func.func @transform_4(%arg0: i32, %arg1: i32) -> (i32, i32) {
    %c0_i32 = arith.constant 0 : i32
    %c0_i32_0 = arith.constant 0 : i32
    %c0_i32_1 = arith.constant 0 : i32
    return %c0_i32, %c0_i32_0 : i32, i32
  }
  func.func @transform_5(%arg0: i32, %arg1: i32) -> (i32, i32) {
    %c0_i32 = arith.constant 0 : i32
    %c0_i32_0 = arith.constant 0 : i32
    %c0_i32_1 = arith.constant 0 : i32
    return %c0_i32, %c0_i32_0 : i32, i32
  }
  func.func @transform_6(%arg0: i32, %arg1: i32) -> (i32, i32, i32) {
    %c4_i32 = arith.constant 4 : i32
    %0 = arith.muli %arg0, %c4_i32 : i32
    %1 = arith.addi %0, %arg1 : i32
    %c0_i32 = arith.constant 0 : i32
    %c0_i32_0 = arith.constant 0 : i32
    %c0_i32_1 = arith.constant 0 : i32
    return %1, %c0_i32, %c0_i32_0 : i32, i32, i32
  }
  func.func @transform_7(%arg0: i32, %arg1: i32) -> (i32, i32, i32) {
    %c4_i32 = arith.constant 4 : i32
    %0 = arith.muli %arg0, %c4_i32 : i32
    %1 = arith.addi %0, %arg1 : i32
    %c0_i32 = arith.constant 0 : i32
    %c0_i32_0 = arith.constant 0 : i32
    %c0_i32_1 = arith.constant 0 : i32
    return %1, %c0_i32, %c0_i32_0 : i32, i32, i32
  }
  func.func @transform_8(%arg0: i32, %arg1: i32) -> (i32, i32, i32, i32) {
    %c0_i32 = arith.constant 0 : i32
    %c0_i32_0 = arith.constant 0 : i32
    %c0_i32_1 = arith.constant 0 : i32
    return %arg0, %arg1, %c0_i32, %c0_i32_0 : i32, i32, i32, i32
  }
}

</mosaic_0001>

<bundles_post_ra>
// kernel: _lambda_.1
= control target key start
LH: loop header
LB: loop body
LE: loop exit
PB: predicated region body
PF: predicated region fallthrough
CT: control target
= control target key end

     0   :  { %14 = vsyncpa [#allocation5], 0  ;;  %s5998_s0 = inlined_call_operand.vmem [shape: f32[18,16,290], index: 0, kind: input, shape index: {}]   ;;  %s5999_s1 = inlined_call_operand.vmem [shape: f32[18,1,290], index: 1, kind: input, shape index: {}]   ;;  %s6000_s2 = inlined_call_operand.vmem [shape: bf16[2,256], index: 2, kind: input, shape index: {}]   ;;  %s6001_s3 = inlined_call_operand.vmem [shape: bf16[16,512], index: 3, kind: input, shape index: {}]   ;;  %s6002_s4 = inlined_call_operand.vmem [shape: f32[16,1], index: 4, kind: input, shape index: {}]   ;;  %s6003_s5 = inlined_call_operand.vmem [shape: f32[16,1], index: 5, kind: input, shape index: {}]   ;;  %s6004_s6 = inlined_call_operand.vmem [shape: f32[16,16,256], index: 6, kind: input, shape index: {}]   ;;  %s6005_s7 = inlined_call_operand.hbm [shape: f32[16,16,256], index: 7, kind: output, shape index: {0}]   ;;  %s6006_s8 = inlined_call_operand.vmem [shape: f32[1,4,16,2], index: 8, kind: output, shape index: {1}]  }
   0x1   :  { %16 = vsyncpa [#allocation5 + $0x1], 0  ;;  %s4270_s27 = smov 0   ;;  %s4272_s28 = smov 0  }
   0x2   :  { %s4274_s29 = smov 0   ;;  %s4276_s30 = smov 0  }
   0x3   :  { %s4278_s9 = smov 0   ;;  %s4280_s10 = smov 0  }
   0x4 LB: > { %s3883_s11 = sadd.s32 4294967295, %s4206_s10   ;;  %s3884_s12 = sadd.s32 4294967294, %s4206_s10   ;;  %s4206_s10 = sphi %s4280_s10, %s22_s10   ;;  %s4202_s9 = sphi %s4278_s9, %s6021_s9   ;;  %s4198_s30 = sphi %s4276_s30, %s6020_s30   ;;  %s4194_s29 = sphi %s4274_s29, %s6019_s29   ;;  %s4190_s28 = sphi %s4272_s28, %s6018_s28   ;;  %s4186_s27 = sphi %s4270_s27, %s6017_s27  }
   0x5   : > { %s31_s13 = sadd.s32 1, %s4202_s9  ;;  %s201_s14 = sadd.s32 1, %s4194_s29 }
   0x6   : > { %p32_p0 = scmp.ge.s32.totalorder %s31_s13, 4  ;;  %p211_p1 = scmp.ne.s32.totalorder %s4194_s29, %s4190_s28 }
   0x7   : > { %p212_p2 = scmp.eq.s32.totalorder %s3883_s11, 3  ;;  %p217_p3 = scmp.ne.s32.totalorder %s4190_s28, %s4186_s27 }
   0x8   : > { %s6023_s13 = smov (%p32_p0, %s31_s13), 0  ;;  %p218_p5 = scmp.eq.s32.totalorder %s3884_s12, 3 }
   0x9   : > { %p4310_p4 = por %p212_p2, %p211_p1  ;;  %s198_s16 = ssub.s32 %s4202_s9, %s6023_s13 }
   0xa   : > { %p3887_p6 = scmp.ge.s32.totalorder %s4206_s10, 1  ;;  %p199_p7 = scmp.eq.s32.totalorder %s198_s16, 0 }
   0xb   : > { %p4317_p8 = por %p218_p5, %p217_p3  ;;  %p296_p9 = scmp.lt.s32.totalorder %s4206_s10, 5 }
   0xc   : > { %s4323_s18 = scalar_select %p199_p7, %s4194_s29, %s201_s14  }
   0xd   : > { %p297_p10 = pnand %p3887_p6, %p296_p9 }
   0xf   : > { %300 = sbr.rel (%p297_p10) target bundleno = 1238 (0x4d6), region = 48 }
  0x16   : > { %v381_v0 = vld [vmem:[%s6003_s5] sm:$0xff]  ;;  %v434_v2 = vlaneseq  ;;  %v4208_v3 = vmov 0   ;;  %v382_v4 = vld [vmem:[%s6003_s5 + $0x8] sm:$0xff]  ;;  %v4209_v7 = vmov 1966171168   ;;  %s4210_s14 = smov 16  }
  0x17   : > { %v379_v1 = vld [vmem:[%s6002_s4] sm:$0xff]  ;;  %4109 = vset.pattern.permute.xlu1 %v4208_v3  ;;  %4108 = vset.pattern.permute.xlu0 %v4208_v3  ;;  %v380_v5 = vld [vmem:[%s6002_s4 + $0x8] sm:$0xff]  ;;  %v775_v8 = vunpack.c.l.s4 %v4209_v7  ;;  %s4211_s16 = smov 2   ;;  %s4212_s19 = smov 18   ;;  %vm460_vm0 = vcmask 277504   ;;  %vm881_vm1 = vcmask 130048  }
  0x18   : > { %v3953_v6 = vld.sshfl [vmem:[%s6000_s2] sm:$0x11 pattern:$0x75316420]  ;;  %410 = vperm.xlu1 %4109, %v381_v0   ;;  %394 = vperm.xlu0 %4108, %v379_v1   ;;  %v435_v9 = vshrl.u32 %v434_v2, 7  ;;  %s4213_s20 = smov 32  }
  0x19   : > { %v773_v10 = vcombine.high %v3953_v6, %v3953_v6  ;;  %v776_v11 = vunpack.c.0.s8 %v775_v8  ;;  %s4214_s21 = smov 34   ;;  %s3897_s22 = smul.u32 12, %s4198_s30  ;;  %vm848_vm2 = vcmask 15360   ;;  %vm931_vm3 = vcmask 146432  }
  0x1a   : > { %v4340_v13 = vsub.s32 0, %v435_v9  ;;  %s4002_s23 = smul.u32 192, %s4198_s30  ;;  %v4368_v26 = vsub.s32 1, %v435_v9  ;;  %v4371_v28 = vsub.s32 2, %v435_v9  ;;  %s4220_s24 = smov 110   ;;  %vm962_vm4 = vcmask 261120  }
  0x1b   : > { %v779_v12 = vsub.s32 %v776_v11, %v435_v9  ;;  %s4361_s26 = scalar_lea.vmem %s5999_s1, %s3897_s22  ;;  %s4218_s22 = smov 126   ;;  %vm818_vm5 = vcmask 1039360   ;;  %vm865_vm6 = vcmask 1031168   ;;  %vm898_vm7 = vcmask 916480  }
  0x1c   : > { %415 = vperm.xlu1 %4109, %v382_v4   ;;  %399 = vperm.xlu0 %4108, %v380_v5   ;;  %v432_v27 = vld [vmem:[%s4361_s26] sm:$0x7]  ;;  %v3908_v31 = vld [vmem:[%s4361_s26 + $0x3] sm:$0x7]  ;;  %v4409_v50 = vld [vmem:[%s4361_s26 + $0x6] sm:$0x7] }
  0x1d   : > { %v787_v14 = vrot.slane %v773_v10, %v779_v12  ;;  %v780_v15 = vrot.slane %v3953_v6, %v779_v12  ;;  %v4380_v35 = vrot.slane %v432_v27, %v4368_v26  ;;  %v4383_v36 = vrot.slane %v432_v27, %v4340_v13  ;;  %s4221_s25 = smov 96  }
  0x1e   : > { %v4393_v42 = vrot.slane %v3908_v31, %v4368_v26  ;;  %v4396_v43 = vrot.slane %v3908_v31, %v4340_v13  ;;  %v4399_v44 = vrot.slane %v432_v27, %v4371_v28  ;;  %v4402_v45 = vrot.slane %v3908_v31, %v4371_v28 }
  0x1f   : > { %v796_v16 = vpack.i.b16 %v787_v14, %v787_v14  ;;  %v789_v17 = vpack.i.b16 %v780_v15, %v780_v15  ;;  %v828_v18 = vshrl.u32 %v780_v15, 16  ;;  %v835_v19 = vshrl.u32 %v787_v14, 16 }
  0x20   : > { %v4434_v4 = vrot.slane %v4409_v50, %v4368_v26  ;;  %vm917_vm8 = vcmask 908288   ;;  %vm948_vm9 = vcmask 900096   ;;  %vm979_vm10 = vcmask 785408  }
  0x21   : > { %v4343_v20 = vrot.slane %v796_v16, %v4340_v13  ;;  %v4346_v21 = vrot.slane %v789_v17, %v4340_v13  ;;  %v829_v22 = vpack.i.b16 %v828_v18, %v828_v18  ;;  %v836_v23 = vpack.i.b16 %v835_v19, %v835_v19 }
  0x22   : > { %vm998_vm11 = vcmask 777216   ;;  %vm1029_vm12 = vcmask 769024  }
  0x23   : > { %879 = vrot.lane.b32.xlu1 %v4343_v20, %s4210_s14  ;;  %877 = vrot.lane.b32.xlu0 %v4346_v21, %s4210_s14  ;;  %v834_v24 = vrot.slane %v829_v22, %v4340_v13  ;;  %v841_v25 = vrot.slane %v836_v23, %v4340_v13 }
  0x27   : > { %844 = vrot.lane.b32.xlu1 %v834_v24, %s4211_s16  ;;  %846 = vrot.lane.b32.xlu0 %v841_v25, %s4211_s16  ;;  %s4366_s16 = scalar_lea.vmem %s5998_s0, %s4002_s23  ;;  %s4219_s23 = smov 112  }
  0x28   : > { %v387_v29 = vld [vmem:[%s4366_s16 + $0x8] sm:$0xff]  ;;  %v386_v30 = vld [vmem:[%s4366_s16] sm:$0xff]  ;;  %v3901_v32 = vld [vmem:[%s4366_s16 + $0x38] sm:$0xff] }
  0x29   : > { %v3900_v33 = vld [vmem:[%s4366_s16 + $0x30] sm:$0xff]  ;;  %v3902_v37 = vld [vmem:[%s4366_s16 + $0x40] sm:$0xff]  ;;  %v3912_v38 = vld [vmem:[%s4366_s16 + $0x68] sm:$0xff] }
  0x2a   : > { %v388_v34 = vld [vmem:[%s4366_s16 + $0x10] sm:$0xff]  ;;  %v3911_v39 = vld [vmem:[%s4366_s16 + $0x60] sm:$0xff]  ;;  %v389_v52 = vld [vmem:[%s4366_s16 + $0x18] sm:$0xff] }
  0x2b   : > { %929 = vrot.lane.b32.xlu1 %v841_v25, %s4212_s19  ;;  %927 = vrot.lane.b32.xlu0 %v834_v24, %s4212_s19  ;;  %v390_v51 = vld [vmem:[%s4366_s16 + $0x20] sm:$0xff]  ;;  %v3904_v59 = vld [vmem:[%s4366_s16 + $0x50] sm:$0xff]  ;;  %s4215_s19 = smov 127  }
  0x2c   : > { %v3903_v61 = vld [vmem:[%s4366_s16 + $0x48] sm:$0xff]  ;;  %v3905_v19 = vld [vmem:[%s4366_s16 + $0x58] sm:$0xff] }
  0x2d   : > { %v391_v12 = vld [vmem:[%s4366_s16 + $0x28] sm:$0xff] }
  0x2f   : > { %958 = vrot.lane.b32.xlu1 %v4346_v21, %s4213_s20  ;;  %960 = vrot.lane.b32.xlu0 %v4343_v20, %s4213_s20  ;;  %s4216_s20 = smov 111  }
  0x33   : > { %1008 = vrot.lane.b32.xlu1 %v834_v24, %s4214_s21  ;;  %1010 = vrot.lane.b32.xlu0 %v841_v25, %s4214_s21  ;;  %s4217_s21 = smov 95  }
  0x97   : > { %v4388_v40 = vpop.permute.xlu1 %410  ;;  %v4390_v41 = vpop.permute.xlu0 %394 }
  0x98   : > { %v403_v46 = vmul.f32 %v4390_v41, %v387_v29  ;;  %v402_v47 = vmul.f32 %v4390_v41, %v386_v30  ;;  %v473_v48 = vmul.f32 %v3901_v32, %v4390_v41  ;;  %v472_v49 = vmul.f32 %v3900_v33, %v4390_v41 }
  0x99   : > { %v404_v53 = vmul.f32 %v4390_v41, %v388_v34  ;;  %v474_v54 = vmul.f32 %v3902_v37, %v4390_v41  ;;  %v533_v55 = vmul.f32 %v3912_v38, %v4390_v41  ;;  %v532_v56 = vmul.f32 %v3911_v39, %v4390_v41 }
  0x9a   : > { %v419_v57 = vadd.f32 %v4388_v40, %v403_v46  ;;  %v418_v58 = vadd.f32 %v4388_v40, %v402_v47  ;;  %v479_v60 = vadd.f32 %v473_v48, %v4388_v40  ;;  %v478_v62 = vadd.f32 %v472_v49, %v4388_v40  ;;  %v3915_v46 = vld [vmem:[%s4366_s16 + $0x80] sm:$0xff] }
  0x9b   : > { %v4423_v63 = vpop.permute.xlu1 %415  ;;  %v4425_v0 = vpop.permute.xlu0 %399  ;;  %v420_v1 = vadd.f32 %v4388_v40, %v404_v53  ;;  %v480_v2 = vadd.f32 %v474_v54, %v4388_v40  ;;  %v4430_v3 = vadd.f32 %v533_v55, %v4388_v40  ;;  %v4442_v14 = vadd.f32 %v532_v56, %v4388_v40 }
  0x9c   : > { %v406_v5 = vmul.f32 %v4425_v0, %v390_v51  ;;  %v425_v6 = vmax.f32 %v419_v57, 0.0  ;;  %v405_v7 = vmul.f32 %v4425_v0, %v389_v52  ;;  %v424_v8 = vmax.f32 %v418_v58, 0.0 }
  0x9d   : > { %v476_v9 = vmul.f32 %v3904_v59, %v4425_v0  ;;  %v485_v10 = vmax.f32 %v479_v60, 0.0  ;;  %v475_v11 = vmul.f32 %v3903_v61, %v4425_v0  ;;  %v484_v18 = vmax.f32 %v478_v62, 0.0  ;;  %v3914_v62 = vld [vmem:[%s4366_s16 + $0x78] sm:$0xff] }
  0x9e   : > { %v422_v15 = vadd.f32 %v4423_v63, %v406_v5  ;;  %v450_v16 = vmul.f32 %v4380_v35, %v425_v6  ;;  %v421_v17 = vadd.f32 %v4423_v63, %v405_v7  ;;  %v449_v24 = vmul.f32 %v4383_v36, %v424_v8  ;;  %v3913_v7 = vld [vmem:[%s4366_s16 + $0x70] sm:$0xff]  ;;  %v3916_v8 = vld [vmem:[%s4366_s16 + $0x88] sm:$0xff] }
  0x9f   : > { %v4448_v22 = vpop.permute.xlu1 %879  ;;  %v4450_v23 = vpop.permute.xlu0 %877  ;;  %v482_v25 = vadd.f32 %v476_v9, %v4423_v63  ;;  %v510_v27 = vmul.f32 %v4393_v42, %v485_v10  ;;  %v481_v29 = vadd.f32 %v475_v11, %v4423_v63  ;;  %v407_v32 = vmul.f32 %v4425_v0, %v391_v12 }
  0xa0   : > { %v428_v30 = vmax.f32 %v422_v15, 0.0  ;;  %v427_v31 = vmax.f32 %v421_v17, 0.0  ;;  %v426_v33 = vmax.f32 %v420_v1, 0.0  ;;  %v477_v38 = vmul.f32 %v3905_v19, %v4425_v0 }
  0xa1   : > { %v488_v34 = vmax.f32 %v482_v25, 0.0  ;;  %v487_v37 = vmax.f32 %v481_v29, 0.0  ;;  %v486_v39 = vmax.f32 %v480_v2, 0.0  ;;  %v509_v49 = vmul.f32 %v4396_v43, %v484_v18 }
  0xa2   : > { %v453_v47 = vmul.f32 %v4380_v35, %v428_v30  ;;  %v452_v48 = vmul.f32 %v4383_v36, %v427_v31  ;;  %v423_v51 = vadd.f32 %v4423_v63, %v407_v32  ;;  %v451_v56 = vmul.f32 %v4399_v44, %v426_v33 }
  0xa3   : > { %v4463_v52 = vpop.permute.xlu1 %844  ;;  %v4465_v53 = vpop.permute.xlu0 %846  ;;  %v513_v54 = vmul.f32 %v4393_v42, %v488_v34  ;;  %v512_v55 = vmul.f32 %v4396_v43, %v487_v37  ;;  %v483_v57 = vadd.f32 %v477_v38, %v4423_v63  ;;  %v536_v59 = vmul.f32 %v3915_v46, %v4425_v0 }
  0xa4   : > { %v4471_v35 = vpack.c.bf16 %v453_v47, %v450_v16  ;;  %v4473_v36 = vpack.c.bf16 %v452_v48, %v449_v24  ;;  %v429_v58 = vmax.f32 %v423_v51, 0.0  ;;  %v511_v43 = vmul.f32 %v4402_v45, %v486_v39 }
  0xa5   : > { %v4476_v60 = vpack.c.bf16 %v513_v54, %v510_v27  ;;  %v4478_v61 = vpack.c.bf16 %v512_v55, %v509_v49  ;;  %v489_v42 = vmax.f32 %v483_v57, 0.0  ;;  %v545_v6 = vmax.f32 %v4430_v3, 0.0 }
  0xa6   : > { %814 = vrot.lane.b32.xlu1 %v4471_v35, %s4215_s19  ;;  %812 = vrot.lane.b32.xlu0 %v4473_v36, %s4215_s19  ;;  %v803_v1 = vmul.bf16 %v4343_v20, %v4471_v35  ;;  %v802_v2 = vmul.bf16 %v4346_v21, %v4473_v36  ;;  %v454_v5 = vmul.f32 %v4399_v44, %v429_v58  ;;  %v544_v25 = vmax.f32 %v4442_v14, 0.0 }
  0xa7   : > { %v4494_v9 = vpop.permute.xlu1 %929  ;;  %v4496_v10 = vpop.permute.xlu0 %927  ;;  %v4500_v11 = vmul.bf16 %v4343_v20, %v4476_v60  ;;  %v4504_v12 = vmul.bf16 %v4346_v21, %v4478_v61  ;;  %v514_v15 = vmul.f32 %v4402_v45, %v489_v42  ;;  %v542_v44 = vadd.f32 %v536_v59, %v4423_v63  ;;  %v3923_v59 = vld [vmem:[%s4366_s16 + $0x98] sm:$0xff]  ;;  %v3926_v42 = vld [vmem:[%s4366_s16 + $0xb0] sm:$0xff] }
  0xa8   : > { %6011 = vst [vmem:[#allocation7_spill] sm:$0xff] %v4494_v9  ;;  %1458 = vmatprep.subr.bf16.mxu0 %v803_v1  ;;  %v457_v3 = vpack.c.bf16 %v454_v5, %v451_v56  ;;  %v535_v16 = vmul.f32 %v3914_v62, %v4425_v0  ;;  %v534_v19 = vmul.f32 %v3913_v7, %v4390_v41  ;;  %v3925_v62 = vld [vmem:[%s4366_s16 + $0xa8] sm:$0xff]  ;;  %v3924_v1 = vld [vmem:[%s4366_s16 + $0xa0] sm:$0xff] }
  0xa9   : > { %2156 = vmatprep.subr.bf16.mxu1 %v4500_v11  ;;  %1459 = vmatpush1.bf16.msra.mxu0 %v802_v2  ;;  %v517_v17 = vpack.c.bf16 %v514_v15, %v511_v43  ;;  %v548_v18 = vmax.f32 %v542_v44, 0.0  ;;  %v537_v24 = vmul.f32 %v3916_v8, %v4425_v0  ;;  %v557_v27 = vrot.slane %v4409_v50, %v4340_v13  ;;  %v3922_v43 = vld [vmem:[%s4366_s16 + $0x90] sm:$0xff]  ;;  %v3927_v15 = vld [vmem:[%s4366_s16 + $0xb8] sm:$0xff] }
  0xaa   : > { %2157 = vmatpush1.bf16.msra.mxu1 %v4504_v12  ;;  %911 = vrot.lane.b32.xlu1 %v4473_v36, %s4216_s20  ;;  %461 = vst.msk [vmem:[#allocation2 + $0x10] sm:$0xff] %vm460_vm0, %v457_v3  ;;  %v541_v45 = vadd.f32 %v535_v16, %v4423_v63  ;;  %v565_v29 = vrot.slane %v4409_v50, %v4371_v28 }
  0xab   : > { %v4522_v30 = vpop.permute.xlu1 %958  ;;  %v4524_v31 = vpop.permute.xlu0 %960  ;;  %521 = vst.msk [vmem:[#allocation2 + $0x28] sm:$0xff] %vm460_vm0, %v517_v17  ;;  %v570_v32 = vmul.f32 %v4434_v4, %v545_v6  ;;  %v573_v33 = vmul.f32 %v4434_v4, %v548_v18  ;;  %v540_v34 = vadd.f32 %v534_v19, %v4388_v40  ;;  %v543_v14 = vadd.f32 %v537_v24, %v4423_v63  ;;  %v3930_v6 = vld [vmem:[%s4361_s26 + $0x9] sm:$0x7] }
  0xac   : > { %v547_v37 = vmax.f32 %v541_v45, 0.0  ;;  %v569_v50 = vmul.f32 %v557_v27, %v544_v25  ;;  %v593_v2 = vmul.f32 %v3923_v59, %v4390_v41  ;;  %v596_v5 = vmul.f32 %v3926_v42, %v4425_v0 }
  0xad   : > { %v4531_v38 = vpack.c.bf16 %v573_v33, %v570_v32  ;;  %v546_v39 = vmax.f32 %v540_v34, 0.0  ;;  %v549_v46 = vmax.f32 %v543_v14, 0.0  ;;  %v592_v7 = vmul.f32 %v3922_v43, %v4390_v41 }
  0xae   : > { %v572_v47 = vmul.f32 %v557_v27, %v547_v37  ;;  %v595_v8 = vmul.f32 %v3925_v62, %v4425_v0  ;;  %v594_v44 = vmul.f32 %v3924_v1, %v4390_v41  ;;  %v599_v3 = vadd.f32 %v593_v2, %v4388_v40  ;;  %v3934_v1 = vld [vmem:[%s4366_s16 + $0xc8] sm:$0xff]  ;;  %v3937_v2 = vld [vmem:[%s4366_s16 + $0xe0] sm:$0xff] }
  0xaf   : > { %v4533_v48 = vpop.permute.xlu1 %1008  ;;  %v4535_v49 = vpop.permute.xlu0 %1010  ;;  %580 = vst [vmem:[#allocation2 + $0x38] sm:$0xff] %v4531_v38  ;;  %v571_v4 = vmul.f32 %v565_v29, %v546_v39  ;;  %v574_v51 = vmul.f32 %v565_v29, %v549_v46  ;;  %v602_v16 = vadd.f32 %v596_v5, %v4423_v63  ;;  %v621_v17 = vrot.slane %v3930_v6, %v4368_v26  ;;  %v3933_v5 = vld [vmem:[%s4366_s16 + $0xc0] sm:$0xff] }
  0xb0   : > { %v4538_v54 = vpack.c.bf16 %v572_v47, %v569_v50  ;;  %v4543_v55 = vsel %vm460_vm0, %v4533_v48, %v4535_v49  ;;  %v598_v18 = vadd.f32 %v592_v7, %v4388_v40  ;;  %v601_v19 = vadd.f32 %v595_v8, %v4423_v63  ;;  %v3935_v7 = vld [vmem:[%s4366_s16 + $0xd0] sm:$0xff]  ;;  %v3938_v8 = vld [vmem:[%s4366_s16 + $0xe8] sm:$0xff] }
  0xb1   : > { %v4545_v56 = vld [vmem:[#allocation2 + $0x10] sm:$0xff]  ;;  %v577_v57 = vpack.c.bf16 %v574_v51, %v571_v4  ;;  %v1018_v58 = vmul.bf16 %v4543_v55, %v4471_v35  ;;  %v617_v24 = vrot.slane %v3930_v6, %v4340_v13  ;;  %v597_v45 = vmul.f32 %v3927_v15, %v4425_v0  ;;  %v3941_v15 = vld [vmem:[%s4361_s26 + $0xc] sm:$0x7] }
  0xb2   : > { %816 = vrot.lane.b32.xlu0 %v4545_v56, %s4215_s19  ;;  %915 = vrot.lane.b32.xlu1 %v4545_v56, %s4216_s20  ;;  %579 = vst [vmem:[#allocation2 + $0x30] sm:$0xff] %v4538_v54  ;;  %v600_v25 = vadd.f32 %v594_v44, %v4388_v40  ;;  %v605_v27 = vmax.f32 %v599_v3, 0.0  ;;  %v608_v29 = vmax.f32 %v602_v16, 0.0  ;;  %v604_v32 = vmax.f32 %v598_v18, 0.0  ;;  %v4589_v50 = vld [vmem:[#allocation2 + $0x28] sm:$0xff] }
  0xb3   : > { %581 = vst.msk [vmem:[#allocation2 + $0x40] sm:$0xff] %vm460_vm0, %v577_v57  ;;  %v607_v33 = vmax.f32 %v601_v19, 0.0  ;;  %v603_v34 = vadd.f32 %v597_v45, %v4423_v63  ;;  %v625_v37 = vrot.slane %v3930_v6, %v4371_v28  ;;  %v3936_v6 = vld [vmem:[%s4366_s16 + $0xd8] sm:$0xff]  ;;  %v653_v44 = vmul.f32 %v3934_v1, %v4390_v41 }
  0xb4   : > { %v606_v14 = vmax.f32 %v600_v25, 0.0  ;;  %v630_v39 = vmul.f32 %v621_v17, %v605_v27  ;;  %v633_v46 = vmul.f32 %v621_v17, %v608_v29  ;;  %v629_v47 = vmul.f32 %v617_v24, %v604_v32 }
  0xb5   : > { %v632_v4 = vmul.f32 %v617_v24, %v607_v33  ;;  %v609_v51 = vmax.f32 %v603_v34, 0.0  ;;  %v656_v3 = vmul.f32 %v3937_v2, %v4425_v0  ;;  %v652_v16 = vmul.f32 %v3933_v5, %v4390_v41 }
  0xb6   : > { %913 = vrot.lane.b32.xlu0 %v4471_v35, %s4216_s20  ;;  %994 = vrot.lane.b32.xlu1 %v4471_v35, %s4217_s21  ;;  %v4595_v57 = vpack.c.bf16 %v633_v46, %v630_v39  ;;  %v631_v42 = vmul.f32 %v625_v37, %v606_v14  ;;  %v655_v17 = vmul.f32 %v3936_v6, %v4425_v0  ;;  %v3945_v6 = vld [vmem:[%s4366_s16 + $0xf8] sm:$0xff] }
  0xb7   : > { %v4597_v59 = vpack.c.bf16 %v632_v4, %v629_v47  ;;  %v634_v43 = vmul.f32 %v625_v37, %v609_v51  ;;  %v654_v18 = vmul.f32 %v3935_v7, %v4390_v41  ;;  %v657_v19 = vmul.f32 %v3938_v8, %v4425_v0 }
  0xb8   : > { %640 = vst [vmem:[#allocation2 + $0x50] sm:$0xff] %v4595_v57  ;;  %v659_v24 = vadd.f32 %v653_v44, %v4388_v40  ;;  %v662_v45 = vadd.f32 %v656_v3, %v4423_v63  ;;  %v681_v25 = vrot.slane %v3941_v15, %v4368_v26  ;;  %v658_v27 = vadd.f32 %v652_v16, %v4388_v40 }
  0xb9   : > { %639 = vst [vmem:[#allocation2 + $0x48] sm:$0xff] %v4597_v59  ;;  %v637_v62 = vpack.c.bf16 %v634_v43, %v631_v42  ;;  %v661_v29 = vadd.f32 %v655_v17, %v4423_v63  ;;  %v660_v32 = vadd.f32 %v654_v18, %v4388_v40  ;;  %v663_v33 = vadd.f32 %v657_v19, %v4423_v63  ;;  %v3952_v17 = vld [vmem:[%s4361_s26 + $0xf] sm:$0x7]  ;;  %s4222_s26 = smov 94  }
  0xba   : > { %992 = vrot.lane.b32.xlu0 %v4473_v36, %s4217_s21  ;;  %1050 = vrot.lane.b32.xlu1 %v4476_v60, %s4215_s19  ;;  %v665_v34 = vmax.f32 %v659_v24, 0.0  ;;  %v668_v14 = vmax.f32 %v662_v45, 0.0  ;;  %v664_v37 = vmax.f32 %v658_v27, 0.0  ;;  %v677_v39 = vrot.slane %v3941_v15, %v4340_v13  ;;  %v4636_v42 = vld [vmem:[#allocation2 + $0x40] sm:$0xff]  ;;  %v3948_v19 = vld [vmem:[%s4366_s16 + $0x110] sm:$0xff]  ;;  %v3947_v45 = vld [vmem:[%s4366_s16 + $0x108] sm:$0xff] }
  0xbb   : > { %641 = vst.msk [vmem:[#allocation2 + $0x58] sm:$0xff] %vm460_vm0, %v637_v62  ;;  %v685_v46 = vrot.slane %v3941_v15, %v4371_v28  ;;  %v667_v51 = vmax.f32 %v661_v29, 0.0  ;;  %v666_v43 = vmax.f32 %v660_v32, 0.0  ;;  %v669_v62 = vmax.f32 %v663_v33, 0.0  ;;  %v3944_v24 = vld [vmem:[%s4366_s16 + $0xf0] sm:$0xff]  ;;  %v3949_v32 = vld [vmem:[%s4366_s16 + $0x118] sm:$0xff] }
  0xbc   : > { %v690_v47 = vmul.f32 %v681_v25, %v665_v34  ;;  %v693_v4 = vmul.f32 %v681_v25, %v668_v14  ;;  %v689_v2 = vmul.f32 %v677_v39, %v664_v37  ;;  %v853_v15 = vmul.bf16 %v4463_v52, %v4473_v36  ;;  %v3946_v25 = vld [vmem:[%s4366_s16 + $0x100] sm:$0xff] }
  0xbd   : > { %v692_v5 = vmul.f32 %v677_v39, %v667_v51  ;;  %v691_v7 = vmul.f32 %v685_v46, %v666_v43  ;;  %v694_v8 = vmul.f32 %v685_v46, %v669_v62  ;;  %v713_v16 = vmul.f32 %v3945_v6, %v4390_v41 }
  0xbe   : > { %996 = vrot.lane.b32.xlu0 %v4545_v56, %s4217_s21  ;;  %1108 = vrot.lane.b32.xlu1 %v4478_v61, %s4216_s20  ;;  %v696_v1 = vpack.c.bf16 %v693_v4, %v690_v47  ;;  %v4652_v18 = vsel %vm881_vm1, %v4450_v23, %v4448_v22  ;;  %v855_v27 = vmul.bf16 %v4465_v53, %v4545_v56 }
  0xbf   : > { %v695_v44 = vpack.c.bf16 %v692_v5, %v689_v2  ;;  %v697_v3 = vpack.c.bf16 %v694_v8, %v691_v7  ;;  %v741_v29 = vrot.slane %v3952_v17, %v4368_v26  ;;  %v887_v33 = vmul.bf16 %v4652_v18, %v4471_v35 }
  0xc0   : > { %700 = vst [vmem:[#allocation2 + $0x68] sm:$0xff] %v696_v1  ;;  %v716_v34 = vmul.f32 %v3948_v19, %v4425_v0  ;;  %v719_v14 = vadd.f32 %v713_v16, %v4388_v40  ;;  %v737_v37 = vrot.slane %v3952_v17, %v4340_v13  ;;  %v712_v39 = vmul.f32 %v3944_v24, %v4390_v41 }
  0xc1   : > { %699 = vst [vmem:[#allocation2 + $0x60] sm:$0xff] %v695_v44  ;;  %701 = vst.msk [vmem:[#allocation2 + $0x70] sm:$0xff] %vm460_vm0, %v697_v3  ;;  %v715_v46 = vmul.f32 %v3947_v45, %v4425_v0  ;;  %v714_v26 = vmul.f32 %v3946_v25, %v4390_v41  ;;  %v4676_v47 = vsel %vm848_vm2, %v4463_v52, %v4465_v53 }
  0xc2   : > { %1048 = vrot.lane.b32.xlu0 %v4478_v61, %s4215_s19  ;;  %1112 = vrot.lane.b32.xlu1 %v4589_v50, %s4216_s20  ;;  %v4680_v4 = vsel %vm931_vm3, %v4496_v10, %v4494_v9  ;;  %v722_v13 = vadd.f32 %v716_v34, %v4423_v63  ;;  %v717_v51 = vmul.f32 %v3949_v32, %v4425_v0  ;;  %v725_v43 = vmax.f32 %v719_v14, 0.0 }
  0xc3   : > { %v718_v62 = vadd.f32 %v712_v39, %v4388_v40  ;;  %v721_v1 = vadd.f32 %v715_v46, %v4423_v63  ;;  %v720_v2 = vadd.f32 %v714_v26, %v4388_v40  ;;  %v745_v6 = vrot.slane %v3952_v17, %v4371_v28 }
  0xc4   : > { %v728_v41 = vmax.f32 %v722_v13, 0.0  ;;  %v723_v5 = vadd.f32 %v717_v51, %v4423_v63  ;;  %v937_v40 = vmul.bf16 %v4680_v4, %v4471_v35  ;;  %v750_v44 = vmul.f32 %v741_v29, %v725_v43 }
  0xc5   : > { %v724_v7 = vmax.f32 %v718_v62, 0.0  ;;  %v727_v0 = vmax.f32 %v721_v1, 0.0  ;;  %v726_v8 = vmax.f32 %v720_v2, 0.0  ;;  %v886_v25 = vmul.bf16 %v4450_v23, %v4473_v36 }
  0xc6   : > { %1052 = vrot.lane.b32.xlu0 %v4589_v50, %s4215_s19  ;;  %1170 = vrot.lane.b32.xlu1 %v4476_v60, %s4217_s21  ;;  %v753_v3 = vmul.f32 %v741_v29, %v728_v41  ;;  %v729_v28 = vmax.f32 %v723_v5, 0.0  ;;  %v888_v32 = vmul.bf16 %v4448_v22, %v4545_v56  ;;  %v936_v34 = vmul.bf16 %v4496_v10, %v4473_v36 }
  0xc7   : > { %v749_v63 = vmul.f32 %v737_v37, %v724_v7  ;;  %v752_v16 = vmul.f32 %v737_v37, %v727_v0  ;;  %v751_v17 = vmul.f32 %v745_v6, %v726_v8  ;;  %v1017_v14 = vmul.bf16 %v4533_v48, %v4473_v36  ;;  %v4112_v0 = vld [vmem:[%s6001_s3 + $0x4] ss:$16 sps:$4 sm:$0xff]  }
  0xc8   : > { %v756_v19 = vpack.c.bf16 %v753_v3, %v750_v44  ;;  %v754_v45 = vmul.f32 %v745_v6, %v729_v28  ;;  %v938_v37 = vmul.bf16 %v4494_v9, %v4545_v56  ;;  %v1019_v39 = vmul.bf16 %v4535_v49, %v4545_v56  ;;  %1490 = vmatprep.mubr.bf16.mxu0 %v4112_v0 }
  0xc9   : > { %v755_v24 = vpack.c.bf16 %v752_v16, %v749_v63  ;;  %v4723_v46 = vsel %vm962_vm4, %v4522_v30, %v4524_v31  ;;  %v4731_v26 = vmul.bf16 %v4463_v52, %v4478_v61  ;;  %v4748_v13 = vmul.bf16 %v4676_v47, %v4476_v60  ;;  %2188 = vmatprep.mubr.bf16.mxu1 %v4112_v0 }
  0xca   : > { %1110 = vrot.lane.b32.xlu0 %v4476_v60, %s4216_s20  ;;  %1215 = vrot.lane.b32.xlu1 %v4531_v38, %s4215_s19  ;;  %760 = vst [vmem:[#allocation2 + $0x80] sm:$0xff] %v756_v19  ;;  %v757_v29 = vpack.c.bf16 %v754_v45, %v751_v17  ;;  %v4752_v51 = vmul.bf16 %v4652_v18, %v4476_v60 }
  0xcb   : > { %759 = vst [vmem:[#allocation2 + $0x78] sm:$0xff] %v755_v24  ;;  %v4772_v43 = vmul.bf16 %v4589_v50, %v4448_v22  ;;  %v4776_v62 = vmul.bf16 %v4522_v30, %v4478_v61  ;;  %v4784_v1 = vmul.bf16 %v4496_v10, %v4478_v61  ;;  %v4788_v2 = vmul.bf16 %v4589_v50, %v4524_v31 }
  0xcc   : > { %761 = vst.msk [vmem:[#allocation2 + $0x88] sm:$0xff] %vm460_vm0, %v757_v29  ;;  %v4796_v41 = vmul.bf16 %v4589_v50, %v4494_v9  ;;  %v4800_v5 = vmul.bf16 %v4533_v48, %v4478_v61  ;;  %v4808_v6 = vmul.bf16 %v4723_v46, %v4476_v60  ;;  %v4812_v7 = vmul.bf16 %v4589_v50, %v4535_v49 }
  0xcd   : > { %v4823_v8 = vmul.bf16 %v4543_v55, %v4476_v60  ;;  %v4839_v44 = vmul.bf16 %v4636_v42, %v4465_v53  ;;  %v4847_v63 = vmul.bf16 %v4450_v23, %v4538_v54  ;;  %v4851_v16 = vmul.bf16 %v4652_v18, %v4531_v38 }
  0xce   : > { %1168 = vrot.lane.b32.xlu0 %v4478_v61, %s4217_s21  ;;  %1273 = vrot.lane.b32.xlu1 %v4538_v54, %s4216_s20  ;;  %v4861_v19 = vmul.bf16 %v4636_v42, %v4448_v22  ;;  %v4865_v24 = vmul.bf16 %v4680_v4, %v4531_v38 }
  0xd2   : > { %1172 = vrot.lane.b32.xlu0 %v4589_v50, %s4217_s21  ;;  %1277 = vrot.lane.b32.xlu1 %v4636_v42, %s4216_s20 }
  0xd6   : > { %1213 = vrot.lane.b32.xlu0 %v4538_v54, %s4215_s19  ;;  %859 = vrot.lane.b32.xlu1 %v853_v15, %s4218_s22  ;;  %v854_v15 = vmul.bf16 %v4676_v47, %v4471_v35 }
  0xda   : > { %1217 = vrot.lane.b32.xlu0 %v4636_v42, %s4215_s19  ;;  %863 = vrot.lane.b32.xlu1 %v855_v27, %s4218_s22  ;;  %v967_v27 = vmul.bf16 %v4522_v30, %v4473_v36  ;;  %v968_v36 = vmul.bf16 %v4723_v46, %v4471_v35  ;;  %v4760_v35 = vmul.bf16 %v4450_v23, %v4478_v61 }
  0xde   : > { %1275 = vrot.lane.b32.xlu0 %v4531_v38, %s4216_s20  ;;  %894 = vrot.lane.b32.xlu1 %v887_v33, %s4219_s23  ;;  %v969_v33 = vmul.bf16 %v4524_v31, %v4545_v56  ;;  %v4738_v56 = vmul.bf16 %v4589_v50, %v4465_v53 }
  0xe2   : > { %861 = vrot.lane.b32.xlu0 %v854_v15, %s4218_s22  ;;  %944 = vrot.lane.b32.xlu1 %v937_v40, %s4220_s24  ;;  %v4827_v15 = vmul.bf16 %v4463_v52, %v4538_v54  ;;  %v4835_v40 = vmul.bf16 %v4676_v47, %v4531_v38 }
  0xe6   : > { %892 = vrot.lane.b32.xlu0 %v886_v25, %s4219_s23  ;;  %973 = vrot.lane.b32.xlu1 %v967_v27, %s4221_s25  ;;  %v4873_v25 = vmul.bf16 %v4496_v10, %v4538_v54 }
  0xea   : > { %896 = vrot.lane.b32.xlu0 %v888_v32, %s4219_s23  ;;  %977 = vrot.lane.b32.xlu1 %v969_v33, %s4221_s25 }
  0xee   : > { %942 = vrot.lane.b32.xlu0 %v936_v34, %s4220_s24  ;;  %1023 = vrot.lane.b32.xlu1 %v1017_v14, %s4222_s26  ;;  %v4887_v34 = vmul.bf16 %v4636_v42, %v4494_v9 }
  0xf2   : > { %946 = vrot.lane.b32.xlu0 %v938_v37, %s4220_s24  ;;  %1027 = vrot.lane.b32.xlu1 %v1019_v39, %s4222_s26 }
  0xf6   : > { %975 = vrot.lane.b32.xlu0 %v968_v36, %s4221_s25  ;;  %1069 = vrot.lane.b32.xlu1 %v4731_v26, %s4218_s22 }
  0xfa   : > { %1025 = vrot.lane.b32.xlu0 %v1018_v58, %s4222_s26  ;;  %1073 = vrot.lane.b32.xlu1 %v4738_v56, %s4218_s22  ;;  %v4764_v58 = vmul.bf16 %v4680_v4, %v4476_v60 }
  0xfe   : > { %1071 = vrot.lane.b32.xlu0 %v4748_v13, %s4218_s22  ;;  %1092 = vrot.lane.b32.xlu1 %v4752_v51, %s4219_s23 }
 0x102   : > { %1090 = vrot.lane.b32.xlu0 %v4760_v35, %s4219_s23  ;;  %1131 = vrot.lane.b32.xlu1 %v4764_v58, %s4220_s24 }
 0x106   : > { %1094 = vrot.lane.b32.xlu0 %v4772_v43, %s4219_s23  ;;  %1150 = vrot.lane.b32.xlu1 %v4776_v62, %s4221_s25 }
 0x10a   : > { %1129 = vrot.lane.b32.xlu0 %v4784_v1, %s4220_s24  ;;  %1154 = vrot.lane.b32.xlu1 %v4788_v2, %s4221_s25 }
 0x10e   : > { %1133 = vrot.lane.b32.xlu0 %v4796_v41, %s4220_s24  ;;  %1189 = vrot.lane.b32.xlu1 %v4800_v5, %s4222_s26 }
 0x112   : > { %1152 = vrot.lane.b32.xlu0 %v4808_v6, %s4221_s25  ;;  %1193 = vrot.lane.b32.xlu1 %v4812_v7, %s4222_s26 }
 0x116   : > { %1191 = vrot.lane.b32.xlu0 %v4823_v8, %s4222_s26  ;;  %1234 = vrot.lane.b32.xlu1 %v4827_v15, %s4218_s22 }
 0x118   : > { %v815_v3 = vpop.permute.xlu1 %814  ;;  %v813_v17 = vpop.permute.xlu0 %812 }
 0x119   : > { %v819_v32 = vsel %vm818_vm5, %v813_v17, %v815_v3 }
 0x11a   : > { %1236 = vrot.lane.b32.xlu0 %v4835_v40, %s4218_s22  ;;  %1238 = vrot.lane.b32.xlu1 %v4839_v44, %s4218_s22 }
 0x11c   : > { %v4857_v28 = vpop.permute.xlu1 %911 }
 0x11e   : > { %1255 = vrot.lane.b32.xlu0 %v4847_v63, %s4219_s23  ;;  %1257 = vrot.lane.b32.xlu1 %v4851_v16, %s4219_s23 }
 0x122   : > { %1259 = vrot.lane.b32.xlu0 %v4861_v19, %s4219_s23  ;;  %1296 = vrot.lane.b32.xlu1 %v4865_v24, %s4220_s24 }
 0x124   : > { %v817_v45 = vpop.permute.xlu0 %816  ;;  %v4875_v27 = vpop.permute.xlu1 %915 }
 0x125   : > { %v820_v29 = vsel %vm818_vm5, %v815_v3, %v817_v45 }
 0x126   : > { %1294 = vrot.lane.b32.xlu0 %v4873_v25, %s4220_s24  ;;  %1460 = vmatprep.subr.bf16.mxu0 %v820_v29 }
 0x127   : > { %1461 = vmatpush1.bf16.msra.mxu0 %v819_v32  ;;  %1582 = vrot.lane.b32.xlu1 %v4476_v60, %s4215_s19 }
 0x128   : > { %v4883_v33 = vpop.permute.xlu0 %913  ;;  %v4889_v14 = vpop.permute.xlu1 %994 }
 0x12a   : > { %1298 = vrot.lane.b32.xlu0 %v4887_v34, %s4220_s24 }
 0x12b   : > { %1580 = vrot.lane.b32.xlu1 %v4478_v61, %s4215_s19 }
 0x12c   : > { %v4895_v37 = vpop.permute.xlu0 %992  ;;  %v4897_v39 = vpop.permute.xlu1 %1050 }
 0x12e   : > { %1584 = vrot.lane.b32.xlu0 %v4589_v50, %s4215_s19 }
 0x12f   : > { %1605 = vrot.lane.b32.xlu1 %v4738_v56, %s4218_s22 }
 0x130   : > { %v4903_v36 = vpop.permute.xlu0 %996  ;;  %v4905_v0 = vpop.permute.xlu1 %1108 }
 0x132   : > { %1603 = vrot.lane.b32.xlu0 %v4748_v13, %s4218_s22 }
 0x133   : > { %1624 = vrot.lane.b32.xlu1 %v4752_v51, %s4219_s23 }
 0x134   : > { %v4911_v3 = vpop.permute.xlu0 %1048  ;;  %v4913_v17 = vpop.permute.xlu1 %1112 }
 0x136   : > { %1601 = vrot.lane.b32.xlu0 %v4731_v26, %s4218_s22 }
 0x137   : > { %1622 = vrot.lane.b32.xlu1 %v4760_v35, %s4219_s23 }
 0x138   : > { %v4919_v56 = vpop.permute.xlu0 %1052  ;;  %v4921_v45 = vpop.permute.xlu1 %1170 }
 0x13a   : > { %1626 = vrot.lane.b32.xlu0 %v4772_v43, %s4219_s23 }
 0x13b   : > { %1644 = vrot.lane.b32.xlu1 %v4589_v50, %s4216_s20 }
 0x13c   : > { %v4927_v13 = vpop.permute.xlu0 %1110  ;;  %v4929_v51 = vpop.permute.xlu1 %1215 }
 0x13e   : > { %1642 = vrot.lane.b32.xlu0 %v4476_v60, %s4216_s20 }
 0x13f   : > { %1663 = vrot.lane.b32.xlu1 %v4764_v58, %s4220_s24 }
 0x140   : > { %v4935_v26 = vpop.permute.xlu0 %1168  ;;  %v4937_v35 = vpop.permute.xlu1 %1273 }
 0x141   : > { %6012 = vst [vmem:[#allocation8_spill] sm:$0xff] %v4937_v35 }
 0x142   : > { %1640 = vrot.lane.b32.xlu0 %v4478_v61, %s4216_s20 }
 0x143   : > { %1661 = vrot.lane.b32.xlu1 %v4784_v1, %s4220_s24 }
 0x144   : > { %v4943_v43 = vpop.permute.xlu0 %1172  ;;  %v4945_v29 = vpop.permute.xlu1 %1277 }
 0x145   : > { %6013 = vst [vmem:[#allocation9_spill] sm:$0xff] %v4945_v29 }
 0x146   : > { %1665 = vrot.lane.b32.xlu0 %v4796_v41, %s4220_s24 }
 0x147   : > { %1686 = vrot.lane.b32.xlu1 %v4788_v2, %s4221_s25 }
 0x148   : > { %v4951_v58 = vpop.permute.xlu0 %1213  ;;  %v860_v32 = vpop.permute.xlu1 %859 }
 0x14a   : > { %1684 = vrot.lane.b32.xlu0 %v4808_v6, %s4221_s25 }
 0x14b   : > { %1702 = vrot.lane.b32.xlu1 %v4476_v60, %s4217_s21 }
 0x14c   : > { %v4957_v1 = vpop.permute.xlu0 %1217  ;;  %v864_v35 = vpop.permute.xlu1 %863 }
 0x14e   : > { %1682 = vrot.lane.b32.xlu0 %v4776_v62, %s4221_s25 }
 0x14f   : > { %1700 = vrot.lane.b32.xlu1 %v4478_v61, %s4217_s21 }
 0x150   : > { %v4963_v41 = vpop.permute.xlu0 %1275  ;;  %v895_v2 = vpop.permute.xlu1 %894 }
 0x152   : > { %1704 = vrot.lane.b32.xlu0 %v4589_v50, %s4217_s21 }
 0x153   : > { %1725 = vrot.lane.b32.xlu1 %v4812_v7, %s4222_s26 }
 0x154   : > { %v862_v60 = vpop.permute.xlu0 %861  ;;  %v945_v6 = vpop.permute.xlu1 %944 }
 0x155   : > { %v867_v29 = vsel %vm865_vm6, %v862_v60, %v864_v35  ;;  %v866_v9 = vsel %vm865_vm6, %v860_v32, %v862_v60  ;;  %v918_v32 = vsel %vm917_vm8, %v4857_v28, %v4883_v33 }
 0x156   : > { %1723 = vrot.lane.b32.xlu0 %v4823_v8, %s4222_s26  ;;  %1462 = vmatprep.subr.bf16.mxu0 %v867_v29 }
 0x157   : > { %1463 = vmatpush1.bf16.msra.mxu0 %v866_v9  ;;  %1747 = vrot.lane.b32.xlu1 %v4531_v38, %s4215_s19 }
 0x158   : > { %v893_v61 = vpop.permute.xlu0 %892  ;;  %v974_v50 = vpop.permute.xlu1 %973 }
 0x159   : > { %v899_v9 = vsel %vm898_vm7, %v893_v61, %v895_v2 }
 0x15a   : > { %1721 = vrot.lane.b32.xlu0 %v4800_v5, %s4222_s26  ;;  %v919_v5 = vsel %vm917_vm8, %v4883_v33, %v4875_v27 }
 0x15b   : > { %1745 = vrot.lane.b32.xlu1 %v4538_v54, %s4215_s19 }
 0x15c   : > { %v897_v62 = vpop.permute.xlu0 %896  ;;  %v978_v7 = vpop.permute.xlu1 %977 }
 0x15d   : > { %v900_v35 = vsel %vm898_vm7, %v895_v2, %v897_v62 }
 0x15e   : > { %1749 = vrot.lane.b32.xlu0 %v4636_v42, %s4215_s19  ;;  %1464 = vmatprep.subr.bf16.mxu0 %v900_v35 }
 0x15f   : > { %1465 = vmatpush1.bf16.msra.mxu0 %v899_v9  ;;  %1770 = vrot.lane.b32.xlu1 %v4839_v44, %s4218_s22  ;;  %v1841_v9 = vmul.bf16 %v4522_v30, %v4538_v54 }
 0x160   : > { %1466 = vmatprep.subr.bf16.mxu0 %v919_v5  ;;  %v943_v8 = vpop.permute.xlu0 %942  ;;  %v1024_v29 = vpop.permute.xlu1 %1023 }
 0x161   : > { %v949_v44 = vsel %vm948_vm9, %v943_v8, %v945_v6 }
 0x162   : > { %1768 = vrot.lane.b32.xlu0 %v4835_v40, %s4218_s22 }
 0x163   : > { %1467 = vmatpush1.bf16.msra.mxu0 %v918_v32  ;;  %1789 = vrot.lane.b32.xlu1 %v4851_v16, %s4219_s23  ;;  %v1882_v32 = vmul.bf16 %v4636_v42, %v4535_v49 }
 0x164   : > { %v947_v2 = vpop.permute.xlu0 %946  ;;  %v1028_v27 = vpop.permute.xlu1 %1027 }
 0x165   : > { %v950_v60 = vsel %vm948_vm9, %v945_v6, %v947_v2 }
 0x166   : > { %1766 = vrot.lane.b32.xlu0 %v4827_v15, %s4218_s22  ;;  %1468 = vmatprep.subr.bf16.mxu0 %v950_v60  ;;  %v1000_v15 = vsel %vm998_vm11, %v4889_v14, %v4903_v36 }
 0x167   : > { %1469 = vmatpush1.bf16.msra.mxu0 %v949_v44  ;;  %1787 = vrot.lane.b32.xlu1 %v4847_v63, %s4219_s23  ;;  %v1881_v44 = vmul.bf16 %v4543_v55, %v4531_v38 }
 0x168   : > { %v976_v40 = vpop.permute.xlu0 %975  ;;  %v1070_v28 = vpop.permute.xlu1 %1069 }
 0x169   : > { %v981_v16 = vsel %vm979_vm10, %v976_v40, %v978_v7  ;;  %v980_v33 = vsel %vm979_vm10, %v974_v50, %v976_v40  ;;  %v1843_v7 = vmul.bf16 %v4636_v42, %v4524_v31 }
 0x16a   : > { %1791 = vrot.lane.b32.xlu0 %v4861_v19, %s4219_s23  ;;  %1470 = vmatprep.subr.bf16.mxu0 %v981_v16  ;;  %v999_v19 = vsel %vm998_vm11, %v4895_v37, %v4889_v14  ;;  %v1880_v16 = vmul.bf16 %v4533_v48, %v4538_v54 }
 0x16b   : > { %1471 = vmatpush1.bf16.msra.mxu0 %v980_v33  ;;  %1809 = vrot.lane.b32.xlu1 %v4636_v42, %s4216_s20 }
 0x16c   : > { %1472 = vmatprep.subr.bf16.mxu0 %v1000_v15  ;;  %v1026_v63 = vpop.permute.xlu0 %1025  ;;  %v1074_v6 = vpop.permute.xlu1 %1073 }
 0x16d   : > { %v1031_v61 = vsel %vm1029_vm12, %v1026_v63, %v1028_v27  ;;  %v1030_v62 = vsel %vm1029_vm12, %v1024_v29, %v1026_v63  ;;  %v1115_v27 = vsel %vm917_vm8, %v4927_v13, %v4913_v17  ;;  %v5073_v63 = vld [vmem:[#allocation2 + $0x58] sm:$0xff] }
 0x16e   : > { %1807 = vrot.lane.b32.xlu0 %v4531_v38, %s4216_s20 }
 0x16f   : > { %1473 = vmatpush1.bf16.msra.mxu0 %v999_v19  ;;  %1828 = vrot.lane.b32.xlu1 %v4865_v24, %s4220_s24  ;;  %v1055_v24 = vsel %vm818_vm5, %v4897_v39, %v4919_v56  ;;  %v5080_v19 = vmul.bf16 %v5073_v63, %v4465_v53 }
 0x170   : > { %1474 = vmatprep.subr.bf16.mxu0 %v1031_v61  ;;  %v1072_v36 = vpop.permute.xlu0 %1071  ;;  %v1093_v50 = vpop.permute.xlu1 %1092 }
 0x171   : > { %v1075_v8 = vsel %vm865_vm6, %v1070_v28, %v1072_v36 }
 0x172   : > { %1805 = vrot.lane.b32.xlu0 %v4538_v54, %s4216_s20 }
 0x173   : > { %1475 = vmatpush1.bf16.msra.mxu0 %v1030_v62  ;;  %1826 = vrot.lane.b32.xlu1 %v4873_v25, %s4220_s24 }
 0x174   : > { %1476 = vmatprep.subr.bf16.mxu0 %v4500_v11  ;;  %v1091_v14 = vpop.permute.xlu0 %1090  ;;  %v1132_v37 = vpop.permute.xlu1 %1131  ;;  %v1842_v11 = vmul.bf16 %v4723_v46, %v4531_v38 }
 0x175   : > { %v1096_v2 = vsel %vm898_vm7, %v1091_v14, %v1093_v50  ;;  %v5097_v14 = vmul.bf16 %v4676_v47, %v4595_v57 }
 0x176   : > { %1830 = vrot.lane.b32.xlu0 %v4887_v34, %s4220_s24  ;;  %v1054_v34 = vsel %vm818_vm5, %v4911_v3, %v4897_v39 }
 0x177   : > { %1477 = vmatpush1.bf16.msra.mxu0 %v4504_v12  ;;  %1851 = vrot.lane.b32.xlu1 %v1843_v7, %s4221_s25  ;;  %v1076_v12 = vsel %vm865_vm6, %v1072_v36, %v1074_v6  ;;  %v5088_v36 = vld [vmem:[%s6001_s3] ss:$16 sps:$4 sm:$0xff]   ;;  %v5101_v7 = vmul.bf16 %v4652_v18, %v4595_v57 }
 0x178   : > { %1478 = vmatprep.subr.bf16.mxu0 %v1055_v24  ;;  %v1095_v25 = vpop.permute.xlu0 %1094  ;;  %v1151_v35 = vpop.permute.xlu1 %1150  ;;  %v1174_v24 = vsel %vm998_vm11, %v4935_v26, %v4921_v45 }
 0x179   : > { %v1097_v29 = vsel %vm898_vm7, %v1093_v50, %v1095_v25  ;;  %v1175_v50 = vsel %vm998_vm11, %v4921_v45, %v4943_v43  ;;  %v5120_v45 = vmul.bf16 %v4450_v23, %v4597_v59 }
 0x17a   : > { %1849 = vrot.lane.b32.xlu0 %v1842_v11, %s4221_s25  ;;  %v5114_v11 = vmul.bf16 %v4463_v52, %v4597_v59 }
 0x17b   : > { %1479 = vmatpush1.bf16.msra.mxu0 %v1054_v34  ;;  %1867 = vrot.lane.b32.xlu1 %v4531_v38, %s4217_s21  ;;  %v1204_v34 = vmul.bf16 %v4343_v20, %v4531_v38  ;;  %v1220_v38 = vsel %vm818_vm5, %v4929_v51, %v4957_v1 }
 0x17c   : > { %1480 = vmatprep.subr.bf16.mxu0 %v1076_v12  ;;  %v1130_v56 = vpop.permute.xlu0 %1129  ;;  %v1155_v5 = vpop.permute.xlu1 %1154 }
 0x17d   : > { %v1135_v15 = vsel %vm948_vm9, %v1130_v56, %v1132_v37  ;;  %v5133_v56 = vmul.bf16 %v5073_v63, %v4448_v22 }
 0x17e   : > { %1847 = vrot.lane.b32.xlu0 %v1841_v9, %s4221_s25  ;;  %v1203_v9 = vmul.bf16 %v4346_v21, %v4538_v54 }
 0x17f   : > { %1481 = vmatpush1.bf16.msra.mxu0 %v1075_v8  ;;  %1865 = vrot.lane.b32.xlu1 %v4538_v54, %s4217_s21  ;;  %v1219_v54 = vsel %vm818_vm5, %v4951_v58, %v4929_v51 }
 0x180   : > { %1482 = vmatprep.subr.bf16.mxu0 %v1097_v29  ;;  %v1134_v39 = vpop.permute.xlu0 %1133  ;;  %v1190_v3 = vpop.permute.xlu1 %1189 }
 0x181   : > { %v1136_v28 = vsel %vm948_vm9, %v1132_v37, %v1134_v39  ;;  %v5146_v39 = vmul.bf16 %v4680_v4, %v4595_v57 }
 0x182   : > { %1869 = vrot.lane.b32.xlu0 %v4636_v42, %s4217_s21  ;;  %v1114_v42 = vsel %vm917_vm8, %v4905_v0, %v4927_v13 }
 0x183   : > { %1483 = vmatpush1.bf16.msra.mxu0 %v1096_v2  ;;  %1890 = vrot.lane.b32.xlu1 %v1882_v32, %s4222_s26 }
 0x184   : > { %1484 = vmatprep.subr.bf16.mxu0 %v1115_v27  ;;  %v1153_v60 = vpop.permute.xlu0 %1152  ;;  %v1194_v40 = vpop.permute.xlu1 %1193  ;;  %v5164_v27 = vmul.bf16 %v4496_v10, %v4597_v59 }
 0x185   : > { %v1157_v0 = vsel %vm979_vm10, %v1153_v60, %v1155_v5  ;;  %v1156_v61 = vsel %vm979_vm10, %v1151_v35, %v1153_v60 }
 0x186   : > { %1888 = vrot.lane.b32.xlu0 %v1881_v44, %s4222_s26  ;;  %v5167_v44 = vld [vmem:[#allocation2 + $0x40] sm:$0xff] }
 0x187   : > { %1485 = vmatpush1.bf16.msra.mxu0 %v1114_v42  ;;  %1912 = vrot.lane.b32.xlu1 %v4595_v57, %s4215_s19  ;;  %v6014_v42 = vld [vmem:[#allocation7_spill] sm:$0xff] }
 0x188   : > { %1486 = vmatprep.subr.bf16.mxu0 %v1136_v28  ;;  %v1192_v17 = vpop.permute.xlu0 %1191  ;;  %v5069_v33 = vpop.permute.xlu1 %1234  ;;  %v5173_v28 = vmul.bf16 %v5073_v63, %v6014_v42 }
 0x189   : > { %v1196_v43 = vsel %vm1029_vm12, %v1192_v17, %v1194_v40  ;;  %v1195_v26 = vsel %vm1029_vm12, %v1190_v3, %v1192_v17 }
 0x18a   : > { %1886 = vrot.lane.b32.xlu0 %v1880_v16, %s4222_s26 }
 0x18b   : > { %1487 = vmatpush1.bf16.msra.mxu0 %v1135_v15  ;;  %1910 = vrot.lane.b32.xlu1 %v4597_v59, %s4215_s19 }
 0x18c   : > { %1488 = vmatprep.subr.bf16.mxu0 %v1157_v0  ;;  %v1237_v13 = vpop.permute.xlu0 %1236  ;;  %v1239_v6 = vpop.permute.xlu1 %1238  ;;  %v5183_v0 = vmul.bf16 %v5167_v44, %v4524_v31 }
 0x18d   : > { %v1241_v1 = vsel %vm865_vm6, %v1237_v13, %v1239_v6  ;;  %v1240_v51 = vsel %vm865_vm6, %v5069_v33, %v1237_v13  ;;  %v5176_v33 = vld [vmem:[#allocation2 + $0x38] sm:$0xff]  ;;  %v6015_v13 = vld [vmem:[#allocation9_spill] sm:$0xff] }
 0x18e   : > { %1914 = vrot.lane.b32.xlu0 %v5073_v63, %s4215_s19  ;;  %v1280_v6 = vsel %vm917_vm8, %v4963_v41, %v6015_v13 }
 0x18f   : > { %1489 = vmatpush1.bf16.msra.mxu0 %v1156_v61  ;;  %1935 = vrot.lane.b32.xlu1 %v5080_v19, %s4218_s22 }
 0x190   : > { %1501 = vmatprep.subr.bf16.mxu0 %v1175_v50  ;;  %v1256_v62 = vpop.permute.xlu0 %1255  ;;  %v1258_v37 = vpop.permute.xlu1 %1257  ;;  %v5192_v50 = vmul.bf16 %v5176_v33, %v4723_v46 }
 0x191   : > { %v1261_v15 = vsel %vm898_vm7, %v1256_v62, %v1258_v37 }
 0x192   : > { %1933 = vrot.lane.b32.xlu0 %v5097_v14, %s4218_s22  ;;  %1491 = vmatmul.mubr.bf16.vlgmr.msra.gmra.mrb[0].mxu0 %v5088_v36 }
 0x193   : > { %1502 = vmatpush1.bf16.msra.mxu0 %v1174_v24  ;;  %1954 = vrot.lane.b32.xlu1 %v5101_v7, %s4219_s23  ;;  %v5195_v24 = vld [vmem:[#allocation2 + $0x30] sm:$0xff] }
 0x194   : > { %1503 = vmatprep.subr.bf16.mxu0 %v1196_v43  ;;  %v1260_v25 = vpop.permute.xlu0 %1259  ;;  %v5116_v35 = vpop.permute.xlu1 %1296  ;;  %v6016_v43 = vld [vmem:[#allocation8_spill] sm:$0xff] }
 0x195   : > { %v1262_v60 = vsel %vm898_vm7, %v1258_v37, %v1260_v25  ;;  %v1279_v25 = vsel %vm917_vm8, %v6016_v43, %v4963_v41 }
 0x196   : > { %1931 = vrot.lane.b32.xlu0 %v5114_v11, %s4218_s22 }
 0x197   : > { %1504 = vmatpush1.bf16.msra.mxu0 %v1195_v26  ;;  %1952 = vrot.lane.b32.xlu1 %v5120_v45, %s4219_s23  ;;  %v5204_v26 = vmul.bf16 %v4723_v46, %v4595_v57 }
 0x198   : > { %1505 = vmatprep.subr.bf16.mxu0 %v1204_v34  ;;  %v5129_v12 = vpop.permute.xlu0 %1294 }
 0x199   : > { %v1583_v5 = vpop.permute.xlu1 %1582 }
 0x19a   : > { %1956 = vrot.lane.b32.xlu0 %v5133_v56, %s4219_s23 }
 0x19b   : > { %1506 = vmatpush1.bf16.msra.mxu0 %v1203_v9  ;;  %1974 = vrot.lane.b32.xlu1 %v5073_v63, %s4216_s20 }
 0x19c   : > { %1507 = vmatprep.subr.bf16.mxu0 %v1220_v38  ;;  %v1299_v8 = vpop.permute.xlu0 %1298 }
 0x19d   : > { %v1581_v29 = vpop.permute.xlu1 %1580  ;;  %v1301_v34 = vsel %vm948_vm9, %v5116_v35, %v1299_v8 }
 0x19e   : > { %1972 = vrot.lane.b32.xlu0 %v4595_v57, %s4216_s20  ;;  %v1586_v58 = vsel %vm818_vm5, %v1581_v29, %v1583_v5  ;;  %v1300_v29 = vsel %vm948_vm9, %v5129_v12, %v5116_v35 }
 0x19f   : > { %1508 = vmatpush1.bf16.msra.mxu0 %v1219_v54  ;;  %1993 = vrot.lane.b32.xlu1 %v5146_v39, %s4220_s24  ;;  %v5223_v54 = vmul.bf16 %v4522_v30, %v4597_v59 }
 0x1a0   : > { %1509 = vmatprep.subr.bf16.mxu0 %v1241_v1  ;;  %v1585_v3 = vpop.permute.xlu0 %1584 }
 0x1a1   : > { %v1587_v32 = vsel %vm818_vm5, %v1583_v5, %v1585_v3  ;;  %v1606_v2 = vpop.permute.xlu1 %1605  ;;  %v5212_v5 = vmul.bf16 %v5195_v24, %v4522_v30  ;;  %v5229_v3 = vmul.bf16 %v5073_v63, %v4524_v31 }
 0x1a2   : > { %1970 = vrot.lane.b32.xlu0 %v4597_v59, %s4216_s20  ;;  %2158 = vmatprep.subr.bf16.mxu1 %v1587_v32 }
 0x1a3   : > { %1510 = vmatpush1.bf16.msra.mxu0 %v1240_v51  ;;  %2159 = vmatpush1.bf16.msra.mxu1 %v1586_v58 }
 0x1a4   : > { %1511 = vmatprep.subr.bf16.mxu0 %v1262_v60  ;;  %v1604_v40 = vpop.permute.xlu0 %1603  ;;  %1991 = vrot.lane.b32.xlu1 %v5164_v27, %s4220_s24 }
 0x1a5   : > { %v1608_v17 = vsel %vm865_vm6, %v1604_v40, %v1606_v2  ;;  %v1625_v16 = vpop.permute.xlu1 %1624 }
 0x1a6   : > { %1995 = vrot.lane.b32.xlu0 %v5173_v28, %s4220_s24  ;;  %2160 = vmatprep.subr.bf16.mxu1 %v1608_v17 }
 0x1a7   : > { %1512 = vmatpush1.bf16.msra.mxu0 %v1261_v15  ;;  %v5250_v15 = vld [vmem:[%s6001_s3 + $0xc] ss:$16 sps:$4 sm:$0xff]  }
 0x1a8   : > { %1513 = vmatprep.subr.bf16.mxu0 %v1280_v6  ;;  %v1602_v61 = vpop.permute.xlu0 %1601  ;;  %1319 = vrot.lane.b32.xlu1 %v5183_v0, %s4221_s25 }
 0x1a9   : > { %v1607_v62 = vsel %vm865_vm6, %v1602_v61, %v1604_v40  ;;  %v1623_v37 = vpop.permute.xlu1 %1622  ;;  %v5257_v61 = vmul.bf16 %v5167_v44, %v4535_v49  ;;  %1533 = vmatprep.mubr.bf16.mxu0 %v5250_v15 }
 0x1aa   : > { %1317 = vrot.lane.b32.xlu0 %v5192_v50, %s4221_s25  ;;  %2161 = vmatpush1.bf16.msra.mxu1 %v1607_v62  ;;  %v1628_v8 = vsel %vm898_vm7, %v1623_v37, %v1625_v16  ;;  %v5264_v37 = vmul.bf16 %v5176_v33, %v4543_v55 }
 0x1ab   : > { %1514 = vmatpush1.bf16.msra.mxu0 %v1279_v25 }
 0x1ac   : > { %1515 = vmatprep.subr.bf16.mxu0 %v1301_v34  ;;  %v1627_v9 = vpop.permute.xlu0 %1626  ;;  %2014 = vrot.lane.b32.xlu1 %v5204_v26, %s4221_s25  ;;  %v5271_v34 = vmul.bf16 %v4543_v55, %v4595_v57 }
 0x1ad   : > { %v1629_v38 = vsel %vm898_vm7, %v1625_v16, %v1627_v9  ;;  %v1645_v41 = vpop.permute.xlu1 %1644 }
 0x1ae   : > { %1315 = vrot.lane.b32.xlu0 %v5212_v5, %s4221_s25  ;;  %2162 = vmatprep.subr.bf16.mxu1 %v1629_v38  ;;  %v5277_v38 = vmul.bf16 %v5195_v24, %v4533_v48 }
 0x1af   : > { %1516 = vmatpush1.bf16.msra.mxu0 %v1300_v29  ;;  %2163 = vmatpush1.bf16.msra.mxu1 %v1628_v8 }
 0x1b0   : > { %v1643_v1 = vpop.permute.xlu0 %1642  ;;  %2012 = vrot.lane.b32.xlu1 %v5223_v54, %s4221_s25 }
 0x1b1   : > { %v1647_v35 = vsel %vm917_vm8, %v1643_v1, %v1645_v41  ;;  %v1664_v12 = vpop.permute.xlu1 %1663 }
 0x1b2   : > { %2016 = vrot.lane.b32.xlu0 %v5229_v3, %s4221_s25  ;;  %2164 = vmatprep.subr.bf16.mxu1 %v1647_v35  ;;  %v5291_v35 = vmul.bf16 %v5073_v63, %v4535_v49 }
 0x1b4   : > { %v1641_v32 = vpop.permute.xlu0 %1640  ;;  %1337 = vrot.lane.b32.xlu1 %v5167_v44, %s4217_s21 }
 0x1b5   : > { %v1646_v2 = vsel %vm917_vm8, %v1641_v32, %v1643_v1  ;;  %v1662_v51 = vpop.permute.xlu1 %1661 }
 0x1b6   : > { %1335 = vrot.lane.b32.xlu0 %v5176_v33, %s4217_s21  ;;  %2165 = vmatpush1.bf16.msra.mxu1 %v1646_v2  ;;  %v1667_v17 = vsel %vm948_vm9, %v1662_v51, %v1664_v12  ;;  %v5301_v51 = vmul.bf16 %v5176_v33, %v4343_v20 }
 0x1b8   : > { %v1666_v58 = vpop.permute.xlu0 %1665  ;;  %2032 = vrot.lane.b32.xlu1 %v4595_v57, %s4217_s21  ;;  %v5285_v57 = vmul.bf16 %v4533_v48, %v4597_v59 }
 0x1b9   : > { %v1668_v60 = vsel %vm948_vm9, %v1664_v12, %v1666_v58  ;;  %v1687_v40 = vpop.permute.xlu1 %1686 }
 0x1ba   : > { %1333 = vrot.lane.b32.xlu0 %v5195_v24, %s4217_s21  ;;  %2166 = vmatprep.subr.bf16.mxu1 %v1668_v60 }
 0x1bb   : > { %2167 = vmatpush1.bf16.msra.mxu1 %v1667_v17  ;;  %v5312_v17 = vmul.bf16 %v5195_v24, %v4346_v21 }
 0x1bc   : > { %v1685_v16 = vpop.permute.xlu0 %1684  ;;  %2030 = vrot.lane.b32.xlu1 %v4597_v59, %s4217_s21 }
 0x1bd   : > { %v1689_v13 = vsel %vm979_vm10, %v1685_v16, %v1687_v40  ;;  %v1703_v6 = vpop.permute.xlu1 %1702  ;;  %v5306_v40 = vld [vmem:[#allocation2 + $0x50] sm:$0xff] }
 0x1be   : > { %2034 = vrot.lane.b32.xlu0 %v5073_v63, %s4217_s21  ;;  %2168 = vmatprep.subr.bf16.mxu1 %v1689_v13 }
 0x1c0   : > { %v1683_v62 = vpop.permute.xlu0 %1682  ;;  %1358 = vrot.lane.b32.xlu1 %v5257_v61, %s4222_s26 }
 0x1c1   : > { %v1688_v43 = vsel %vm979_vm10, %v1683_v62, %v1685_v16  ;;  %v1701_v25 = vpop.permute.xlu1 %1700  ;;  %v5318_v62 = vld [vmem:[#allocation2 + $0x48] sm:$0xff] }
 0x1c2   : > { %1356 = vrot.lane.b32.xlu0 %v5264_v37, %s4222_s26  ;;  %2169 = vmatpush1.bf16.msra.mxu1 %v1688_v43  ;;  %v1706_v8 = vsel %vm998_vm11, %v1701_v25, %v1703_v6 }
 0x1c4   : > { %v1705_v9 = vpop.permute.xlu0 %1704  ;;  %2053 = vrot.lane.b32.xlu1 %v5271_v34, %s4222_s26 }
 0x1c5   : > { %v1707_v41 = vsel %vm998_vm11, %v1703_v6, %v1705_v9  ;;  %v1726_v29 = vpop.permute.xlu1 %1725 }
 0x1c6   : > { %1354 = vrot.lane.b32.xlu0 %v5277_v38, %s4222_s26  ;;  %2170 = vmatprep.subr.bf16.mxu1 %v1707_v41  ;;  %v2296_v41 = vmul.bf16 %v5167_v44, %v4465_v53 }
 0x1c7   : > { %2171 = vmatpush1.bf16.msra.mxu1 %v1706_v8  ;;  %v2295_v8 = vmul.bf16 %v5176_v33, %v4676_v47 }
 0x1c8   : > { %v1724_v1 = vpop.permute.xlu0 %1723  ;;  %2051 = vrot.lane.b32.xlu1 %v5285_v57, %s4222_s26 }
 0x1c9   : > { %v1728_v12 = vsel %vm1029_vm12, %v1724_v1, %v1726_v29  ;;  %v1748_v32 = vpop.permute.xlu1 %1747 }
 0x1ca   : > { %2055 = vrot.lane.b32.xlu0 %v5291_v35, %s4222_s26  ;;  %2172 = vmatprep.subr.bf16.mxu1 %v1728_v12 }
 0x1cc   : > { %v1722_v2 = vpop.permute.xlu0 %1721  ;;  %2283 = vrot.lane.b32.xlu1 %v5167_v44, %s4215_s19 }
 0x1cd   : > { %v1727_v59 = vsel %vm1029_vm12, %v1722_v2, %v1724_v1  ;;  %v1746_v58 = vpop.permute.xlu1 %1745  ;;  %v2294_v2 = vmul.bf16 %v5195_v24, %v4463_v52 }
 0x1ce   : > { %2281 = vrot.lane.b32.xlu0 %v5176_v33, %s4215_s19  ;;  %2173 = vmatpush1.bf16.msra.mxu1 %v1727_v59  ;;  %v1751_v43 = vsel %vm818_vm5, %v1746_v58, %v1748_v32 }
 0x1cf   : > { %2174 = vmatprep.subr.bf16.mxu1 %v5301_v51 }
 0x1d0   : > { %v1750_v60 = vpop.permute.xlu0 %1749  ;;  %2980 = vrot.lane.b32.xlu1 %v5306_v40, %s4215_s19 }
 0x1d1   : > { %v1752_v16 = vsel %vm818_vm5, %v1748_v32, %v1750_v60  ;;  %v1771_v13 = vpop.permute.xlu1 %1770 }
 0x1d2   : > { %2279 = vrot.lane.b32.xlu0 %v5195_v24, %s4215_s19  ;;  %2175 = vmatpush1.bf16.msra.mxu1 %v5312_v17 }
 0x1d3   : > { %2176 = vmatprep.subr.bf16.mxu1 %v1752_v16 }
 0x1d4   : > { %v1769_v6 = vpop.permute.xlu0 %1768  ;;  %2978 = vrot.lane.b32.xlu1 %v5318_v62, %s4215_s19 }
 0x1d5   : > { %v1773_v25 = vsel %vm865_vm6, %v1769_v6, %v1771_v13  ;;  %v1790_v9 = vpop.permute.xlu1 %1789 }
 0x1d6   : > { %2982 = vrot.lane.b32.xlu0 %v5073_v63, %s4215_s19  ;;  %2177 = vmatpush1.bf16.msra.mxu1 %v1751_v43 }
 0x1d7   : > { %2178 = vmatprep.subr.bf16.mxu1 %v1773_v25  ;;  %v2316_v25 = vmul.bf16 %v5176_v33, %v4652_v18 }
 0x1d8   : > { %v1767_v29 = vpop.permute.xlu0 %1766  ;;  %2304 = vrot.lane.b32.xlu1 %v2296_v41, %s4218_s22 }
 0x1d9   : > { %v1772_v1 = vsel %vm865_vm6, %v1767_v29, %v1769_v6  ;;  %v1788_v12 = vpop.permute.xlu1 %1787  ;;  %v2315_v29 = vmul.bf16 %v5195_v24, %v4450_v23 }
 0x1da   : > { %2302 = vrot.lane.b32.xlu0 %v2295_v8, %s4218_s22  ;;  %2179 = vmatpush1.bf16.msra.mxu1 %v1772_v1  ;;  %v1793_v60 = vsel %vm898_vm7, %v1788_v12, %v1790_v9 }
 0x1dc   : > { %v1792_v32 = vpop.permute.xlu0 %1791  ;;  %3001 = vrot.lane.b32.xlu1 %v5097_v14, %s4218_s22  ;;  %v2317_v14 = vmul.bf16 %v5167_v44, %v4448_v22 }
 0x1dd   : > { %v1794_v59 = vsel %vm898_vm7, %v1790_v9, %v1792_v32  ;;  %v1810_v58 = vpop.permute.xlu1 %1809 }
 0x1de   : > { %2300 = vrot.lane.b32.xlu0 %v2294_v2, %s4218_s22  ;;  %2180 = vmatprep.subr.bf16.mxu1 %v1794_v59 }
 0x1df   : > { %2181 = vmatpush1.bf16.msra.mxu1 %v1793_v60 }
 0x1e0   : > { %v1808_v16 = vpop.permute.xlu0 %1807  ;;  %2999 = vrot.lane.b32.xlu1 %v5114_v11, %s4218_s22 }
 0x1e1   : > { %v1812_v13 = vsel %vm917_vm8, %v1808_v16, %v1810_v58  ;;  %v1829_v6 = vpop.permute.xlu1 %1828 }
 0x1e2   : > { %3003 = vrot.lane.b32.xlu0 %v5080_v19, %s4218_s22  ;;  %2182 = vmatprep.subr.bf16.mxu1 %v1812_v13 }
 0x1e4   : > { %v1806_v43 = vpop.permute.xlu0 %1805  ;;  %2325 = vrot.lane.b32.xlu1 %v2317_v14, %s4219_s23 }
 0x1e5   : > { %v1811_v9 = vsel %vm917_vm8, %v1806_v43, %v1808_v16  ;;  %v1827_v41 = vpop.permute.xlu1 %1826 }
 0x1e6   : > { %2323 = vrot.lane.b32.xlu0 %v2316_v25, %s4219_s23  ;;  %2183 = vmatpush1.bf16.msra.mxu1 %v1811_v9  ;;  %v1832_v12 = vsel %vm948_vm9, %v1827_v41, %v1829_v6  ;;  %v1901_v41 = vmul.bf16 %v5306_v40, %v4343_v20 }
 0x1e8   : > { %v1831_v11 = vpop.permute.xlu0 %1830  ;;  %3022 = vrot.lane.b32.xlu1 %v5101_v7, %s4219_s23 }
 0x1e9   : > { %v1833_v8 = vsel %vm948_vm9, %v1829_v6, %v1831_v11  ;;  %v1852_v1 = vpop.permute.xlu1 %1851 }
 0x1ea   : > { %2321 = vrot.lane.b32.xlu0 %v2315_v29, %s4219_s23  ;;  %2184 = vmatprep.subr.bf16.mxu1 %v1833_v8  ;;  %v2354_v8 = vmul.bf16 %v5195_v24, %v4496_v10 }
 0x1eb   : > { %2185 = vmatpush1.bf16.msra.mxu1 %v1832_v12 }
 0x1ec   : > { %v1850_v32 = vpop.permute.xlu0 %1849  ;;  %3020 = vrot.lane.b32.xlu1 %v5120_v45, %s4219_s23 }
 0x1ed   : > { %v1854_v2 = vsel %vm979_vm10, %v1850_v32, %v1852_v1  ;;  %v1868_v59 = vpop.permute.xlu1 %1867  ;;  %v1900_v1 = vmul.bf16 %v5318_v62, %v4346_v21 }
 0x1ee   : > { %3024 = vrot.lane.b32.xlu0 %v5133_v56, %s4219_s23  ;;  %2186 = vmatprep.subr.bf16.mxu1 %v1854_v2 }
 0x1f0   : > { %v1848_v7 = vpop.permute.xlu0 %1847  ;;  %2343 = vrot.lane.b32.xlu1 %v5167_v44, %s4216_s20 }
 0x1f1   : > { %v1853_v58 = vsel %vm979_vm10, %v1848_v7, %v1850_v32  ;;  %v1866_v60 = vpop.permute.xlu1 %1865 }
 0x1f2   : > { %2341 = vrot.lane.b32.xlu0 %v5176_v33, %s4216_s20  ;;  %2187 = vmatpush1.bf16.msra.mxu1 %v1853_v58  ;;  %v1871_v13 = vsel %vm998_vm11, %v1866_v60, %v1868_v59 }
 0x1f4   : > { %v1870_v16 = vpop.permute.xlu0 %1869  ;;  %3040 = vrot.lane.b32.xlu1 %v5306_v40, %s4216_s20 }
 0x1f5   : > { %v1872_v45 = vsel %vm998_vm11, %v1868_v59, %v1870_v16  ;;  %2189 = vmatmul.mubr.bf16.vlgmr.msra.gmra.mrb[0].mxu1 %v5088_v36  ;;  %v1891_v56 = vpop.permute.xlu1 %1890  ;;  %v2356_v36 = vmul.bf16 %v5167_v44, %v6014_v42 }
 0x1f6   : > { %2339 = vrot.lane.b32.xlu0 %v5195_v24, %s4216_s20  ;;  %2199 = vmatprep.subr.bf16.mxu1 %v1872_v45 }
 0x1f7   : > { %2200 = vmatpush1.bf16.msra.mxu1 %v1871_v13  ;;  %2231 = vmatprep.mubr.bf16.mxu1 %v5250_v15  ;;  %v2355_v15 = vmul.bf16 %v5176_v33, %v4680_v4 }
 0x1f8   : > { %v1889_v6 = vpop.permute.xlu0 %1888  ;;  %3038 = vrot.lane.b32.xlu1 %v5318_v62, %s4216_s20 }
 0x1f9   : > { %v1893_v14 = vsel %vm1029_vm12, %v1889_v6, %v1891_v56  ;;  %v1913_v43 = vpop.permute.xlu1 %1912 }
 0x1fa   : > { %3042 = vrot.lane.b32.xlu0 %v5073_v63, %s4216_s20  ;;  %2201 = vmatprep.subr.bf16.mxu1 %v1893_v14 }
 0x1fc   : > { %v1887_v25 = vpop.permute.xlu0 %1886  ;;  %2364 = vrot.lane.b32.xlu1 %v2356_v36, %s4220_s24 }
 0x1fd   : > { %v1892_v9 = vsel %vm1029_vm12, %v1887_v25, %v1889_v6  ;;  %v1911_v11 = vpop.permute.xlu1 %1910 }
 0x1fe   : > { %2362 = vrot.lane.b32.xlu0 %v2355_v15, %s4220_s24  ;;  %2202 = vmatpush1.bf16.msra.mxu1 %v1892_v9  ;;  %v1916_v59 = vsel %vm818_vm5, %v1911_v11, %v1913_v43 }
 0x1ff   : > { %2203 = vmatprep.subr.bf16.mxu1 %v1901_v41 }
 0x200   : > { %v1915_v29 = vpop.permute.xlu0 %1914  ;;  %3061 = vrot.lane.b32.xlu1 %v5146_v39, %s4220_s24 }
 0x201   : > { %v1917_v12 = vsel %vm818_vm5, %v1913_v43, %v1915_v29  ;;  %v1936_v32 = vpop.permute.xlu1 %1935 }
 0x202   : > { %2360 = vrot.lane.b32.xlu0 %v2354_v8, %s4220_s24  ;;  %2204 = vmatpush1.bf16.msra.mxu1 %v1900_v1 }
 0x203   : > { %2205 = vmatprep.subr.bf16.mxu1 %v1917_v12 }
 0x204   : > { %v1934_v2 = vpop.permute.xlu0 %1933  ;;  %3059 = vrot.lane.b32.xlu1 %v5164_v27, %s4220_s24 }
 0x205   : > { %v1938_v39 = vsel %vm865_vm6, %v1934_v2, %v1936_v32  ;;  %v1955_v7 = vpop.permute.xlu1 %1954 }
 0x206   : > { %3063 = vrot.lane.b32.xlu0 %v5173_v28, %s4220_s24  ;;  %2206 = vmatpush1.bf16.msra.mxu1 %v1916_v59  ;;  %v5470_v59 = vld [vmem:[#allocation2 + $0x70] sm:$0xff] }
 0x207   : > { %2207 = vmatprep.subr.bf16.mxu1 %v1938_v39 }
 0x208   : > { %v1932_v58 = vpop.permute.xlu0 %1931  ;;  %2385 = vrot.lane.b32.xlu1 %v5183_v0, %s4221_s25 }
 0x209   : > { %v1937_v60 = vsel %vm865_vm6, %v1932_v58, %v1934_v2  ;;  %v1953_v16 = vpop.permute.xlu1 %1952 }
 0x20a   : > { %2383 = vrot.lane.b32.xlu0 %v5192_v50, %s4221_s25  ;;  %2208 = vmatpush1.bf16.msra.mxu1 %v1937_v60  ;;  %v1958_v56 = vsel %vm898_vm7, %v1953_v16, %v1955_v7 }
 0x20c   : > { %v1957_v27 = vpop.permute.xlu0 %1956  ;;  %3082 = vrot.lane.b32.xlu1 %v5204_v26, %s4221_s25 }
 0x20d   : > { %v1959_v45 = vsel %vm898_vm7, %v1955_v7, %v1957_v27  ;;  %v1975_v28 = vpop.permute.xlu1 %1974  ;;  %v5473_v7 = vld [vmem:[#allocation2 + $0x50] sm:$0xff]  ;;  %v4113_v27 = vld [vmem:[%s6001_s3 + $0x8] ss:$16 sps:$4 sm:$0xff]  }
 0x20e   : > { %2381 = vrot.lane.b32.xlu0 %v5212_v5, %s4221_s25  ;;  %2209 = vmatprep.subr.bf16.mxu1 %v1959_v45  ;;  %v2460_v60 = vmul.bf16 %v5473_v7, %v4676_v47  ;;  %v5485_v45 = vld [vmem:[#allocation2 + $0x48] sm:$0xff] }
 0x20f   : > { %2210 = vmatpush1.bf16.msra.mxu1 %v1958_v56 }
 0x210   : > { %v1973_v0 = vpop.permute.xlu0 %1972  ;;  %3080 = vrot.lane.b32.xlu1 %v5223_v54, %s4221_s25 }
 0x211   : > { %v1977_v50 = vsel %vm917_vm8, %v1973_v0, %v1975_v28  ;;  %v1994_v13 = vpop.permute.xlu1 %1993 }
 0x212   : > { %3084 = vrot.lane.b32.xlu0 %v5229_v3, %s4221_s25  ;;  %2211 = vmatprep.subr.bf16.mxu1 %v1977_v50 }
 0x214   : > { %v1971_v26 = vpop.permute.xlu0 %1970  ;;  %2403 = vrot.lane.b32.xlu1 %v5167_v44, %s4217_s21 }
 0x215   : > { %v1976_v6 = vsel %vm917_vm8, %v1971_v26, %v1973_v0  ;;  %v2459_v0 = vmul.bf16 %v5485_v45, %v4463_v52 }
 0x216   : > { %2401 = vrot.lane.b32.xlu0 %v5176_v33, %s4217_s21  ;;  %2212 = vmatpush1.bf16.msra.mxu1 %v1976_v6  ;;  %v1992_v5 = vpop.permute.xlu1 %1991  ;;  %v5502_v6 = vmul.bf16 %v5473_v7, %v4343_v20 }
 0x217   : > { %v1997_v3 = vsel %vm948_vm9, %v1992_v5, %v1994_v13  ;;  %v5509_v5 = vld [vmem:[#allocation2 + $0x58] sm:$0xff] }
 0x218   : > { %v1996_v14 = vpop.permute.xlu0 %1995  ;;  %3100 = vrot.lane.b32.xlu1 %v5306_v40, %s4217_s21 }
 0x219   : > { %v1998_v54 = vsel %vm948_vm9, %v1994_v13, %v1996_v14 }
 0x21a   : > { %2399 = vrot.lane.b32.xlu0 %v5195_v24, %s4217_s21  ;;  %2213 = vmatprep.subr.bf16.mxu1 %v1998_v54  ;;  %v1320_v44 = vpop.permute.xlu1 %1319  ;;  %v5516_v54 = vmul.bf16 %v5470_v59, %v4465_v53 }
 0x21b   : > { %2214 = vmatpush1.bf16.msra.mxu1 %v1997_v3 }
 0x21c   : > { %v1318_v43 = vpop.permute.xlu0 %1317  ;;  %3098 = vrot.lane.b32.xlu1 %v5318_v62, %s4217_s21 }
 0x21d   : > { %v1322_v33 = vsel %vm979_vm10, %v1318_v43, %v1320_v44 }
 0x21e   : > { %3102 = vrot.lane.b32.xlu0 %v5073_v63, %s4217_s21  ;;  %1517 = vmatprep.subr.bf16.mxu0 %v1322_v33  ;;  %v2015_v36 = vpop.permute.xlu1 %2014 }
 0x220   : > { %v1316_v25 = vpop.permute.xlu0 %1315  ;;  %2424 = vrot.lane.b32.xlu1 %v5257_v61, %s4222_s26 }
 0x221   : > { %v1321_v24 = vsel %vm979_vm10, %v1316_v25, %v1318_v43  ;;  %v2482_v43 = vmul.bf16 %v5509_v5, %v4448_v22 }
 0x222   : > { %2422 = vrot.lane.b32.xlu0 %v5264_v37, %s4222_s26  ;;  %1518 = vmatpush1.bf16.msra.mxu0 %v1321_v24  ;;  %v2013_v15 = vpop.permute.xlu1 %2012 }
 0x223   : > { %v2018_v11 = vsel %vm979_vm10, %v2013_v15, %v2015_v36 }
 0x224   : > { %v2017_v9 = vpop.permute.xlu0 %2016  ;;  %3121 = vrot.lane.b32.xlu1 %v5271_v34, %s4222_s26 }
 0x225   : > { %v2019_v41 = vsel %vm979_vm10, %v2015_v36, %v2017_v9  ;;  %v2481_v36 = vmul.bf16 %v5473_v7, %v4652_v18 }
 0x226   : > { %2420 = vrot.lane.b32.xlu0 %v5277_v38, %s4222_s26  ;;  %2215 = vmatprep.subr.bf16.mxu1 %v2019_v41  ;;  %v1338_v61 = vpop.permute.xlu1 %1337  ;;  %v2480_v41 = vmul.bf16 %v5485_v45, %v4450_v23 }
 0x227   : > { %2216 = vmatpush1.bf16.msra.mxu1 %v2018_v11 }
 0x228   : > { %v1336_v29 = vpop.permute.xlu0 %1335  ;;  %3119 = vrot.lane.b32.xlu1 %v5285_v57, %s4222_s26  ;;  %v5458_v57 = vld [vmem:[#allocation2 + $0x68] sm:$0xff] }
 0x229   : > { %v1340_v37 = vsel %vm998_vm11, %v1336_v29, %v1338_v61  ;;  %v5490_v56 = vmul.bf16 %v5458_v57, %v4676_v47  ;;  %v5535_v15 = vmul.bf16 %v5458_v57, %v4652_v18 }
 0x22a   : > { %3123 = vrot.lane.b32.xlu0 %v5291_v35, %s4222_s26  ;;  %1519 = vmatprep.subr.bf16.mxu0 %v1340_v37  ;;  %v2033_v34 = vpop.permute.xlu1 %2032 }
 0x22c   : > { %v1334_v8 = vpop.permute.xlu0 %1333  ;;  %2448 = vrot.lane.b32.xlu1 %v5073_v63, %s4215_s19 }
 0x22d   : > { %v1339_v38 = vsel %vm998_vm11, %v1334_v8, %v1336_v29  ;;  %v5552_v8 = vmul.bf16 %v5470_v59, %v4448_v22 }
 0x22e   : > { %2446 = vrot.lane.b32.xlu0 %v5306_v40, %s4215_s19  ;;  %1520 = vmatpush1.bf16.msra.mxu0 %v1339_v38  ;;  %v2031_v1 = vpop.permute.xlu1 %2030  ;;  %v5466_v40 = vld [vmem:[#allocation2 + $0x60] sm:$0xff] }
 0x22f   : > { %v2036_v32 = vsel %vm998_vm11, %v2031_v1, %v2033_v34  ;;  %v5546_v37 = vmul.bf16 %v5466_v40, %v4450_v23 }
 0x230   : > { %v2035_v12 = vpop.permute.xlu0 %2034  ;;  %3145 = vrot.lane.b32.xlu1 %v5458_v57, %s4215_s19 }
 0x231   : > { %v2037_v35 = vsel %vm998_vm11, %v2033_v34, %v2035_v12 }
 0x232   : > { %2444 = vrot.lane.b32.xlu0 %v5318_v62, %s4215_s19  ;;  %2217 = vmatprep.subr.bf16.mxu1 %v2037_v35  ;;  %v1359_v63 = vpop.permute.xlu1 %1358 }
 0x233   : > { %2218 = vmatpush1.bf16.msra.mxu1 %v2036_v32 }
 0x234   : > { %v1357_v2 = vpop.permute.xlu0 %1356  ;;  %3143 = vrot.lane.b32.xlu1 %v5466_v40, %s4215_s19 }
 0x235   : > { %v1361_v39 = vsel %vm1029_vm12, %v1357_v2, %v1359_v63 }
 0x236   : > { %3147 = vrot.lane.b32.xlu0 %v5470_v59, %s4215_s19  ;;  %1521 = vmatprep.subr.bf16.mxu0 %v1361_v39  ;;  %v2054_v62 = vpop.permute.xlu1 %2053 }
 0x238   : > { %v1355_v58 = vpop.permute.xlu0 %1354  ;;  %2469 = vrot.lane.b32.xlu1 %v5080_v19, %s4218_s22 }
 0x239   : > { %v1360_v16 = vsel %vm1029_vm12, %v1355_v58, %v1357_v2 }
 0x23a   : > { %2467 = vrot.lane.b32.xlu0 %v2460_v60, %s4218_s22  ;;  %1522 = vmatpush1.bf16.msra.mxu0 %v1360_v16  ;;  %v2052_v28 = vpop.permute.xlu1 %2051 }
 0x23b   : > { %2855 = vmatprep.subr.bf16.mxu0 %v5301_v51  ;;  %v2057_v13 = vsel %vm1029_vm12, %v2052_v28, %v2054_v62  ;;  %v5506_v51 = vmul.bf16 %v5466_v40, %v4463_v52 }
 0x23c   : > { %v2056_v19 = vpop.permute.xlu0 %2055  ;;  %3166 = vrot.lane.b32.xlu1 %v5490_v56, %s4218_s22 }
 0x23d   : > { %1534 = vmatmul.mubr.bf16.vlgmr.msra.gmra.mrb[0].mxu0 %v4113_v27  ;;  %v2058_v50 = vsel %vm1029_vm12, %v2054_v62, %v2056_v19  ;;  %v2520_v19 = vmul.bf16 %v5473_v7, %v4680_v4 }
 0x23e   : > { %2465 = vrot.lane.b32.xlu0 %v2459_v0, %s4218_s22  ;;  %2219 = vmatprep.subr.bf16.mxu1 %v2058_v50  ;;  %v2284_v26 = vpop.permute.xlu1 %2283 }
 0x23f   : > { %2856 = vmatpush1.bf16.msra.mxu0 %v5312_v17  ;;  %2220 = vmatpush1.bf16.msra.mxu1 %v2057_v13  ;;  %v5523_v17 = vmul.bf16 %v5485_v45, %v4346_v21  ;;  %v5582_v13 = vmul.bf16 %v5458_v57, %v4680_v4 }
 0x240   : > { %3554 = vmatprep.subr.bf16.mxu1 %v5502_v6  ;;  %v2282_v14 = vpop.permute.xlu0 %2281  ;;  %3164 = vrot.lane.b32.xlu1 %v5506_v51, %s4218_s22 }
 0x241   : > { %v2286_v3 = vsel %vm818_vm5, %v2282_v14, %v2284_v26 }
 0x242   : > { %3168 = vrot.lane.b32.xlu0 %v5516_v54, %s4218_s22  ;;  %2857 = vmatprep.subr.bf16.mxu0 %v2286_v3  ;;  %v2981_v44 = vpop.permute.xlu1 %2980 }
 0x243   : > { %2232 = vmatmul.mubr.bf16.vlgmr.msra.gmra.mrb[0].mxu1 %v4113_v27  ;;  %v2521_v27 = vmul.bf16 %v5509_v5, %v6014_v42 }
 0x244   : > { %3555 = vmatpush1.bf16.msra.mxu1 %v5523_v17  ;;  %v2280_v33 = vpop.permute.xlu0 %2279  ;;  %2490 = vrot.lane.b32.xlu1 %v2482_v43, %s4219_s23 }
 0x245   : > { %v2285_v25 = vsel %vm818_vm5, %v2280_v33, %v2282_v14  ;;  %v2519_v14 = vmul.bf16 %v5485_v45, %v4496_v10  ;;  %v5593_v33 = vmul.bf16 %v5466_v40, %v4496_v10 }
 0x246   : > { %2488 = vrot.lane.b32.xlu0 %v2481_v36, %s4219_s23  ;;  %2858 = vmatpush1.bf16.msra.mxu0 %v2285_v25  ;;  %v2979_v24 = vpop.permute.xlu1 %2978  ;;  %v5599_v25 = vmul.bf16 %v5470_v59, %v6014_v42 }
 0x247   : > { %v2984_v61 = vsel %vm818_vm5, %v2979_v24, %v2981_v44 }
 0x248   : > { %v2983_v9 = vpop.permute.xlu0 %2982  ;;  %3187 = vrot.lane.b32.xlu1 %v5535_v15, %s4219_s23 }
 0x249   : > { %v2985_v11 = vsel %vm818_vm5, %v2981_v44, %v2983_v9 }
 0x24a   : > { %2486 = vrot.lane.b32.xlu0 %v2480_v41, %s4219_s23  ;;  %3556 = vmatprep.subr.bf16.mxu1 %v2985_v11  ;;  %v2305_v29 = vpop.permute.xlu1 %2304  ;;  %v2542_v41 = vmul.bf16 %v5509_v5, %v4524_v31 }
 0x24b   : > { %3557 = vmatpush1.bf16.msra.mxu1 %v2984_v61  ;;  %v2541_v61 = vmul.bf16 %v5473_v7, %v4723_v46 }
 0x24c   : > { %v2303_v34 = vpop.permute.xlu0 %2302  ;;  %3185 = vrot.lane.b32.xlu1 %v5546_v37, %s4219_s23 }
 0x24d   : > { %v2307_v38 = vsel %vm865_vm6, %v2303_v34, %v2305_v29 }
 0x24e   : > { %3189 = vrot.lane.b32.xlu0 %v5552_v8, %s4219_s23  ;;  %2859 = vmatprep.subr.bf16.mxu0 %v2307_v38  ;;  %v3002_v1 = vpop.permute.xlu1 %3001  ;;  %v5613_v38 = vmul.bf16 %v5458_v57, %v4723_v46 }
 0x250   : > { %v2301_v12 = vpop.permute.xlu0 %2300  ;;  %2508 = vrot.lane.b32.xlu1 %v5509_v5, %s4216_s20 }
 0x251   : > { %v2306_v35 = vsel %vm865_vm6, %v2301_v12, %v2303_v34  ;;  %v2540_v12 = vmul.bf16 %v5485_v45, %v4522_v30 }
 0x252   : > { %2506 = vrot.lane.b32.xlu0 %v5473_v7, %s4216_s20  ;;  %2860 = vmatpush1.bf16.msra.mxu0 %v2306_v35  ;;  %v3000_v32 = vpop.permute.xlu1 %2999 }
 0x253   : > { %v3005_v39 = vsel %vm865_vm6, %v3000_v32, %v3002_v1  ;;  %v4118_v32 = vld [vmem:[%s6001_s3 + $0x4] ss:$16 sps:$4 sm:$0xff]  }
 0x254   : > { %v3004_v63 = vpop.permute.xlu0 %3003  ;;  %3205 = vrot.lane.b32.xlu1 %v5458_v57, %s4216_s20  ;;  %2887 = vmatprep.mubr.bf16.mxu0 %v4118_v32 }
 0x255   : > { %v3006_v2 = vsel %vm865_vm6, %v3002_v1, %v3004_v63  ;;  %3586 = vmatprep.mubr.bf16.mxu1 %v4118_v32  ;;  %v5674_v32 = vmul.bf16 %v5470_v59, %v4535_v49 }
 0x256   : > { %2504 = vrot.lane.b32.xlu0 %v5485_v45, %s4216_s20  ;;  %3558 = vmatprep.subr.bf16.mxu1 %v3006_v2  ;;  %v2326_v62 = vpop.permute.xlu1 %2325 }
 0x257   : > { %3559 = vmatpush1.bf16.msra.mxu1 %v3005_v39  ;;  %v5627_v39 = vmul.bf16 %v5466_v40, %v4522_v30 }
 0x258   : > { %v2324_v58 = vpop.permute.xlu0 %2323  ;;  %3203 = vrot.lane.b32.xlu1 %v5466_v40, %s4216_s20 }
 0x259   : > { %v2328_v60 = vsel %vm898_vm7, %v2324_v58, %v2326_v62 }
 0x25a   : > { %3207 = vrot.lane.b32.xlu0 %v5470_v59, %s4216_s20  ;;  %2861 = vmatprep.subr.bf16.mxu0 %v2328_v60  ;;  %v3023_v16 = vpop.permute.xlu1 %3022 }
 0x25c   : > { %v2322_v28 = vpop.permute.xlu0 %2321  ;;  %2529 = vrot.lane.b32.xlu1 %v2521_v27, %s4220_s24 }
 0x25d   : > { %v2327_v0 = vsel %vm898_vm7, %v2322_v28, %v2324_v58  ;;  %v5633_v58 = vmul.bf16 %v5470_v59, %v4524_v31 }
 0x25e   : > { %2527 = vrot.lane.b32.xlu0 %v2520_v19, %s4220_s24  ;;  %2862 = vmatpush1.bf16.msra.mxu0 %v2327_v0  ;;  %v3021_v50 = vpop.permute.xlu1 %3020 }
 0x25f   : > { %v3026_v44 = vsel %vm898_vm7, %v3021_v50, %v3023_v16 }
 0x260   : > { %v3025_v26 = vpop.permute.xlu0 %3024  ;;  %3226 = vrot.lane.b32.xlu1 %v5582_v13, %s4220_s24 }
 0x261   : > { %v3027_v3 = vsel %vm898_vm7, %v3023_v16, %v3025_v26 }
 0x262   : > { %2525 = vrot.lane.b32.xlu0 %v2519_v14, %s4220_s24  ;;  %3560 = vmatprep.subr.bf16.mxu1 %v3027_v3  ;;  %v2344_v43 = vpop.permute.xlu1 %2343 }
 0x263   : > { %3561 = vmatpush1.bf16.msra.mxu1 %v3026_v44 }
 0x264   : > { %v2342_v36 = vpop.permute.xlu0 %2341  ;;  %3224 = vrot.lane.b32.xlu1 %v5593_v33, %s4220_s24 }
 0x265   : > { %v2346_v24 = vsel %vm917_vm8, %v2342_v36, %v2344_v43 }
 0x266   : > { %3228 = vrot.lane.b32.xlu0 %v5599_v25, %s4220_s24  ;;  %2863 = vmatprep.subr.bf16.mxu0 %v2346_v24  ;;  %v3041_v9 = vpop.permute.xlu1 %3040 }
 0x268   : > { %v2340_v11 = vpop.permute.xlu0 %2339  ;;  %2550 = vrot.lane.b32.xlu1 %v2542_v41, %s4221_s25 }
 0x269   : > { %v2345_v29 = vsel %vm917_vm8, %v2340_v11, %v2342_v36  ;;  %v2581_v36 = vmul.bf16 %v5509_v5, %v4535_v49 }
 0x26a   : > { %2548 = vrot.lane.b32.xlu0 %v2541_v61, %s4221_s25  ;;  %2864 = vmatpush1.bf16.msra.mxu0 %v2345_v29  ;;  %v3039_v34 = vpop.permute.xlu1 %3038  ;;  %v3279_v61 = vmul.bf16 %v5458_v57, %v4543_v55 }
 0x26b   : > { %v3044_v63 = vsel %vm917_vm8, %v3039_v34, %v3041_v9 }
 0x26c   : > { %v3043_v1 = vpop.permute.xlu0 %3042  ;;  %3247 = vrot.lane.b32.xlu1 %v5613_v38, %s4221_s25 }
 0x26d   : > { %v3045_v35 = vsel %vm917_vm8, %v3041_v9, %v3043_v1  ;;  %v2580_v9 = vmul.bf16 %v5473_v7, %v4543_v55 }
 0x26e   : > { %2546 = vrot.lane.b32.xlu0 %v2540_v12, %s4221_s25  ;;  %3562 = vmatprep.subr.bf16.mxu1 %v3045_v35  ;;  %v2365_v2 = vpop.permute.xlu1 %2364  ;;  %v3278_v12 = vmul.bf16 %v5466_v40, %v4533_v48 }
 0x26f   : > { %3563 = vmatpush1.bf16.msra.mxu1 %v3044_v63 }
 0x270   : > { %v2363_v62 = vpop.permute.xlu0 %2362  ;;  %3245 = vrot.lane.b32.xlu1 %v5627_v39, %s4221_s25 }
 0x271   : > { %v2367_v60 = vsel %vm948_vm9, %v2363_v62, %v2365_v2 }
 0x272   : > { %3249 = vrot.lane.b32.xlu0 %v5633_v58, %s4221_s25  ;;  %2865 = vmatprep.subr.bf16.mxu0 %v2367_v60  ;;  %v3062_v16 = vpop.permute.xlu1 %3061 }
 0x274   : > { %v2361_v27 = vpop.permute.xlu0 %2360  ;;  %2568 = vrot.lane.b32.xlu1 %v5509_v5, %s4217_s21  ;;  %v2579_v5 = vmul.bf16 %v5485_v45, %v4533_v48 }
 0x275   : > { %v2366_v28 = vsel %vm948_vm9, %v2361_v27, %v2363_v62  ;;  %v5684_v27 = vld [vmem:[#allocation2 + $0x80] sm:$0xff] }
 0x276   : > { %2566 = vrot.lane.b32.xlu0 %v5473_v7, %s4217_s21  ;;  %2866 = vmatpush1.bf16.msra.mxu0 %v2366_v28  ;;  %v3060_v19 = vpop.permute.xlu1 %3059 }
 0x277   : > { %v3065_v26 = vsel %vm948_vm9, %v3060_v19, %v3062_v16 }
 0x278   : > { %v3064_v0 = vpop.permute.xlu0 %3063  ;;  %3265 = vrot.lane.b32.xlu1 %v5458_v57, %s4217_s21 }
 0x279   : > { %v3066_v50 = vsel %vm948_vm9, %v3062_v16, %v3064_v0 }
 0x27a   : > { %2564 = vrot.lane.b32.xlu0 %v5485_v45, %s4217_s21  ;;  %3564 = vmatprep.subr.bf16.mxu1 %v3066_v50  ;;  %v2386_v14 = vpop.permute.xlu1 %2385 }
 0x27b   : > { %3565 = vmatpush1.bf16.msra.mxu1 %v3065_v26  ;;  %v5692_v26 = vld [vmem:[#allocation2 + $0x78] sm:$0xff] }
 0x27c   : > { %v2384_v3 = vpop.permute.xlu0 %2383  ;;  %3263 = vrot.lane.b32.xlu1 %v5466_v40, %s4217_s21 }
 0x27d   : > { %v2388_v44 = vsel %vm979_vm10, %v2384_v3, %v2386_v14  ;;  %v5696_v14 = vld [vmem:[#allocation2 + $0x88] sm:$0xff] }
 0x27e   : > { %3267 = vrot.lane.b32.xlu0 %v5470_v59, %s4217_s21  ;;  %2867 = vmatprep.subr.bf16.mxu0 %v2388_v44  ;;  %v3083_v43 = vpop.permute.xlu1 %3082 }
 0x280   : > { %v2382_v24 = vpop.permute.xlu0 %2381  ;;  %2589 = vrot.lane.b32.xlu1 %v2581_v36, %s4222_s26 }
 0x281   : > { %v2387_v41 = vsel %vm979_vm10, %v2382_v24, %v2384_v3 }
 0x282   : > { %2587 = vrot.lane.b32.xlu0 %v2580_v9, %s4222_s26  ;;  %2868 = vmatpush1.bf16.msra.mxu0 %v2387_v41  ;;  %v3081_v11 = vpop.permute.xlu1 %3080  ;;  %v3324_v9 = vmul.bf16 %v5684_v27, %v4676_v47  ;;  %v3134_v47 = vmul.bf16 %v5458_v57, %v4343_v20 }
 0x283   : > { %v3086_v1 = vsel %vm979_vm10, %v3081_v11, %v3083_v43 }
 0x284   : > { %v3085_v29 = vpop.permute.xlu0 %3084  ;;  %3286 = vrot.lane.b32.xlu1 %v3279_v61, %s4222_s26 }
 0x285   : > { %v3087_v34 = vsel %vm979_vm10, %v3083_v43, %v3085_v29  ;;  %v3325_v29 = vmul.bf16 %v5696_v14, %v4465_v53 }
 0x286   : > { %2585 = vrot.lane.b32.xlu0 %v2579_v5, %s4222_s26  ;;  %3566 = vmatprep.subr.bf16.mxu1 %v3087_v34  ;;  %v2404_v7 = vpop.permute.xlu1 %2403 }
 0x287   : > { %3567 = vmatpush1.bf16.msra.mxu1 %v3086_v1  ;;  %v3345_v1 = vmul.bf16 %v5684_v27, %v4652_v18  ;;  %v3346_v18 = vmul.bf16 %v5696_v14, %v4448_v22 }
 0x288   : > { %v2402_v35 = vpop.permute.xlu0 %2401  ;;  %3284 = vrot.lane.b32.xlu1 %v3278_v12, %s4222_s26 }
 0x289   : > { %v2406_v45 = vsel %vm998_vm11, %v2402_v35, %v2404_v7 }
 0x28a   : > { %3288 = vrot.lane.b32.xlu0 %v5674_v32, %s4222_s26  ;;  %2869 = vmatprep.subr.bf16.mxu0 %v2406_v45  ;;  %v3101_v63 = vpop.permute.xlu1 %3100 }
 0x28c   : > { %v2400_v2 = vpop.permute.xlu0 %2399  ;;  %2613 = vrot.lane.b32.xlu1 %v5470_v59, %s4215_s19 }
 0x28d   : > { %v2405_v62 = vsel %vm998_vm11, %v2400_v2, %v2402_v35 }
 0x28e   : > { %2611 = vrot.lane.b32.xlu0 %v5458_v57, %s4215_s19  ;;  %2870 = vmatpush1.bf16.msra.mxu0 %v2405_v62  ;;  %v3099_v60 = vpop.permute.xlu1 %3098 }
 0x28f   : > { %v3104_v19 = vsel %vm998_vm11, %v3099_v60, %v3101_v63 }
 0x290   : > { %v3103_v16 = vpop.permute.xlu0 %3102  ;;  %3310 = vrot.lane.b32.xlu1 %v5684_v27, %s4215_s19 }
 0x291   : > { %v3105_v28 = vsel %vm998_vm11, %v3101_v63, %v3103_v16 }
 0x292   : > { %2609 = vrot.lane.b32.xlu0 %v5466_v40, %s4215_s19  ;;  %3568 = vmatprep.subr.bf16.mxu1 %v3105_v28  ;;  %v2425_v0 = vpop.permute.xlu1 %2424 }
 0x293   : > { %3569 = vmatpush1.bf16.msra.mxu1 %v3104_v19 }
 0x294   : > { %v2423_v50 = vpop.permute.xlu0 %2422  ;;  %3308 = vrot.lane.b32.xlu1 %v5692_v26, %s4215_s19 }
 0x295   : > { %v2427_v3 = vsel %vm1029_vm12, %v2423_v50, %v2425_v0 }
 0x296   : > { %3312 = vrot.lane.b32.xlu0 %v5696_v14, %s4215_s19  ;;  %2871 = vmatprep.subr.bf16.mxu0 %v2427_v3  ;;  %v3122_v44 = vpop.permute.xlu1 %3121 }
 0x298   : > { %v2421_v43 = vpop.permute.xlu0 %2420  ;;  %2634 = vrot.lane.b32.xlu1 %v5516_v54, %s4218_s22 }
 0x299   : > { %v2426_v36 = vsel %vm1029_vm12, %v2421_v43, %v2423_v50  ;;  %v3384_v43 = vmul.bf16 %v5684_v27, %v4680_v4  ;;  %v3385_v4 = vmul.bf16 %v5696_v14, %v6014_v42  ;;  %v3405_v42 = vmul.bf16 %v5684_v27, %v4723_v46 }
 0x29a   : > { %2632 = vrot.lane.b32.xlu0 %v5490_v56, %s4218_s22  ;;  %2872 = vmatpush1.bf16.msra.mxu0 %v2426_v36  ;;  %v3120_v24 = vpop.permute.xlu1 %3119  ;;  %v3323_v56 = vmul.bf16 %v5692_v26, %v4463_v52  ;;  %v3133_v52 = vmul.bf16 %v5466_v40, %v4346_v21  ;;  %v3406_v46 = vmul.bf16 %v5696_v14, %v4524_v31 }
 0x29b   : > { %2873 = vmatprep.subr.bf16.mxu0 %v5502_v6  ;;  %v3125_v61 = vsel %vm1029_vm12, %v3120_v24, %v3122_v44 }
 0x29c   : > { %v3124_v41 = vpop.permute.xlu0 %3123  ;;  %3331 = vrot.lane.b32.xlu1 %v3324_v9, %s4218_s22 }
 0x29d   : > { %v3126_v11 = vsel %vm1029_vm12, %v3122_v44, %v3124_v41 }
 0x29e   : > { %2630 = vrot.lane.b32.xlu0 %v5506_v51, %s4218_s22  ;;  %2874 = vmatpush1.bf16.msra.mxu0 %v5523_v17  ;;  %v2449_v54 = vpop.permute.xlu1 %2448 }
 0x29f   : > { %3570 = vmatprep.subr.bf16.mxu1 %v3126_v11 }
 0x2a0   : > { %3571 = vmatpush1.bf16.msra.mxu1 %v3125_v61  ;;  %v2447_v6 = vpop.permute.xlu0 %2446  ;;  %3329 = vrot.lane.b32.xlu1 %v3323_v56, %s4218_s22 }
 0x2a1   : > { %3572 = vmatprep.subr.bf16.mxu1 %v3134_v47  ;;  %v2451_v51 = vsel %vm818_vm5, %v2447_v6, %v2449_v54 }
 0x2a2   : > { %3333 = vrot.lane.b32.xlu0 %v3325_v29, %s4218_s22  ;;  %2875 = vmatprep.subr.bf16.mxu0 %v2451_v51  ;;  %v3146_v17 = vpop.permute.xlu1 %3145  ;;  %s4004_s22 = sshll.u32 %s4198_s30, 11 }
 0x2a3   : > { %s5940_s12 = scalar_lea.hbm %s6005_s7, %s4004_s22 }
 0x2a4   : > { %3573 = vmatpush1.bf16.msra.mxu1 %v3133_v52  ;;  %v2445_v5 = vpop.permute.xlu0 %2444  ;;  %2655 = vrot.lane.b32.xlu1 %v5552_v8, %s4219_s23 }
 0x2a5   : > { %v2450_v34 = vsel %vm818_vm5, %v2445_v5, %v2447_v6 }
 0x2a6   : > { %2653 = vrot.lane.b32.xlu0 %v5535_v15, %s4219_s23  ;;  %2876 = vmatpush1.bf16.msra.mxu0 %v2450_v34  ;;  %v3144_v53 = vpop.permute.xlu1 %3143  ;;  %v3344_v15 = vmul.bf16 %v5692_v26, %v4450_v23 }
 0x2a7   : > { %v3149_v35 = vsel %vm818_vm5, %v3144_v53, %v3146_v17 }
 0x2a8   : > { %v3148_v7 = vpop.permute.xlu0 %3147  ;;  %3352 = vrot.lane.b32.xlu1 %v3345_v1, %s4219_s23 }
 0x2a9   : > { %v3150_v12 = vsel %vm818_vm5, %v3146_v17, %v3148_v7 }
 0x2aa   : > { %2651 = vrot.lane.b32.xlu0 %v5546_v37, %s4219_s23  ;;  %3574 = vmatprep.subr.bf16.mxu1 %v3150_v12  ;;  %v2470_v8 = vpop.permute.xlu1 %2469 }
 0x2ab   : > { %3575 = vmatpush1.bf16.msra.mxu1 %v3149_v35 }
 0x2ac   : > { %v2468_v45 = vpop.permute.xlu0 %2467  ;;  %3350 = vrot.lane.b32.xlu1 %v3344_v15, %s4219_s23  ;;  %v4116_v15 = vld [vmem:[%s6001_s3] ss:$16 sps:$4 sm:$0xff]  }
 0x2ad   : > { %v2472_v63 = vsel %vm865_vm6, %v2468_v45, %v2470_v8 }
 0x2ae   : > { %3354 = vrot.lane.b32.xlu0 %v3346_v18, %s4219_s23  ;;  %2877 = vmatprep.subr.bf16.mxu0 %v2472_v63  ;;  %v3167_v2 = vpop.permute.xlu1 %3166  ;;  %v3444_v18 = vmul.bf16 %v5684_v27, %v4543_v55  ;;  %v2741_v63 = vld [vmem:[#allocation2 + $0x60] sm:$0xff]  ;;  %s3889_s23 = sshll.u32 %s4198_s30, 2 }
 0x2af   : > { %p345_p11 = scmp.lt.s32.totalorder %s3889_s23, 15 }
 0x2b0   : > { %v2466_v62 = vpop.permute.xlu0 %2465  ;;  %2673 = vrot.lane.b32.xlu1 %v5470_v59, %s4216_s20 }
 0x2b1   : > { %v2471_v37 = vsel %vm865_vm6, %v2466_v62, %v2468_v45  ;;  %v2744_v62 = vmul.bf16 %v2741_v63, %v4533_v48  ;;  %s6025_s23 = smov (!%p345_p11, %s3889_s23), 15 }
 0x2b2   : > { %2671 = vrot.lane.b32.xlu0 %v5458_v57, %s4216_s20  ;;  %2878 = vmatpush1.bf16.msra.mxu0 %v2471_v37  ;;  %v3165_v23 = vpop.permute.xlu1 %3164 }
 0x2b3   : > { %v3170_v16 = vsel %vm865_vm6, %v3165_v23, %v3167_v2 }
 0x2b4   : > { %v3169_v60 = vpop.permute.xlu0 %3168  ;;  %3370 = vrot.lane.b32.xlu1 %v5684_v27, %s4216_s20 }
 0x2b5   : > { %v3171_v22 = vsel %vm865_vm6, %v3167_v2, %v3169_v60 }
 0x2b6   : > { %2669 = vrot.lane.b32.xlu0 %v5466_v40, %s4216_s20  ;;  %3576 = vmatprep.subr.bf16.mxu1 %v3171_v22  ;;  %v2491_v28 = vpop.permute.xlu1 %2490 }
 0x2b7   : > { %3577 = vmatpush1.bf16.msra.mxu1 %v3170_v16  ;;  %v3445_v16 = vmul.bf16 %v5696_v14, %v4535_v49 }
 0x2b8   : > { %v2489_v19 = vpop.permute.xlu0 %2488  ;;  %3368 = vrot.lane.b32.xlu1 %v5692_v26, %s4216_s20 }
 0x2b9   : > { %v2493_v57 = vsel %vm898_vm7, %v2489_v19, %v2491_v28 }
 0x2ba   : > { %3372 = vrot.lane.b32.xlu0 %v5696_v14, %s4216_s20  ;;  %2879 = vmatprep.subr.bf16.mxu0 %v2493_v57  ;;  %v3188_v0 = vpop.permute.xlu1 %3187  ;;  %s4223_s20 = smov [#allocation4]  }
 0x2bc   : > { %v2487_v50 = vpop.permute.xlu0 %2486  ;;  %2694 = vrot.lane.b32.xlu1 %v5599_v25, %s4220_s24 }
 0x2bd   : > { %v2492_v3 = vsel %vm898_vm7, %v2487_v50, %v2489_v19 }
 0x2be   : > { %2692 = vrot.lane.b32.xlu0 %v5582_v13, %s4220_s24  ;;  %2880 = vmatpush1.bf16.msra.mxu0 %v2492_v3  ;;  %v3186_v44 = vpop.permute.xlu1 %3185  ;;  %v3383_v13 = vmul.bf16 %v5692_v26, %v4496_v10 }
 0x2bf   : > { %v3191_v9 = vsel %vm898_vm7, %v3186_v44, %v3188_v0 }
 0x2c0   : > { %v3190_v36 = vpop.permute.xlu0 %3189  ;;  %3391 = vrot.lane.b32.xlu1 %v3384_v43, %s4220_s24 }
 0x2c1   : > { %v3192_v24 = vsel %vm898_vm7, %v3188_v0, %v3190_v36 }
 0x2c2   : > { %2690 = vrot.lane.b32.xlu0 %v5593_v33, %s4220_s24  ;;  %3578 = vmatprep.subr.bf16.mxu1 %v3192_v24  ;;  %v2509_v25 = vpop.permute.xlu1 %2508 }
 0x2c3   : > { %3579 = vmatpush1.bf16.msra.mxu1 %v3191_v9 }
 0x2c4   : > { %v2507_v41 = vpop.permute.xlu0 %2506  ;;  %3389 = vrot.lane.b32.xlu1 %v3383_v13, %s4220_s24 }
 0x2c5   : > { %v2511_v11 = vsel %vm917_vm8, %v2507_v41, %v2509_v25 }
 0x2c6   : > { %3393 = vrot.lane.b32.xlu0 %v3385_v4, %s4220_s24  ;;  %2881 = vmatprep.subr.bf16.mxu0 %v2511_v11  ;;  %v3206_v54 = vpop.permute.xlu1 %3205  ;;  %v2599_v4 = vmul.bf16 %v2741_v63, %v4346_v21  ;;  %s4000_s24 = sshll.u32 %s6025_s23, 5 }
 0x2c7   : > { %s5866_s16 = scalar_lea.vmem %s6004_s6, %s4000_s24 }
 0x2c8   : > { %v2505_v56 = vpop.permute.xlu0 %2504  ;;  %2715 = vrot.lane.b32.xlu1 %v5633_v58, %s4221_s25 }
 0x2c9   : > { %v2510_v33 = vsel %vm917_vm8, %v2505_v56, %v2507_v41 }
 0x2ca   : > { %2713 = vrot.lane.b32.xlu0 %v5613_v38, %s4221_s25  ;;  %2882 = vmatpush1.bf16.msra.mxu0 %v2510_v33  ;;  %v3204_v10 = vpop.permute.xlu1 %3203  ;;  %v3404_v38 = vmul.bf16 %v5692_v26, %v4522_v30  ;;  %v5802_v30 = vld [vmem:[#allocation2 + $0x68] sm:$0xff]  ;;  %v3299_v33 = vmul.bf16 %v5684_v27, %v4343_v20 }
 0x2cb   : > { %v3209_v6 = vsel %vm917_vm8, %v3204_v10, %v3206_v54  ;;  %v2600_v25 = vmul.bf16 %v5802_v30, %v4343_v20 }
 0x2cc   : > { %v3208_v61 = vpop.permute.xlu0 %3207  ;;  %3412 = vrot.lane.b32.xlu1 %v3405_v42, %s4221_s25 }
 0x2cd   : > { %v3210_v47 = vsel %vm917_vm8, %v3206_v54, %v3208_v61  ;;  %v3298_v61 = vmul.bf16 %v5692_v26, %v4346_v21 }
 0x2ce   : > { %2711 = vrot.lane.b32.xlu0 %v5627_v39, %s4221_s25  ;;  %3580 = vmatprep.subr.bf16.mxu1 %v3210_v47  ;;  %v2530_v58 = vpop.permute.xlu1 %2529 }
 0x2cf   : > { %3581 = vmatpush1.bf16.msra.mxu1 %v3209_v6 }
 0x2d0   : > { %v2528_v29 = vpop.permute.xlu0 %2527  ;;  %3410 = vrot.lane.b32.xlu1 %v3404_v38, %s4221_s25 }
 0x2d1   : > { %v2532_v51 = vsel %vm948_vm9, %v2528_v29, %v2530_v58 }
 0x2d2   : > { %3414 = vrot.lane.b32.xlu0 %v3406_v46, %s4221_s25  ;;  %2883 = vmatprep.subr.bf16.mxu0 %v2532_v51  ;;  %v3227_v52 = vpop.permute.xlu1 %3226  ;;  %s328_s25 = sand.u32 1, %s4190_s28  }
 0x2d3   : > { %s3888_s11 = sshll.u32 %s328_s25, 7 }
 0x2d4   : > { %v2526_v17 = vpop.permute.xlu0 %2525  ;;  %2733 = vrot.lane.b32.xlu1 %v5470_v59, %s4217_s21  ;;  %s5876_s19 = scalar_lea.vmem [#allocation4], %s3888_s11 }
 0x2d5   : > { %v2531_v39 = vsel %vm948_vm9, %v2526_v17, %v2528_v29  ;;  %v1435_v17 = vld [vmem:[%s5866_s16 + $0x8] sm:$0xff]  ;;  %s3697_s23 = sshll.u32 %s5876_s19, 4  ;;  %s5942_s23 = int_to_ptr.vmem [resolvable:$true] %s3697_s23 }
 0x2d6   : > { %2731 = vrot.lane.b32.xlu0 %v5802_v30, %s4217_s21  ;;  %2884 = vmatpush1.bf16.msra.mxu0 %v2531_v39  ;;  %v3225_v5 = vpop.permute.xlu1 %3224  ;;  %s4128_s11 = scalar_lea.vmem %s5942_s23, 2048 }
 0x2d7   : > { %v3230_v53 = vsel %vm948_vm9, %v3225_v5, %v3227_v52  ;;  %v1436_v5 = vld [vmem:[%s5866_s16 + $0x10] sm:$0xff]  ;;  %p4129_p12 = scmp.ne.s32.totalorder %s5942_s23, %s4128_s11 }
 0x2d8   : > { %v3229_v31 = vpop.permute.xlu0 %3228  ;;  %3430 = vrot.lane.b32.xlu1 %v5684_v27, %s4217_s21 }
 0x2d9   : > { %v3231_v34 = vsel %vm948_vm9, %v3227_v52, %v3229_v31  ;;  %v1434_v52 = vld [vmem:[%s5866_s16] sm:$0xff]  ;;  %p4130_p13 = pnand %p4129_p12, %p4310_p4 }
 0x2da   : > { %2729 = vrot.lane.b32.xlu0 %v5466_v40, %s4217_s21  ;;  %3582 = vmatprep.subr.bf16.mxu1 %v3231_v34  ;;  %v2551_v59 = vpop.permute.xlu1 %2550  ;;  %v2745_v40 = vmul.bf16 %v5802_v30, %v4543_v55  ;;  %v3443_v55 = vmul.bf16 %v5692_v26, %v4533_v48 }
 0x2db   : > { %3583 = vmatpush1.bf16.msra.mxu1 %v3230_v53  ;;  %p4131_p0 = pneg %p4130_p13 }
 0x2dc   : > { %v2549_v1 = vpop.permute.xlu0 %2548  ;;  %3428 = vrot.lane.b32.xlu1 %v5692_v26, %s4217_s21 }
 0x2dd   : > { %v2553_v7 = vsel %vm979_vm10, %v2549_v1, %v2551_v59  ;;  %v1437_v59 = vld [vmem:[%s5866_s16 + $0x18] sm:$0xff] }
 0x2de   : > { %3432 = vrot.lane.b32.xlu0 %v5696_v14, %s4217_s21  ;;  %2885 = vmatprep.subr.bf16.mxu0 %v2553_v7  ;;  %v3248_v12 = vpop.permute.xlu1 %3247 }
 0x2e0   : > { %v2547_v35 = vpop.permute.xlu0 %2546  ;;  %2754 = vrot.lane.b32.xlu1 %v5674_v32, %s4222_s26  ;;  %v4121_v32 = vld [vmem:[%s6001_s3 + $0xc] ss:$16 sps:$4 sm:$0xff]  }
 0x2e1   : > { %v2552_v8 = vsel %vm979_vm10, %v2547_v35, %v2549_v1 }
 0x2e2   : > { %2752 = vrot.lane.b32.xlu0 %v2745_v40, %s4222_s26  ;;  %2886 = vmatpush1.bf16.msra.mxu0 %v2552_v8  ;;  %v3246_v45 = vpop.permute.xlu1 %3245 }
 0x2e3   : > { %v3251_v23 = vsel %vm979_vm10, %v3246_v45, %v3248_v12 }
 0x2e4   : > { %v3250_v2 = vpop.permute.xlu0 %3249  ;;  %3451 = vrot.lane.b32.xlu1 %v3444_v18, %s4222_s26 }
 0x2e5   : > { %v3252_v37 = vsel %vm979_vm10, %v3248_v12, %v3250_v2  ;;  %2888 = vmatmul.mubr.bf16.vlgmr.msra.gmra.mrb[4].mxu0 %v4116_v15 }
 0x2e6   : > { %2750 = vrot.lane.b32.xlu0 %v2744_v62, %s4222_s26  ;;  %3584 = vmatprep.subr.bf16.mxu1 %v3252_v37  ;;  %v2569_v60 = vpop.permute.xlu1 %2568 }
 0x2e7   : > { %3585 = vmatpush1.bf16.msra.mxu1 %v3251_v23  ;;  %2930 = vmatprep.mubr.bf16.mxu0 %v4121_v32  ;;  %v3959_v23 = vld [vmem:[%s5866_s16 + $0x28] sm:$0xff] }
 0x2e8   : > { %v2567_v22 = vpop.permute.xlu0 %2566  ;;  %3449 = vrot.lane.b32.xlu1 %v3443_v55, %s4222_s26 }
 0x2e9   : > { %v2571_v28 = vsel %vm998_vm11, %v2567_v22, %v2569_v60 }
 0x2ea   : > { %3453 = vrot.lane.b32.xlu0 %v3445_v16, %s4222_s26  ;;  %2898 = vmatprep.subr.bf16.mxu0 %v2571_v28  ;;  %v3266_v19 = vpop.permute.xlu1 %3265  ;;  %v3960_v28 = vld [vmem:[%s5866_s16 + $0x30] sm:$0xff] }
 0x2eb   : > { %3587 = vmatmul.mubr.bf16.vlgmr.msra.gmra.mrb[4].mxu1 %v4116_v15 }
 0x2ec   : > { %v2565_v57 = vpop.permute.xlu0 %2564  ;;  %3629 = vmatprep.mubr.bf16.mxu1 %v4121_v32  ;;  %v3958_v32 = vld [vmem:[%s5866_s16 + $0x20] sm:$0xff] }
 0x2ed   : > { %v2570_v0 = vsel %vm998_vm11, %v2565_v57, %v2567_v22 }
 0x2ee   : > { %2899 = vmatpush1.bf16.msra.mxu0 %v2570_v0  ;;  %v3264_v48 = vpop.permute.xlu1 %3263 }
 0x2ef   : > { %v3269_v44 = vsel %vm998_vm11, %v3264_v48, %v3266_v19  ;;  %v3961_v48 = vld [vmem:[%s5866_s16 + $0x38] sm:$0xff] }
 0x2f0   : > { %v3268_v50 = vpop.permute.xlu0 %3267 }
 0x2f1   : > { %v3270_v3 = vsel %vm998_vm11, %v3266_v19, %v3268_v50 }
 0x2f2   : > { %3597 = vmatprep.subr.bf16.mxu1 %v3270_v3  ;;  %v2590_v49 = vpop.permute.xlu1 %2589 }
 0x2f3   : > { %3598 = vmatpush1.bf16.msra.mxu1 %v3269_v44 }
 0x2f4   : > { %v2588_v14 = vpop.permute.xlu0 %2587 }
 0x2f5   : > { %v2592_v43 = vsel %vm1029_vm12, %v2588_v14, %v2590_v49 }
 0x2f6   : > { %2900 = vmatprep.subr.bf16.mxu0 %v2592_v43  ;;  %v3287_v36 = vpop.permute.xlu1 %3286 }
 0x2f8   : > { %v2586_v24 = vpop.permute.xlu0 %2585 }
 0x2f9   : > { %v2591_v9 = vsel %vm1029_vm12, %v2586_v24, %v2588_v14 }
 0x2fa   : > { %2901 = vmatpush1.bf16.msra.mxu0 %v2591_v9  ;;  %v3285_v13 = vpop.permute.xlu1 %3284 }
 0x2fb   : > { %2902 = vmatprep.subr.bf16.mxu0 %v2600_v25  ;;  %v3290_v54 = vsel %vm1029_vm12, %v3285_v13, %v3287_v36 }
 0x2fc   : > { %v3289_v41 = vpop.permute.xlu0 %3288 }
 0x2fd   : > { %v3291_v11 = vsel %vm1029_vm12, %v3287_v36, %v3289_v41 }
 0x2fe   : > { %2903 = vmatpush1.bf16.msra.mxu0 %v2599_v4  ;;  %3599 = vmatprep.subr.bf16.mxu1 %v3291_v11  ;;  %v2614_v56 = vpop.permute.xlu1 %2613 }
 0x2ff   : > { %3600 = vmatpush1.bf16.msra.mxu1 %v3290_v54 }
 0x300   : > { %3601 = vmatprep.subr.bf16.mxu1 %v3299_v33  ;;  %v2612_v10 = vpop.permute.xlu0 %2611 }
 0x301   : > { %v2616_v42 = vsel %vm818_vm5, %v2612_v10, %v2614_v56 }
 0x302   : > { %2904 = vmatprep.subr.bf16.mxu0 %v2616_v42  ;;  %v3311_v47 = vpop.permute.xlu1 %3310 }
 0x303   : > { %3602 = vmatpush1.bf16.msra.mxu1 %v3298_v61 }
 0x304   : > { %v2610_v6 = vpop.permute.xlu0 %2609 }
 0x305   : > { %v2615_v58 = vsel %vm818_vm5, %v2610_v6, %v2612_v10 }
 0x306   : > { %2905 = vmatpush1.bf16.msra.mxu0 %v2615_v58  ;;  %v3309_v20 = vpop.permute.xlu1 %3308 }
 0x307   : > { %v3314_v29 = vsel %vm818_vm5, %v3309_v20, %v3311_v47 }
 0x308   : > { %v3313_v27 = vpop.permute.xlu0 %3312 }
 0x309   : > { %v3315_v38 = vsel %vm818_vm5, %v3311_v47, %v3313_v27 }
 0x30a   : > { %3603 = vmatprep.subr.bf16.mxu1 %v3315_v38  ;;  %v2635_v46 = vpop.permute.xlu1 %2634 }
 0x30b   : > { %3604 = vmatpush1.bf16.msra.mxu1 %v3314_v29 }
 0x30c   : > { %v2633_v21 = vpop.permute.xlu0 %2632 }
 0x30d   : > { %v2637_v26 = vsel %vm865_vm6, %v2633_v21, %v2635_v46 }
 0x30e   : > { %2906 = vmatprep.subr.bf16.mxu0 %v2637_v26  ;;  %v3332_v51 = vpop.permute.xlu1 %3331 }
 0x310   : > { %v2631_v39 = vpop.permute.xlu0 %2630  ;;  %v1535_v30 = vpop.f32.mrb[0].mxu0 }
 0x311   : > { %v2636_v31 = vsel %vm865_vm6, %v2631_v39, %v2633_v21  ;;  %v4005_v34 = vadd.f32 %v1535_v30, %v1434_v52  ;;  %v1537_v53 = vpop.f32.mrb[1].mxu0 }
 0x312   : > { %2907 = vmatpush1.bf16.msra.mxu0 %v2636_v31  ;;  %v3330_v1 = vpop.permute.xlu1 %3329  ;;  %v4006_v7 = vadd.f32 %v1537_v53, %v1435_v17  ;;  %v1539_v12 = vpop.f32.mrb[2].mxu0 }
 0x313   : > { %1544 = vst [vmem:[%s5876_s19] sm:$0xff] %v4005_v34  ;;  %v1556_v35 = vmul.f32 %v4005_v34, %v4005_v34  ;;  %v4007_v40 = vadd.f32 %v1539_v12, %v1436_v5  ;;  %v1541_v8 = vpop.f32.mrb[3].mxu0  ;;  %v3335_v2 = vsel %vm865_vm6, %v3330_v1, %v3332_v51 }
 0x314   : > { %v3334_v15 = vpop.permute.xlu0 %3333  ;;  %1545 = vst [vmem:[%s5876_s19 + $0x8] sm:$0xff] %v4006_v7  ;;  %v1557_v45 = vmul.f32 %v4006_v7, %v4006_v7  ;;  %v1548_v18 = vadd.f32 %v4006_v7, %v4005_v34  ;;  %v4008_v63 = vadd.f32 %v1541_v8, %v1437_v59 }
 0x315   : > { %v3336_v62 = vsel %vm865_vm6, %v3332_v51, %v3334_v15  ;;  %1546 = vst [vmem:[%s5876_s19 + $0x10] sm:$0xff] %v4007_v40  ;;  %v1558_v37 = vmul.f32 %v4007_v40, %v4007_v40 }
 0x316   : > { %3605 = vmatprep.subr.bf16.mxu1 %v3336_v62  ;;  %v2656_v60 = vpop.permute.xlu1 %2655  ;;  %1549 = vadd.xlane.f32.xlu0 %v1548_v18  ;;  %1547 = vst [vmem:[%s5876_s19 + $0x18] sm:$0xff] %v4008_v63  ;;  %v1559_v55 = vmul.f32 %v4008_v63, %v4008_v63  ;;  %v2233_v22 = vpop.f32.mrb[0].mxu1  ;;  %v1560_v16 = vadd.f32 %v1557_v45, %v1556_v35 }
 0x317   : > { %v1551_v19 = vadd.f32 %v4008_v63, %v4007_v40  ;;  %3606 = vmatpush1.bf16.msra.mxu1 %v3335_v2  ;;  %v4009_v57 = vadd.f32 %v3958_v32, %v2233_v22  ;;  %v2235_v0 = vpop.f32.mrb[1].mxu1 }
 0x318   : > { %v2654_v50 = vpop.permute.xlu0 %2653  ;;  %v4010_v3 = vadd.f32 %v3959_v23, %v2235_v0  ;;  %v2237_v44 = vpop.f32.mrb[2].mxu1  ;;  %v1563_v49 = vadd.f32 %v1559_v55, %v1558_v37 }
 0x319   : > { %1552 = vadd.xlane.f32.xlu1 %v1551_v19  ;;  %v2658_v14 = vsel %vm898_vm7, %v2654_v50, %v2656_v60  ;;  %3966 = vst [vmem:[%s5876_s19 + $0x20] sm:$0xff] %v4009_v57  ;;  %v2255_v43 = vmul.f32 %v4009_v57, %v4009_v57  ;;  %v4011_v36 = vadd.f32 %v3960_v28, %v2237_v44  ;;  %v2239_v24 = vpop.f32.mrb[3].mxu1 }
 0x31a   : > { %2908 = vmatprep.subr.bf16.mxu0 %v2658_v14  ;;  %v3353_v9 = vpop.permute.xlu1 %3352  ;;  %1561 = vadd.xlane.f32.xlu0 %v1560_v16  ;;  %3967 = vst [vmem:[%s5876_s19 + $0x28] sm:$0xff] %v4010_v3  ;;  %v2256_v25 = vmul.f32 %v4010_v3, %v4010_v3  ;;  %v4012_v13 = vadd.f32 %v3961_v48, %v2239_v24 }
 0x31b   : > { %v2247_v41 = vadd.f32 %v4010_v3, %v4009_v57  ;;  %3968 = vst [vmem:[%s5876_s19 + $0x30] sm:$0xff] %v4011_v36  ;;  %v2257_v4 = vmul.f32 %v4011_v36, %v4011_v36 }
 0x31c   : > { %v2652_v11 = vpop.permute.xlu0 %2651  ;;  %3969 = vst [vmem:[%s5876_s19 + $0x38] sm:$0xff] %v4012_v13  ;;  %v2258_v54 = vmul.f32 %v4012_v13, %v4012_v13  ;;  %v2250_v56 = vadd.f32 %v4012_v13, %v4011_v36  ;;  %v2259_v33 = vadd.f32 %v2256_v25, %v2255_v43  ;;  %v4119_v43 = vld [vmem:[%s6001_s3 + $0x8] ss:$16 sps:$4 sm:$0xff]   ;;  %v3970_v13 = vld [vmem:[%s5866_s16 + $0x40] sm:$0xff] }
 0x31d   : > { %2248 = vadd.xlane.f32.xlu1 %v2247_v41  ;;  %v2657_v10 = vsel %vm898_vm7, %v2652_v11, %v2654_v50  ;;  %v3971_v41 = vld [vmem:[%s5866_s16 + $0x48] sm:$0xff]  ;;  %v3972_v11 = vld [vmem:[%s5866_s16 + $0x50] sm:$0xff] }
 0x31e   : > { %2909 = vmatpush1.bf16.msra.mxu0 %v2657_v10  ;;  %v3351_v42 = vpop.permute.xlu1 %3350  ;;  %1564 = vadd.xlane.f32.xlu0 %v1563_v49  ;;  %v2262_v61 = vadd.f32 %v2258_v54, %v2257_v4 }
 0x31f   : > { %v3356_v58 = vsel %vm898_vm7, %v3351_v42, %v3353_v9 }
 0x320   : > { %v3355_v47 = vpop.permute.xlu0 %3354 }
 0x321   : > { %2260 = vadd.xlane.f32.xlu1 %v2259_v33  ;;  %v3357_v6 = vsel %vm898_vm7, %v3353_v9, %v3355_v47  ;;  %v3973_v33 = vld [vmem:[%s5866_s16 + $0x58] sm:$0xff] }
 0x322   : > { %3607 = vmatprep.subr.bf16.mxu1 %v3357_v6  ;;  %v2674_v20 = vpop.permute.xlu1 %2673  ;;  %2251 = vadd.xlane.f32.xlu0 %v2250_v56 }
 0x323   : > { %3608 = vmatpush1.bf16.msra.mxu1 %v3356_v58  ;;  %v3982_v58 = vld [vmem:[%s5866_s16 + $0x60] sm:$0xff] }
 0x324   : > { %v2672_v27 = vpop.permute.xlu0 %2671 }
 0x325   : > { %v2676_v38 = vsel %vm917_vm8, %v2672_v27, %v2674_v20 }
 0x326   : > { %2910 = vmatprep.subr.bf16.mxu0 %v2676_v38  ;;  %v3371_v29 = vpop.permute.xlu1 %3370  ;;  %2263 = vadd.xlane.f32.xlu0 %v2262_v61  ;;  %v3983_v38 = vld [vmem:[%s5866_s16 + $0x68] sm:$0xff] }
 0x328   : > { %v2670_v46 = vpop.permute.xlu0 %2669 }
 0x329   : > { %v2675_v21 = vsel %vm917_vm8, %v2670_v46, %v2672_v27 }
 0x32a   : > { %2911 = vmatpush1.bf16.msra.mxu0 %v2675_v21  ;;  %v3369_v26 = vpop.permute.xlu1 %3368 }
 0x32b   : > { %v3374_v17 = vsel %vm917_vm8, %v3369_v26, %v3371_v29  ;;  %v3984_v26 = vld [vmem:[%s5866_s16 + $0x70] sm:$0xff] }
 0x32c   : > { %v3373_v51 = vpop.permute.xlu0 %3372 }
 0x32d   : > { %v3375_v52 = vsel %vm917_vm8, %v3371_v29, %v3373_v51 }
 0x32e   : > { %3609 = vmatprep.subr.bf16.mxu1 %v3375_v52  ;;  %v2695_v39 = vpop.permute.xlu1 %2694 }
 0x32f   : > { %3610 = vmatpush1.bf16.msra.mxu1 %v3374_v17 }
 0x330   : > { %v2693_v30 = vpop.permute.xlu0 %2692 }
 0x331   : > { %v2697_v5 = vsel %vm948_vm9, %v2693_v30, %v2695_v39  ;;  %v3985_v39 = vld [vmem:[%s5866_s16 + $0x78] sm:$0xff]  ;;  %s5946_s16 = scalar_lea.sflag [#allocation5], %s328_s25 }
 0x332   : > { %2912 = vmatprep.subr.bf16.mxu0 %v2697_v5  ;;  %v3392_v31 = vpop.permute.xlu1 %3391 }
 0x334   : > { %v2691_v34 = vpop.permute.xlu0 %2690 }
 0x335   : > { %v2696_v53 = vsel %vm948_vm9, %v2691_v34, %v2693_v30 }
 0x336   : > { %2913 = vmatpush1.bf16.msra.mxu0 %v2696_v53  ;;  %v3390_v59 = vpop.permute.xlu1 %3389 }
 0x337   : > { %v3395_v12 = vsel %vm948_vm9, %v3390_v59, %v3392_v31 }
 0x338   : > { %v3394_v1 = vpop.permute.xlu0 %3393 }
 0x339   : > { %v3396_v7 = vsel %vm948_vm9, %v3392_v31, %v3394_v1 }
 0x33a   : > { %3611 = vmatprep.subr.bf16.mxu1 %v3396_v7  ;;  %v2716_v35 = vpop.permute.xlu1 %2715 }
 0x33b   : > { %3612 = vmatpush1.bf16.msra.mxu1 %v3395_v12 }
 0x33c   : > { %v2714_v40 = vpop.permute.xlu0 %2713 }
 0x33d   : > { %v2718_v8 = vsel %vm979_vm10, %v2714_v40, %v2716_v35 }
 0x33e   : > { %2914 = vmatprep.subr.bf16.mxu0 %v2718_v8  ;;  %v3413_v15 = vpop.permute.xlu1 %3412 }
 0x340   : > { %v2712_v45 = vpop.permute.xlu0 %2711 }
 0x341   : > { %v2717_v18 = vsel %vm979_vm10, %v2712_v45, %v2714_v40 }
 0x342   : > { %2915 = vmatpush1.bf16.msra.mxu0 %v2717_v18  ;;  %v3411_v63 = vpop.permute.xlu1 %3410 }
 0x343   : > { %v3416_v62 = vsel %vm979_vm10, %v3411_v63, %v3413_v15 }
 0x344   : > { %v3415_v32 = vpop.permute.xlu0 %3414 }
 0x345   : > { %v3417_v2 = vsel %vm979_vm10, %v3413_v15, %v3415_v32 }
 0x346   : > { %3613 = vmatprep.subr.bf16.mxu1 %v3417_v2  ;;  %v2734_v37 = vpop.permute.xlu1 %2733 }
 0x347   : > { %3614 = vmatpush1.bf16.msra.mxu1 %v3416_v62 }
 0x348   : > { %v2732_v23 = vpop.permute.xlu0 %2731 }
 0x349   : > { %v2736_v60 = vsel %vm998_vm11, %v2732_v23, %v2734_v37 }
 0x34a   : > { %2916 = vmatprep.subr.bf16.mxu0 %v2736_v60  ;;  %v3431_v55 = vpop.permute.xlu1 %3430 }
 0x34c   : > { %v2730_v22 = vpop.permute.xlu0 %2729 }
 0x34d   : > { %v2735_v16 = vsel %vm998_vm11, %v2730_v22, %v2732_v23 }
 0x34e   : > { %2917 = vmatpush1.bf16.msra.mxu0 %v2735_v16  ;;  %v3429_v28 = vpop.permute.xlu1 %3428 }
 0x34f   : > { %v3434_v0 = vsel %vm998_vm11, %v3429_v28, %v3431_v55 }
 0x350   : > { %v3433_v19 = vpop.permute.xlu0 %3432 }
 0x351   : > { %v3435_v57 = vsel %vm998_vm11, %v3431_v55, %v3433_v19 }
 0x352   : > { %3615 = vmatprep.subr.bf16.mxu1 %v3435_v57  ;;  %v2755_v48 = vpop.permute.xlu1 %2754 }
 0x353   : > { %3616 = vmatpush1.bf16.msra.mxu1 %v3434_v0 }
 0x354   : > { %v2753_v50 = vpop.permute.xlu0 %2752 }
 0x355   : > { %v2757_v3 = vsel %vm1029_vm12, %v2753_v50, %v2755_v48 }
 0x356   : > { %2918 = vmatprep.subr.bf16.mxu0 %v2757_v3  ;;  %v3452_v44 = vpop.permute.xlu1 %3451 }
 0x358   : > { %v2751_v49 = vpop.permute.xlu0 %2750 }
 0x359   : > { %v2756_v14 = vsel %vm1029_vm12, %v2751_v49, %v2753_v50 }
 0x35a   : > { %2919 = vmatpush1.bf16.msra.mxu0 %v2756_v14  ;;  %v3450_v36 = vpop.permute.xlu1 %3449 }
 0x35b   : > { %v3455_v25 = vsel %vm1029_vm12, %v3450_v36, %v3452_v44 }
 0x35c   : > { %v3454_v24 = vpop.permute.xlu0 %3453 }
 0x35d   : > { %2931 = vmatmul.mubr.bf16.vlgmr.msra.gmra.mrb[4].mxu0 %v4119_v43  ;;  %v3456_v9 = vsel %vm1029_vm12, %v3452_v44, %v3454_v24 }
 0x35e   : > { %3617 = vmatprep.subr.bf16.mxu1 %v3456_v9 }
 0x35f   : > { %3618 = vmatpush1.bf16.msra.mxu1 %v3455_v25 }
 0x362   : > { %3630 = vmatmul.mubr.bf16.vlgmr.msra.gmra.mrb[4].mxu1 %v4119_v43 }
 0x430   : > { %v2932_v4 = vpop.f32.mrb[4].mxu0 }
 0x431   : > { %v4013_v54 = vadd.f32 %v3970_v13, %v2932_v4  ;;  %v2934_v56 = vpop.f32.mrb[5].mxu0 }
 0x432   : > { %v4014_v10 = vadd.f32 %v3971_v41, %v2934_v56  ;;  %v2936_v42 = vpop.f32.mrb[6].mxu0 }
 0x433   : > { %3978 = vst [vmem:[%s5876_s19 + $0x40] sm:$0xff] %v4013_v54  ;;  %v2954_v61 = vmul.f32 %v4013_v54, %v4013_v54  ;;  %v4015_v47 = vadd.f32 %v3972_v11, %v2936_v42  ;;  %v2938_v6 = vpop.f32.mrb[7].mxu0 }
 0x434   : > { %3979 = vst [vmem:[%s5876_s19 + $0x48] sm:$0xff] %v4014_v10  ;;  %v2955_v20 = vmul.f32 %v4014_v10, %v4014_v10  ;;  %v4016_v27 = vadd.f32 %v3973_v33, %v2938_v6  ;;  %v2946_v29 = vadd.f32 %v4014_v10, %v4013_v54 }
 0x435   : > { %3980 = vst [vmem:[%s5876_s19 + $0x50] sm:$0xff] %v4015_v47  ;;  %v2956_v46 = vmul.f32 %v4015_v47, %v4015_v47  ;;  %v3631_v21 = vpop.f32.mrb[4].mxu1 }
 0x436   : > { %3981 = vst [vmem:[%s5876_s19 + $0x58] sm:$0xff] %v4016_v27  ;;  %v2957_v51 = vmul.f32 %v4016_v27, %v4016_v27  ;;  %v4017_v52 = vadd.f32 %v3982_v58, %v3631_v21  ;;  %v3633_v17 = vpop.f32.mrb[5].mxu1  ;;  %2947 = vadd.xlane.f32.xlu1 %v2946_v29  ;;  %v2949_v30 = vadd.f32 %v4016_v27, %v4015_v47 }
 0x437   : > { %v2958_v5 = vadd.f32 %v2955_v20, %v2954_v61  ;;  %v4018_v31 = vadd.f32 %v3983_v38, %v3633_v17  ;;  %v3635_v34 = vpop.f32.mrb[6].mxu1 }
 0x438   : > { %3990 = vst [vmem:[%s5876_s19 + $0x60] sm:$0xff] %v4017_v52  ;;  %v3653_v53 = vmul.f32 %v4017_v52, %v4017_v52  ;;  %v4019_v59 = vadd.f32 %v3984_v26, %v3635_v34  ;;  %v3637_v1 = vpop.f32.mrb[7].mxu1  ;;  %2950 = vadd.xlane.f32.xlu0 %v2949_v30  ;;  %v2961_v7 = vadd.f32 %v2957_v51, %v2956_v46 }
 0x439   : > { %3991 = vst [vmem:[%s5876_s19 + $0x68] sm:$0xff] %v4018_v31  ;;  %v3654_v12 = vmul.f32 %v4018_v31, %v4018_v31  ;;  %v4020_v35 = vadd.f32 %v3985_v39, %v3637_v1  ;;  %v3645_v40 = vadd.f32 %v4018_v31, %v4017_v52 }
 0x43a   : > { %3992 = vst [vmem:[%s5876_s19 + $0x70] sm:$0xff] %v4019_v59  ;;  %v3655_v8 = vmul.f32 %v4019_v59, %v4019_v59 }
 0x43b   : > { %3993 = vst [vmem:[%s5876_s19 + $0x78] sm:$0xff] %v4020_v35  ;;  %v3656_v15 = vmul.f32 %v4020_v35, %v4020_v35  ;;  %3646 = vadd.xlane.f32.xlu1 %v3645_v40  ;;  %v3648_v45 = vadd.f32 %v4020_v35, %v4019_v59  ;;  %v3657_v18 = vadd.f32 %v3654_v12, %v3653_v53  ;;  %s4132_s19 = sshll.u32 %s4223_s20, 4  ;;  %s4133_s19 = int_to_ptr.vmem [resolvable:$false] %s4132_s19 }
 0x43c   : > { %s4134_s21 = scalar_lea.vmem %s4133_s19, 4096  ;;  %p4135_p1 = scmp.lt.s32.totalorder %s5942_s23, %s4133_s19 }
 0x43d   : > { %3649 = vadd.xlane.f32.xlu0 %v3648_v45  ;;  %v3660_v63 = vadd.f32 %v3656_v15, %v3655_v8  ;;  %p4136_p2 = scmp.lt.s32.totalorder %s4134_s21, %s4128_s11 }
 0x43f   : > { %2959 = vadd.xlane.f32.xlu1 %v2958_v5  ;;  %p4137_p3 = por %p4136_p2, %p4135_p1 }
 0x441   : > { %2962 = vadd.xlane.f32.xlu0 %v2961_v7  ;;  %p4138_p5 = pnand %p4137_p3, %p4131_p0 }
 0x443   : > { %3658 = vadd.xlane.f32.xlu1 %v3657_v18 }
 0x445   : > { %3661 = vadd.xlane.f32.xlu0 %v3660_v63 }
 0x446   : > { %4141 = shalt.err (!%p4138_p5)
}
 0x447   : > { %s4142_s25 = scalar_lea.hbm %s5940_s12, 2048  ;;  %s4146_s26 = scalar_lea.hbm %s6005_s7, 8192 }
 0x448   : > { %p4143_p6 = scmp.ne.s32.totalorder %s5940_s12, %s4142_s25  ;;  %p4147_p10 = scmp.lt.u32.totalorder %s5940_s12, %s6005_s7 }
 0x449   : > { %p4148_p11 = scmp.lt.u32.totalorder %s4146_s26, %s4142_s25  ;;  %p4150_p13 = scmp.lt.u32.totalorder %s4142_s25, %s5940_s12 }
 0x44a   : > { %p4144_p7 = pnand %p4143_p6, %p4310_p4 }
 0x44b   : > { %p4149_p12 = por %p4148_p11, %p4147_p10 }
 0x44c   : > { %p4145_p9 = pneg %p4144_p7 }
 0x44d   : > { %p4151_p0 = por %p4150_p13, %p4149_p12 }
 0x44f   : > { %p4152_p1 = pnand %p4151_p0, %p4145_p9 }
 0x451   : > { %4155 = shalt.err (!%p4152_p1)
}
 0x452   : > { %s4224_s11 = smov 256   ;;  %v1550_v32 = vpop.xlane.xlu0 %1549  ;;  %v1553_v62 = vpop.xlane.xlu1 %1552  ;;  %p358_p2 = scmp.lt.s32.totalorder %s4198_s30, 3  ;;  %vm3665_vm13 = vcmask 7168   ;;  %vm3668_vm14 = vcmask 15368  }
 0x453   : > { %4037 = dma.vmem_to_hbm [thread:$0]  (%p4310_p4), %s5942_s23, 2048, %s5940_s12, %s5946_s16, %s4224_s11, %s4224_s11, %s4210_s14  }
 0x454   : > { %s6027_s30 = smov (!%p358_p2, %s4198_s30), 3 }
 0x455   : > { %s4001_s15 = sshll.u32 %s6027_s30, 4 }
 0x456   : > { %v1562_v2 = vpop.xlane.xlu0 %1561  ;;  %v2249_v23 = vpop.xlane.xlu1 %2248  ;;  %s364_s14 = scalar_lea.vmem %s6006_s8, %s4001_s15 }
 0x457   : > { %v2253_v28 = vadd.f32 %v2249_v23, %v1550_v32 }
 0x45a   : > { %v1565_v37 = vpop.xlane.xlu0 %1564  ;;  %v2261_v55 = vpop.xlane.xlu1 %2260 }
 0x45b   : > { %v2265_v43 = vadd.f32 %v2261_v55, %v1562_v2 }
 0x45e   : > { %v2252_v60 = vpop.xlane.xlu0 %2251 }
 0x45f   : > { %v2254_v57 = vadd.f32 %v2252_v60, %v1553_v62 }
 0x462   : > { %v2264_v22 = vpop.xlane.xlu0 %2263 }
 0x463   : > { %v2266_v24 = vadd.f32 %v2264_v22, %v1565_v37 }
 0x4c3   : > { %v2948_v16 = vpop.xlane.xlu1 %2947 }
 0x4c4   : > { %v2952_v0 = vadd.f32 %v2948_v16, %v2253_v28 }
 0x4c5   : > { %v2951_v19 = vpop.xlane.xlu0 %2950 }
 0x4c6   : > { %v2953_v50 = vadd.f32 %v2951_v19, %v2254_v57 }
 0x4c8   : > { %v3647_v48 = vpop.xlane.xlu1 %3646 }
 0x4c9   : > { %v3651_v3 = vadd.f32 %v3647_v48, %v2952_v0 }
 0x4ca   : > { %v3650_v44 = vpop.xlane.xlu0 %3649 }
 0x4cb   : > { %3666 = vst.msk [vmem:[%s364_s14] sm:$0xff] %vm3665_vm13, %v3651_v3  ;;  %v3652_v49 = vadd.f32 %v3650_v44, %v2953_v50 }
 0x4cc   : > { %v2960_v14 = vpop.xlane.xlu1 %2959 }
 0x4cd   : > { %3667 = vst.msk [vmem:[%s364_s14 + $0x8] sm:$0xff] %vm3665_vm13, %v3652_v49  ;;  %v2964_v9 = vadd.f32 %v2960_v14, %v2265_v43 }
 0x4ce   : > { %v2963_v36 = vpop.xlane.xlu0 %2962 }
 0x4cf   : > { %v2965_v13 = vadd.f32 %v2963_v36, %v2266_v24 }
 0x4d0   : > { %v3659_v25 = vpop.xlane.xlu1 %3658 }
 0x4d1   : > { %v3663_v41 = vadd.f32 %v3659_v25, %v2964_v9 }
 0x4d2   : > { %v3662_v4 = vpop.xlane.xlu0 %3661 }
 0x4d3   : > { %3669 = vst.msk [vmem:[%s364_s14] sm:$0xff] %vm3668_vm14, %v3663_v41  ;;  %v3664_v11 = vadd.f32 %v3662_v4, %v2965_v13 }
 0x4d5   : > { %3670 = vst.msk [vmem:[%s364_s14 + $0x8] sm:$0xff] %vm3668_vm14, %v3664_v11 }
 0x4d6 PF: > { %p4043_p4 = scmp.ge.s32.totalorder %s4206_s10, 2  ;;  %s3715_s30 = sand.u32 1, %s4186_s27  }
 0x4d7   : > { %s3716_s23 = scalar_lea.sflag [#allocation5], %s3715_s30 }
 0x4d8   : > { %p4040_p3 = pnand %p4043_p4, %p4317_p8 }
 0x4da   : > { %4181 = dma.done.wait (!%p4040_p3), %s3716_s23, 2048  }
 0x4db   : > { %4183 = vsyncadd (!%p4040_p3), %s3716_s23, 4294965248  ;;  %s22_s10 = sadd.s32 1, %s4206_s10   ;;  %s6017_s27 = smov %s4190_s28 }
 0x4dc   : > { %p19_p5 = scmp.ge.s32.totalorder %s22_s10, 6   ;;  %s6018_s28 = smov %s4194_s29 }
 0x4dd   : > { %s6019_s29 = smov %s4323_s18  ;;  %s6020_s30 = smov %s4202_s9 }
 0x4de   : > { %s6021_s9 = smov %s6023_s13  ;;  %21 = sbr.rel (!%p19_p5) target bundleno = 4 (0x4), region = 118 }
 0x4e5   :  { %3733 = vsyncpa [#allocation5], 1 }
 0x4e6   :  { %3735 = vsyncpa [#allocation5 + $0x1], 1 }

</bundles_post_ra>
